<compile_context>
chip_gen: v7x
topology: tpu7x:2x2x1
jax: 0.10.0
libtpu: 0.0.40
codegen_flags: <defaults>
</compile_context>

<pallas_src>
import math

import jax
import jax.numpy as jnp
from jax.experimental import pallas as pl
from jax.experimental.pallas import tpu as pltpu

IN_FEATURES = 3
HIDDEN1 = 33600          # Linear(3, 33600)
HIDDEN2 = 16             # Linear(33600, 16)
OUT_FEATURES = 1         # Linear(16, 1)

LANE = 128
SUBLANE = 8
# 264*128: factors into 2/3/4/8-way K chunks (263*128 does not; 263 is prime).
HIDDEN1_PAD = 264 * LANE                 # 33792
NUM_K_CHUNKS = 2                         # 2-deep pipeline on v5e/v6e; 1 chunk/TC on v7x
K_CHUNK = HIDDEN1_PAD // NUM_K_CHUNKS    # 16896 = 132 * 128
W1B1_ROWS = 8                            # rows 0-2 = w1, row 3 = b1, rows 4-7 zero


def dqn_chunk_kernel(x_ref, w1b1_ref, w2t_ref, part_ref):
    """One (batch-tile, K-chunk) step.

    Layer 1 (K=3) runs as broadcast FMAs on the VPU (an MXU matmul would be
    near-empty); layer-2 contraction over this K chunk runs on the MXU in
    bf16 with f32 accumulation.  The per-chunk [TB,16] partial is summed in
    the wrapper, which is what lets the two K chunks land on v7x's two TCs.
    """
    x = x_ref[...]                                           # [TB, 3] f32

    # h = b1 + sum_k x[:, k] * w1[k, :]  -- all f32, lane-dense chunk of w1b1.
    h = x[:, 0:1] * w1b1_ref[0:1, :]
    for k in range(1, IN_FEATURES):
        h = h + x[:, k:k + 1] * w1b1_ref[k:k + 1, :]
    h = h + w1b1_ref[IN_FEATURES:IN_FEATURES + 1, :]         # bias row (row 3)

    # Fused ReLU + bf16 downcast: a single [TB, K_CHUNK] bf16 activation
    # feeds the MXU; the f32 temp can retire immediately.
    h_bf16 = jnp.maximum(h, 0.0).astype(jnp.bfloat16)

    # [TB, C] x [16, C] -> [TB, 16]; w2t is stored lane-dense (big dim on lanes).
    # TODO(synk): if the Mosaic dump shows XLU transposes interleaved with the
    # MXU pushes here, try the swapped dot_general (-> [16, TB]) instead.
    part_ref[0] = jax.lax.dot_general(
        h_bf16, w2t_ref[...],
        dimension_numbers=(((1,), (1,)), ((), ())),
        preferred_element_type=jnp.float32)


def dqn_forward(x, w1b1, w2t, b2r, w3r, b3r):
    """x: [B, 3] float32 -> [B, 1] float32.  Params from prepare_params()."""
    B = x.shape[0]
    B_pad = max(SUBLANE, ((B + SUBLANE - 1) // SUBLANE) * SUBLANE)
    if B_pad != B:
        x = jnp.zeros((B_pad, IN_FEATURES), x.dtype).at[:B].set(x)
    TB = math.gcd(B_pad, 64)                 # batch tile: multiple of 8, <= 64
    nb = B_pad // TB

    # VMEM budget: double-buffered weight chunks + activations + slack.
    per_chunk_weight_bytes = W1B1_ROWS * K_CHUNK * 4 + HIDDEN2 * K_CHUNK * 2
    act_bytes = TB * K_CHUNK * (4 + 2)       # f32 h + bf16 h
    vmem_bytes = int(2 * per_chunk_weight_bytes + 2 * act_bytes + (4 << 20))

    flops = 2 * B_pad * (IN_FEATURES * HIDDEN1_PAD + HIDDEN1_PAD * HIDDEN2)
    bytes_accessed = int(nb * (w1b1.nbytes + w2t.nbytes)   # weights re-streamed / batch tile
                         + x.nbytes
                         + NUM_K_CHUNKS * B_pad * HIDDEN2 * 4)

    partials = pl.pallas_call(
        dqn_chunk_kernel,
        out_shape=jax.ShapeDtypeStruct((NUM_K_CHUNKS, B_pad, HIDDEN2), jnp.float32),
        grid_spec=pltpu.PrefetchScalarGridSpec(
            num_scalar_prefetch=0,
            grid=(nb, NUM_K_CHUNKS),
            in_specs=[
                pl.BlockSpec((TB, IN_FEATURES), lambda bi, ki: (bi, 0)),
                pl.BlockSpec((W1B1_ROWS, K_CHUNK), lambda bi, ki: (0, ki)),
                pl.BlockSpec((HIDDEN2, K_CHUNK), lambda bi, ki: (0, ki)),
            ],
            out_specs=pl.BlockSpec((1, TB, HIDDEN2), lambda bi, ki: (ki, bi, 0)),
        ),
        compiler_params=pltpu.CompilerParams(
            dimension_semantics=("parallel", "parallel"),
            vmem_limit_bytes=vmem_bytes),
        cost_estimate=pl.CostEstimate(
            flops=flops, transcendentals=0, bytes_accessed=bytes_accessed),
    )(x, w1b1, w2t)

    # Tiny epilogue (a few KB of data): sum K-chunk partials, bias+ReLU, layer 3.
    z2 = jnp.maximum(partials.sum(axis=0)[:B] + b2r, 0.0)   # [B, 16]
    return z2 @ w3r + b3r                                    # [B, 1]


def init_params(key):
    """PyTorch-Linear-style init (U[-1/sqrt(fan_in), +1/sqrt(fan_in)]).

    Master weights are float32, stored [in_features, out_features]."""
    ks = jax.random.split(key, 6)

    def lin(kw, kb, fan_in, fan_out):
        bound = 1.0 / jnp.sqrt(jnp.float32(fan_in))
        w = jax.random.uniform(kw, (fan_in, fan_out), jnp.float32, -bound, bound)
        b = jax.random.uniform(kb, (fan_out,), jnp.float32, -bound, bound)
        return w, b

    w1, b1 = lin(ks[0], ks[1], IN_FEATURES, HIDDEN1)
    w2, b2 = lin(ks[2], ks[3], HIDDEN1, HIDDEN2)
    w3, b3 = lin(ks[4], ks[5], HIDDEN2, OUT_FEATURES)
    return w1, b1, w2, b2, w3, b3


def prepare_params(w1, b1, w2, b2, w3, b3):
    """One-time packing (off the per-call path):
       - layer-1 params packed into ONE f32 [8, H1_PAD] array (rows 0-2 = w1,
         row 3 = b1, rows 4-7 zero) -> no sublane-padding blowup, no in-kernel cast,
       - hidden dim zero-padded to 33792 (= 264*128),
       - w2 stored lane-dense as bf16 [16, H1_PAD] (dominant streamed operand),
       - biases / w3 stay f32."""
    w1b1 = (jnp.zeros((W1B1_ROWS, HIDDEN1_PAD), jnp.float32)
            .at[:IN_FEATURES, :HIDDEN1].set(w1.astype(jnp.float32))
            .at[IN_FEATURES, :HIDDEN1].set(b1.astype(jnp.float32)))
    w2t = (jnp.zeros((HIDDEN2, HIDDEN1_PAD), jnp.bfloat16)
           .at[:, :HIDDEN1].set(w2.T.astype(jnp.bfloat16)))
    b2r = b2.reshape(1, HIDDEN2).astype(jnp.float32)
    w3r = w3.astype(jnp.float32)
    b3r = b3.reshape(1, OUT_FEATURES).astype(jnp.float32)
    return w1b1, w2t, b2r, w3r, b3r


def reference_forward(x, w1, b1, w2, b2, w3, b3):
    h = jnp.maximum(x @ w1 + b1, 0.0)
    h = jnp.maximum(h @ w2 + b2, 0.0)
    return h @ w3 + b3


if __name__ == "__main__":
    key = jax.random.PRNGKey(0)
    kx, kp = jax.random.split(key)

    B = 8                                    # small batch; x is [B, 3]
    x = jax.random.normal(kx, (B, IN_FEATURES), jnp.float32)

    raw_params = init_params(kp)
    packed_params = prepare_params(*raw_params)   # one-time, off the hot path

    fwd = jax.jit(dqn_forward)
    out = jax.block_until_ready(fwd(x, *packed_params))

    ref = reference_forward(x, *raw_params)       # pure-f32 PyTorch-equivalent
    assert out.shape == (B, OUT_FEATURES)
    # w2/h are streamed in bf16 (f32 accumulation, f32 layer-1 params) -> bf16 slack
    assert jnp.allclose(out, ref, atol=5e-3, rtol=5e-3), "mismatch vs JAX reference"

    print("KERNEL_OK")
</pallas_src>

<mosaic_0001>
module attributes {stable_mosaic.version = 11 : i64} {
  func.func @dqn_chunk_kernel(%arg0: i32, %arg1: i32, %arg2: memref<8x3xf32, #tpu.memory_space<vmem>>, %arg3: memref<8x16896xf32, #tpu.memory_space<vmem>>, %arg4: memref<16x16896xbf16, #tpu.memory_space<vmem>>, %arg5: memref<1x8x16xf32, #tpu.memory_space<vmem>>) attributes {dimension_semantics = [#tpu.dimension_semantics<parallel>, #tpu.dimension_semantics<parallel>], iteration_bounds = array<i64: 1, 2>, scalar_prefetch = 0 : i64, scratch_operands = 0 : i64, tpu.core_type = #tpu.core_type<tc>, window_params = [{transform_indices = @transform_0, window_bounds = array<i64: 8, 3>}, {transform_indices = @transform_1, window_bounds = array<i64: 8, 16896>}, {transform_indices = @transform_2, window_bounds = array<i64: 16, 16896>}, {transform_indices = @transform_3, window_bounds = array<i64: 1, 8, 16>}]} {
    %c0 = arith.constant 0 : index
    %c0_0 = arith.constant 0 : index
    %0 = vector.load %arg2[%c0, %c0_0] : memref<8x3xf32, #tpu.memory_space<vmem>>, vector<8x3xf32>
    %1 = vector.extract_strided_slice %0 {offsets = [0, 0], sizes = [8, 1], strides = [1, 1]} : vector<8x3xf32> to vector<8x1xf32>
    %c0_1 = arith.constant 0 : index
    %c0_2 = arith.constant 0 : index
    %2 = vector.load %arg3[%c0_1, %c0_2] : memref<8x16896xf32, #tpu.memory_space<vmem>>, vector<1x16896xf32>
    %3 = vector.broadcast %1 : vector<8x1xf32> to vector<8x16896xf32>
    %4 = vector.broadcast %2 : vector<1x16896xf32> to vector<8x16896xf32>
    %5 = arith.mulf %3, %4 : vector<8x16896xf32>
    %6 = vector.extract_strided_slice %0 {offsets = [0, 1], sizes = [8, 1], strides = [1, 1]} : vector<8x3xf32> to vector<8x1xf32>
    %c1 = arith.constant 1 : index
    %c0_3 = arith.constant 0 : index
    %7 = vector.load %arg3[%c1, %c0_3] : memref<8x16896xf32, #tpu.memory_space<vmem>>, vector<1x16896xf32>
    %8 = vector.broadcast %6 : vector<8x1xf32> to vector<8x16896xf32>
    %9 = vector.broadcast %7 : vector<1x16896xf32> to vector<8x16896xf32>
    %10 = arith.mulf %8, %9 : vector<8x16896xf32>
    %11 = arith.addf %5, %10 : vector<8x16896xf32>
    %12 = vector.extract_strided_slice %0 {offsets = [0, 2], sizes = [8, 1], strides = [1, 1]} : vector<8x3xf32> to vector<8x1xf32>
    %c2 = arith.constant 2 : index
    %c0_4 = arith.constant 0 : index
    %13 = vector.load %arg3[%c2, %c0_4] : memref<8x16896xf32, #tpu.memory_space<vmem>>, vector<1x16896xf32>
    %14 = vector.broadcast %12 : vector<8x1xf32> to vector<8x16896xf32>
    %15 = vector.broadcast %13 : vector<1x16896xf32> to vector<8x16896xf32>
    %16 = arith.mulf %14, %15 : vector<8x16896xf32>
    %17 = arith.addf %11, %16 : vector<8x16896xf32>
    %c3 = arith.constant 3 : index
    %c0_5 = arith.constant 0 : index
    %18 = vector.load %arg3[%c3, %c0_5] : memref<8x16896xf32, #tpu.memory_space<vmem>>, vector<1x16896xf32>
    %19 = vector.broadcast %18 : vector<1x16896xf32> to vector<8x16896xf32>
    %20 = arith.addf %17, %19 : vector<8x16896xf32>
    %cst = arith.constant 0.000000e+00 : f32
    %21 = vector.broadcast %cst : f32 to vector<8x16896xf32>
    %22 = arith.maximumf %20, %21 : vector<8x16896xf32>
    %23 = arith.truncf %22 : vector<8x16896xf32> to vector<8x16896xbf16>
    %c0_6 = arith.constant 0 : index
    %c0_7 = arith.constant 0 : index
    %24 = vector.load %arg4[%c0_6, %c0_7] : memref<16x16896xbf16, #tpu.memory_space<vmem>>, vector<16x16896xbf16>
    %cst_8 = arith.constant dense<0.000000e+00> : vector<8x16xf32>
    %25 = tpu.matmul %23, %24, %cst_8 {dimension_numbers = #tpu.dot_dimension_numbers<[1], [1], [0], [0], [0, 0, 1, 0], [], []>} : vector<8x16896xbf16>, vector<16x16896xbf16>, vector<8x16xf32> -> vector<8x16xf32>
    %c0_9 = arith.constant 0 : index
    %c0_10 = arith.constant 0 : index
    %c0_11 = arith.constant 0 : index
    %26 = vector.load %arg5[%c0_9, %c0_10, %c0_11] : memref<1x8x16xf32, #tpu.memory_space<vmem>>, vector<1x8x16xf32>
    %27 = vector.shape_cast %26 : vector<1x8x16xf32> to vector<8x16xf32>
    %28 = vector.shape_cast %25 : vector<8x16xf32> to vector<1x8x16xf32>
    tpu.vector_store %arg5[%c0_9, %c0_10, %c0_11], %28 {strides = array<i32>} : memref<1x8x16xf32, #tpu.memory_space<vmem>>, vector<1x8x16xf32>,
    return
  }
  func.func @transform_0(%arg0: i32, %arg1: i32) -> (i32, i32) {
    %c0_i32 = arith.constant 0 : i32
    %c0_i32_0 = arith.constant 0 : i32
    return %arg0, %c0_i32 : i32, i32
  }
  func.func @transform_1(%arg0: i32, %arg1: i32) -> (i32, i32) {
    %c0_i32 = arith.constant 0 : i32
    %c0_i32_0 = arith.constant 0 : i32
    return %c0_i32, %arg1 : i32, i32
  }
  func.func @transform_2(%arg0: i32, %arg1: i32) -> (i32, i32) {
    %c0_i32 = arith.constant 0 : i32
    %c0_i32_0 = arith.constant 0 : i32
    return %c0_i32, %arg1 : i32, i32
  }
  func.func @transform_3(%arg0: i32, %arg1: i32) -> (i32, i32, i32) {
    %c0_i32 = arith.constant 0 : i32
    %c0_i32_0 = arith.constant 0 : i32
    return %arg1, %arg0, %c0_i32 : i32, i32, i32
  }
}

</mosaic_0001>

<bundles_post_ra>
// kernel: dqn_forward.1
= control target key start
LH: loop header
LB: loop body
LE: loop exit
PB: predicated region body
PF: predicated region fallthrough
CT: control target
= control target key end

     0   :  { %8 = vsyncpa [#allocation3], 0  ;;  %s11773_s0 = inlined_call_operand.vmem [shape: f32[8,3], index: 0, kind: input, shape index: {}]   ;;  %s11774_s1 = inlined_call_operand.hbm [shape: f32[8,33792], index: 1, kind: input, shape index: {}]   ;;  %s11775_s2 = inlined_call_operand.hbm [shape: bf16[16,33792], index: 2, kind: input, shape index: {}]   ;;  %s11776_s3 = inlined_call_operand.vmem [shape: f32[2,8,16], index: 3, kind: output, shape index: {}]  }
   0x1   :  { %10 = vsyncpa [#allocation3 + $0x1], 0 }
   0x2   :  { %11 = vsyncpa [#allocation5], 0 }
   0x3   :  { %13 = vsyncpa [#allocation5 + $0x1], 0  ;;  %s8810_s12 = smov 0   ;;  %s8812_s13 = smov 0  }
   0x4   :  { %s8814_s14 = smov 0   ;;  %s8816_s15 = smov 0  }
   0x5   :  { %s8818_s16 = smov 0   ;;  %s8820_s17 = smov 0  }
   0x6 LB: > { %s7863_s18 = sadd.s32 4294967295, %s8780_s17   ;;  %s28_s19 = sadd.s32 1, %s8776_s16  ;;  %s8780_s17 = sphi %s8820_s17, %s19_s17   ;;  %s8776_s16 = sphi %s8818_s16, %s12051_s16   ;;  %s8772_s15 = sphi %s8816_s15, %s12050_s15   ;;  %s8768_s14 = sphi %s8814_s14, %s12049_s14   ;;  %s8764_s13 = sphi %s8812_s13, %s12048_s13   ;;  %s8760_s12 = sphi %s8810_s12, %s12047_s12  }
   0x7   : > { %p29_p0 = scmp.ge.s32.totalorder %s28_s19, 2  ;;  %s64_s20 = sadd.s32 1, %s8768_s14 }
   0x8   : > { %p71_p1 = scmp.ne.s32.totalorder %s8768_s14, %s8764_s13  ;;  %p72_p2 = scmp.eq.s32.totalorder %s8780_s17, 0 }
   0x9   : > { %s12053_s19 = smov (%p29_p0, %s28_s19), 0  ;;  %p77_p4 = scmp.ne.s32.totalorder %s8764_s13, %s8760_s12 }
   0xa   : > { %p73_p3 = por %p72_p2, %p71_p1  ;;  %s61_s21 = ssub.s32 %s8776_s16, %s12053_s19 }
   0xb   : > { %p78_p5 = scmp.eq.s32.totalorder %s7863_s18, 0  ;;  %p62_p6 = scmp.eq.s32.totalorder %s61_s21, 0 }
   0xc   : > { %p8409_p8 = scmp.lt.s32.totalorder %s8780_s17, 2  ;;  %s8858_s24 = sand.u32 1, %s8768_s14  }
   0xd   : > { %p8849_p7 = por %p78_p5, %p77_p4  ;;  %s8136_s25 = smul.u32 16896, %s8776_s16 }
   0xe   : > { %s8855_s23 = scalar_select %p62_p6, %s8768_s14, %s64_s20  }
   0xf   : > { %s11800_s22 = scalar_select %p8849_p7, 1, 0 }
  0x10   : > { %s8395_s26 = smul.u32 1056, %s8858_s24  ;;  %s8865_s29 = scalar_lea.hbm %s11774_s1, %s8136_s25 }
  0x11   : > { %p8867_p9 = pnand %p8409_p8, %p73_p3  ;;  %s163_s6 = scalar_lea.sflag [#allocation3], %s8858_s24 }
  0x12   : > { %s166_s4 = scalar_lea.vmem [#allocation2], %s8395_s26  ;;  %s8666_s7 = scalar_lea.hbm %s8865_s29, 16896 }
  0x13   : > { %s174_s5 = sshll.u32 %s166_s4, 4  ;;  %p8667_p10 = scmp.ne.s32.totalorder %s8865_s29, %s8666_s7  ;;  %s8873_s5 = int_to_ptr.vmem [resolvable:$true] %s174_s5 }
  0x14   : > { %p8668_p11 = pneg %p8867_p9  ;;  %s8671_s10 = scalar_lea.hbm %s11774_s1, 33792 }
  0x15   : > { %p8672_p0 = scmp.lt.u32.totalorder %s8865_s29, %s11774_s1  ;;  %p8673_p1 = scmp.lt.u32.totalorder %s8671_s10, %s8666_s7 }
  0x16   : > { %p8669_p12 = pnand %p8668_p11, %p8667_p10  ;;  %p8675_p3 = scmp.lt.u32.totalorder %s8666_s7, %s8865_s29 }
  0x17   : > { %p8674_p2 = por %p8673_p1, %p8672_p0 }
  0x18   : > { %p8670_p13 = pneg %p8669_p12 }
  0x19   : > { %p8676_p4 = por %p8675_p3, %p8674_p2 }
  0x1b   : > { %p8677_p5 = pnand %p8676_p4, %p8670_p13 }
  0x1d   : > { %8680 = shalt.err (!%p8677_p5)
}
  0x1e   : > { %s8681_s18 = scalar_lea.vmem %s8873_s5, 16896  ;;  %s8782_s20 = smov [#allocation2]  }
  0x1f   : > { %p8682_p6 = scmp.ne.s32.totalorder %s8873_s5, %s8681_s18  ;;  %s8686_s21 = sshll.u32 %s8782_s20, 4  ;;  %s8687_s21 = int_to_ptr.vmem [resolvable:$false] %s8686_s21 }
  0x20   : > { %s8688_s25 = scalar_lea.vmem %s8687_s21, 33792  ;;  %p8689_p12 = scmp.lt.s32.totalorder %s8873_s5, %s8687_s21 }
  0x21   : > { %p8684_p8 = pnand %p8682_p6, %p8668_p11  ;;  %p8690_p0 = scmp.lt.s32.totalorder %s8688_s25, %s8681_s18 }
  0x23   : > { %p8685_p10 = pneg %p8684_p8  ;;  %p8691_p1 = por %p8690_p0, %p8689_p12 }
  0x25   : > { %p8692_p2 = pnand %p8691_p1, %p8685_p10 }
  0x27   : > { %8695 = shalt.err (!%p8692_p2)
}
  0x28   : > { %8405 = dma.hbm_to_vmem [thread:$0]  (!%p8867_p9), %s8865_s29, 16896, %s8873_s5, %s163_s6  }
  0x29   : > { %s8137_s27 = smul.u32 8448, %s8776_s16  ;;  %s185_s28 = scalar_lea.vmem [#allocation4], %s8395_s26 }
  0x2a   : > { %s192_s4 = sshll.u32 %s185_s28, 4  ;;  %p7870_p13 = scmp.ge.s32.totalorder %s8780_s17, 1  ;;  %s8904_s4 = int_to_ptr.vmem [resolvable:$true] %s192_s4 }
  0x2b   : > { %p200_p3 = scmp.lt.s32.totalorder %s8780_s17, 3  ;;  %s8911_s9 = scalar_lea.hbm %s11775_s2, %s8137_s27 }
  0x2c   : > { %s182_s29 = scalar_lea.sflag [#allocation5], %s8858_s24  ;;  %s8696_s26 = scalar_lea.hbm %s8911_s9, 16896 }
  0x2d   : > { %p8913_p4 = pnand %p7870_p13, %p200_p3  ;;  %p8697_p5 = scmp.ne.s32.totalorder %s8911_s9, %s8696_s26 }
  0x2e   : > { %s8701_s11 = scalar_lea.hbm %s11775_s2, 33792  ;;  %p8702_p10 = scmp.lt.u32.totalorder %s8911_s9, %s11775_s2 }
  0x2f   : > { %p8699_p6 = pnand %p8697_p5, %p8668_p11  ;;  %p8703_p12 = scmp.lt.u32.totalorder %s8701_s11, %s8696_s26 }
  0x30   : > { %p8705_p1 = scmp.lt.u32.totalorder %s8696_s26, %s8911_s9 }
  0x31   : > { %p8700_p8 = pneg %p8699_p6  ;;  %p8704_p0 = por %p8703_p12, %p8702_p10 }
  0x33   : > { %p8706_p2 = por %p8705_p1, %p8704_p0 }
  0x35   : > { %p8707_p13 = pnand %p8706_p2, %p8700_p8 }
  0x37   : > { %8710 = shalt.err (!%p8707_p13)
}
  0x38   : > { %s8711_s20 = scalar_lea.vmem %s8904_s4, 16896  ;;  %s8783_s21 = smov [#allocation4]  }
  0x39   : > { %p8712_p3 = scmp.ne.s32.totalorder %s8904_s4, %s8711_s20  ;;  %s8716_s25 = sshll.u32 %s8783_s21, 4  ;;  %s8717_s25 = int_to_ptr.vmem [resolvable:$false] %s8716_s25 }
  0x3a   : > { %s8718_s27 = scalar_lea.vmem %s8717_s25, 33792  ;;  %p8719_p7 = scmp.lt.s32.totalorder %s8904_s4, %s8717_s25 }
  0x3b   : > { %p8714_p5 = pnand %p8712_p3, %p8668_p11  ;;  %p8720_p10 = scmp.lt.s32.totalorder %s8718_s27, %s8711_s20 }
  0x3d   : > { %p8715_p6 = pneg %p8714_p5  ;;  %p8721_p12 = por %p8720_p10, %p8719_p7 }
  0x3f   : > { %p8722_p0 = pnand %p8721_p12, %p8715_p6 }
  0x41   : > { %8725 = shalt.err (!%p8722_p0)
}
  0x42   : > { %s8784_s28 = smov 16896   ;;  %s8785_s7 = smov 8448  }
  0x43   : > { %s8786_s8 = smov 528   ;;  %204 = sbr.rel (%p8913_p4) target bundleno = 854 (0x356), region = 32 }
  0x44   : > { %8408 = dma.hbm_to_vmem [thread:$0]  (!%p8867_p9), %s8911_s9, 16896, %s8904_s4, %s182_s29, %s8784_s28, %s8785_s7, %s8786_s8  }
  0x4a   : > { %s206_s26 = sand.u32 1, %s8764_s13   ;;  %p11803_p7 = scmp.ne.s32.totalorder %s11800_s22, 0 }
  0x4b   : > { %s8397_s5 = smul.u32 1056, %s206_s26  ;;  %s207_s6 = scalar_lea.sflag [#allocation3], %s206_s26 }
  0x4d   : > { %s8946_s11 = scalar_lea.vmem [#allocation2], %s8397_s5 }
  0x4e   : > { %8751 = dma.done.wait (%p11803_p7), %s207_s6, 16896  }
  0x4f   : > { %8753 = vsyncadd (%p11803_p7), %s207_s6, 4294950400  ;;  %s216_s12 = scalar_lea.sflag [#allocation5], %s206_s26  ;;  %s8952_s30 = scalar_lea.vmem [#allocation4], %s8397_s5 }
  0x50   : > { %8755 = dma.done.wait (%p11803_p7), %s216_s12, 16896  }
  0x51   : > { %8757 = vsyncadd (%p11803_p7), %s216_s12, 4294950400  ;;  %v8787_v0 = vmov 0   ;;  %v8788_v1 = vmov 2   ;;  %v267_v2 = vld [vmem:[%s11773_s0] sm:$0xff]  ;;  %v8789_v3 = vmov 1   ;;  %v355_v10 = vlaneseq  ;;  %p259_p9 = scmp.lt.s32.totalorder %s8772_s15, 1 }
  0x52   : > { %8464 = vset.pattern.permute.xlu0 %v8787_v0  ;;  %8466 = vset.pattern.permute.xlu1 %v8788_v1  ;;  %v8468_v4 = vld [vmem:[%s8952_s30 + $0x4] ss:$528 sps:$4 sm:$0xff]   ;;  %v8470_v5 = vld [vmem:[%s8952_s30 + $0x10c] ss:$528 sps:$4 sm:$0xff]   ;;  %v8472_v6 = vld [vmem:[%s8952_s30] ss:$528 sps:$4 sm:$0xff]  }
  0x53   : > { %335 = vperm.xlu0 %8464, %v267_v2   ;;  %2225 = vperm.xlu1 %8466, %v267_v2   ;;  %v8473_v7 = vld [vmem:[%s8952_s30 + $0x108] ss:$528 sps:$4 sm:$0xff]   ;;  %v8476_v8 = vld [vmem:[%s8952_s30 + $0xc] ss:$528 sps:$4 sm:$0xff]   ;;  %v8479_v9 = vld [vmem:[%s8952_s30 + $0x114] ss:$528 sps:$4 sm:$0xff]  }
  0x54   : > { %5100 = vmatprep.subr.bf16.mxu1 %v8468_v4  ;;  %6420 = vmatprep.subr.bf16.mxu0 %v8470_v5  ;;  %v268_v11 = vld [vmem:[%s8946_s11] ss:$8 sm:$0xf]  ;;  %v356_v13 = vshrl.u32 %v355_v10, 7  ;;  %s12055_s15 = smov (!%p259_p9, %s8772_s15), 1  ;;  %vm7740_vm0 = vcmask 130048  }
  0x55   : > { %5101 = vmatpush1.bf16.xpose.msra.mxu1 %v8472_v6  ;;  %6421 = vmatpush1.bf16.xpose.msra.mxu0 %v8473_v7  ;;  %v269_v12 = vld [vmem:[%s8946_s11] ss:$8 sm:$0xf0]  ;;  %v7903_v14 = vld [vmem:[%s8946_s11 + $0x1] ss:$8 sm:$0xf] }
  0x56   : > { %5140 = vmatprep.subr.bf16.mxu1 %v8476_v8  ;;  %6460 = vmatprep.subr.bf16.mxu0 %v8479_v9  ;;  %v7904_v15 = vld [vmem:[%s8946_s11 + $0x1] ss:$8 sm:$0xf0]  ;;  %v7936_v16 = vld [vmem:[%s8946_s11 + $0x2] ss:$8 sm:$0xf]  ;;  %v8973_v18 = vor.u32 %v269_v12, %v268_v11 }
  0x57   : > { %8465 = vset.pattern.permute.xlu0 %v8789_v3  ;;  %v7937_v17 = vld [vmem:[%s8946_s11 + $0x2] ss:$8 sm:$0xf0]  ;;  %v8975_v19 = vsub.s32 1, %v356_v13  ;;  %v8979_v22 = vsub.s32 3, %v356_v13  ;;  %v8981_v23 = vsub.s32 0, %v356_v13  ;;  %v8983_v24 = vor.u32 %v7904_v15, %v7903_v14 }
  0x58   : > { %1214 = vperm.xlu0 %8465, %v267_v2   ;;  %v7969_v20 = vld [vmem:[%s8946_s11 + $0x3] ss:$8 sm:$0xf]  ;;  %v7886_v21 = vld [vmem:[%s8946_s11 + $0x200] ss:$8 sm:$0xf]  ;;  %v8993_v30 = vor.u32 %v7937_v17, %v7936_v16 }
  0x59   : > { %v8985_v25 = vsub.s32 2, %v356_v13  ;;  %v8987_v26 = vsub.s32 5, %v356_v13  ;;  %v8989_v27 = vsub.s32 4, %v356_v13  ;;  %v7970_v28 = vld [vmem:[%s8946_s11 + $0x3] ss:$8 sm:$0xf0]  ;;  %v362_v33 = vrot.slane %v8973_v18, %v8975_v19 }
  0x5a   : > { %v7887_v29 = vld [vmem:[%s8946_s11 + $0x200] ss:$8 sm:$0xf0]  ;;  %v7919_v31 = vld [vmem:[%s8946_s11 + $0x201] ss:$8 sm:$0xf]  ;;  %v358_v36 = vrot.slane %v8973_v18, %v8981_v23  ;;  %v1241_v37 = vrot.slane %v8983_v24, %v8975_v19  ;;  %v9005_v38 = vor.u32 %v7970_v28, %v7969_v20  ;;  %v370_v42 = vrot.slane %v8973_v18, %v8979_v22 }
  0x5b   : > { %v7920_v32 = vld [vmem:[%s8946_s11 + $0x201] ss:$8 sm:$0xf0]  ;;  %v7952_v34 = vld [vmem:[%s8946_s11 + $0x202] ss:$8 sm:$0xf]  ;;  %v9007_v39 = vor.u32 %v7887_v29, %v7886_v21  ;;  %v1237_v44 = vrot.slane %v8983_v24, %v8981_v23  ;;  %v366_v46 = vrot.slane %v8973_v18, %v8985_v25  ;;  %v2252_v47 = vrot.slane %v8993_v30, %v8975_v19 }
  0x5c   : > { %8467 = vset.pattern.permute.xlu0 %v8788_v1  ;;  %v7953_v35 = vld [vmem:[%s8946_s11 + $0x202] ss:$8 sm:$0xf0]  ;;  %v7985_v40 = vld [vmem:[%s8946_s11 + $0x203] ss:$8 sm:$0xf]  ;;  %v9013_v43 = vor.u32 %v7920_v32, %v7919_v31  ;;  %v2248_v49 = vrot.slane %v8993_v30, %v8981_v23  ;;  %v2260_v52 = vrot.slane %v8993_v30, %v8979_v22  ;;  %v11818_v8 = vrot.slane %v8993_v30, %v8985_v25 }
  0x5d   : > { %v7986_v41 = vld [vmem:[%s8946_s11 + $0x203] ss:$8 sm:$0xf0]  ;;  %v9023_v48 = vor.u32 %v7953_v35, %v7952_v34  ;;  %v626_v56 = vrot.slane %v9007_v39, %v8979_v22  ;;  %v622_v60 = vrot.slane %v9007_v39, %v8985_v25  ;;  %v7888_v63 = vld [vmem:[%s8946_s11 + $0x240] ss:$8 sm:$0xf]  ;;  %v634_v7 = vrot.slane %v9007_v39, %v8987_v26 }
  0x5e   : > { %v9029_v51 = vor.u32 %v7986_v41, %v7985_v40  ;;  %v1505_v59 = vrot.slane %v9013_v43, %v8979_v22  ;;  %v1501_v61 = vrot.slane %v9013_v43, %v8985_v25  ;;  %v7889_v0 = vld [vmem:[%s8946_s11 + $0x240] ss:$8 sm:$0xf0]  ;;  %v9059_v3 = vsub.s32 7, %v356_v13  ;;  %s7871_s22 = sshll.u32 %s12055_s15, 3 }
  0x5f   : > { %v2516_v1 = vrot.slane %v9023_v48, %v8979_v22  ;;  %v2512_v2 = vrot.slane %v9023_v48, %v8985_v25  ;;  %v9061_v4 = vsub.s32 6, %v356_v13  ;;  %v7921_v9 = vld [vmem:[%s8946_s11 + $0x241] ss:$8 sm:$0xf]  ;;  %v2524_v11 = vrot.slane %v9023_v48, %v8987_v26  ;;  %s265_s29 = scalar_lea.vmem %s11776_s3, %s7871_s22 }
  0x60   : > { %v7922_v10 = vld [vmem:[%s8946_s11 + $0x241] ss:$8 sm:$0xf0]  ;;  %v9079_v14 = vor.u32 %v7889_v0, %v7888_v63  ;;  %v7872_v15 = vld [vmem:[%s8946_s11 + $0x40] ss:$8 sm:$0xf] }
  0x61   : > { %v7873_v16 = vld [vmem:[%s8946_s11 + $0x40] ss:$8 sm:$0xf0]  ;;  %v7954_v29 = vld [vmem:[%s8946_s11 + $0x242] ss:$8 sm:$0xf]  ;;  %v9107_v28 = vor.u32 %v7922_v10, %v7921_v9 }
  0x62   : > { %v7955_v31 = vld [vmem:[%s8946_s11 + $0x242] ss:$8 sm:$0xf0]  ;;  %v7987_v58 = vld [vmem:[%s8946_s11 + $0x243] ss:$8 sm:$0xf]  ;;  %v9117_v41 = vor.u32 %v7873_v16, %v7872_v15 }
  0x63   : > { %v7988_v13 = vld [vmem:[%s8946_s11 + $0x243] ss:$8 sm:$0xf0]  ;;  %v9115_v34 = vor.u32 %v7955_v31, %v7954_v29  ;;  %v7905_v35 = vld [vmem:[%s8946_s11 + $0x41] ss:$8 sm:$0xf] }
  0x64   : > { %11804 = vst [vmem:[#allocation8_spill] sm:$0xff] %v9117_v41  ;;  %v7906_v40 = vld [vmem:[%s8946_s11 + $0x41] ss:$8 sm:$0xf0]  ;;  %v9133_v29 = vor.u32 %v7988_v13, %v7987_v58 }
  0x65   : > { %v7938_v9 = vld [vmem:[%s8946_s11 + $0x42] ss:$8 sm:$0xf]  ;;  %v7971_v16 = vld [vmem:[%s8946_s11 + $0x43] ss:$8 sm:$0xf]  ;;  %v9155_v54 = vor.u32 %v7906_v40, %v7905_v35 }
  0x66   : > { %11805 = vst [vmem:[#allocation9_spill] sm:$0xff] %v9133_v29  ;;  %v7939_v63 = vld [vmem:[%s8946_s11 + $0x42] ss:$8 sm:$0xf0] }
  0x67   : > { %v7972_v58 = vld [vmem:[%s8946_s11 + $0x43] ss:$8 sm:$0xf0]  ;;  %11806 = vst [vmem:[#allocation10_spill] sm:$0xff] %v9155_v54  ;;  %v9161_v15 = vor.u32 %v7939_v63, %v7938_v9 }
  0x68   : > { %v9169_v10 = vor.u32 %v7972_v58, %v7971_v16  ;;  %v7890_v16 = vld [vmem:[%s8946_s11 + $0x280] ss:$8 sm:$0xf]  ;;  %v7923_v35 = vld [vmem:[%s8946_s11 + $0x281] ss:$8 sm:$0xf] }
  0x69   : > { %11807 = vst [vmem:[#allocation11_spill] sm:$0xff] %v9161_v15  ;;  %v7891_v9 = vld [vmem:[%s8946_s11 + $0x280] ss:$8 sm:$0xf0] }
  0x6a   : > { %11808 = vst [vmem:[#allocation12_spill] sm:$0xff] %v9169_v10  ;;  %v9229_v31 = vor.u32 %v7891_v9, %v7890_v16  ;;  %v7924_v63 = vld [vmem:[%s8946_s11 + $0x281] ss:$8 sm:$0xf0] }
  0x6b   : > { %v7874_v0 = vld [vmem:[%s8946_s11 + $0x80] ss:$8 sm:$0xf]  ;;  %v7956_v12 = vld [vmem:[%s8946_s11 + $0x282] ss:$8 sm:$0xf]  ;;  %v9277_v55 = vor.u32 %v7924_v63, %v7923_v35 }
  0x6c   : > { %11809 = vst [vmem:[#allocation13_spill] sm:$0xff] %v9229_v31  ;;  %v7875_v40 = vld [vmem:[%s8946_s11 + $0x80] ss:$8 sm:$0xf0] }
  0x6d   : > { %v7957_v62 = vld [vmem:[%s8946_s11 + $0x282] ss:$8 sm:$0xf0]  ;;  %v7907_v16 = vld [vmem:[%s8946_s11 + $0x81] ss:$8 sm:$0xf]  ;;  %v9287_v17 = vor.u32 %v7875_v40, %v7874_v0 }
  0x6e   : > { %v7908_v57 = vld [vmem:[%s8946_s11 + $0x81] ss:$8 sm:$0xf0]  ;;  %11810 = vst [vmem:[#allocation14_spill] sm:$0xff] %v9277_v55  ;;  %v9295_v13 = vor.u32 %v7957_v62, %v7956_v12 }
  0x6f   : > { %v7989_v58 = vld [vmem:[%s8946_s11 + $0x283] ss:$8 sm:$0xf]  ;;  %11811 = vst [vmem:[#allocation15_spill] sm:$0xff] %v9287_v17  ;;  %v9305_v32 = vor.u32 %v7908_v57, %v7907_v16  ;;  %v11816_v57 = vrot.slane %v9013_v43, %v8987_v26 }
  0x70   : > { %v7990_v21 = vld [vmem:[%s8946_s11 + $0x283] ss:$8 sm:$0xf0]  ;;  %v7940_v5 = vld [vmem:[%s8946_s11 + $0x82] ss:$8 sm:$0xf] }
  0x71   : > { %v7941_v20 = vld [vmem:[%s8946_s11 + $0x82] ss:$8 sm:$0xf0]  ;;  %11812 = vst [vmem:[#allocation16_spill] sm:$0xff] %v9295_v13  ;;  %v9303_v40 = vor.u32 %v7990_v21, %v7989_v58  ;;  %11813 = vst [vmem:[#allocation17_spill] sm:$0xff] %v9305_v32  ;;  %v11817_v21 = vrot.slane %v8983_v24, %v8985_v25 }
  0x72   : > { %v7973_v53 = vld [vmem:[%s8946_s11 + $0x83] ss:$8 sm:$0xf]  ;;  %v9313_v12 = vor.u32 %v7941_v20, %v7940_v5  ;;  %v7892_v20 = vld [vmem:[%s8946_s11 + $0x2c0] ss:$8 sm:$0xf] }
  0x73   : > { %v7974_v35 = vld [vmem:[%s8946_s11 + $0x83] ss:$8 sm:$0xf0]  ;;  %v7893_v58 = vld [vmem:[%s8946_s11 + $0x2c0] ss:$8 sm:$0xf0] }
  0x74   : > { %v9331_v6 = vor.u32 %v7974_v35, %v7973_v53  ;;  %v9389_v9 = vor.u32 %v7893_v58, %v7892_v20  ;;  %v7925_v35 = vld [vmem:[%s8946_s11 + $0x2c1] ss:$8 sm:$0xf]  ;;  %v7876_v16 = vld [vmem:[%s8946_s11 + $0xc0] ss:$8 sm:$0xf] }
  0x75   : > { %v7926_v58 = vld [vmem:[%s8946_s11 + $0x2c1] ss:$8 sm:$0xf0]  ;;  %v7877_v0 = vld [vmem:[%s8946_s11 + $0xc0] ss:$8 sm:$0xf0] }
  0x76   : > { %11814 = vst [vmem:[#allocation18_spill] sm:$0xff] %v9389_v9  ;;  %v9445_v45 = vor.u32 %v7926_v58, %v7925_v35  ;;  %v9455_v63 = vor.u32 %v7877_v0, %v7876_v16  ;;  %v11815_v58 = vrot.slane %v8983_v24, %v8979_v22 }
  0xd2   : > { %v9427_v5 = vpop.permute.xlu0 %335  ;;  %v9429_v62 = vpop.permute.xlu1 %2225 }
  0xd3   : > { %v1016_v53 = vmul.f32 %v362_v33, %v9427_v5  ;;  %v2906_v50 = vmul.f32 %v2252_v47, %v9429_v62  ;;  %v1082_v35 = vmul.f32 %v626_v56, %v9427_v5  ;;  %v2972_v33 = vmul.f32 %v2516_v1, %v9429_v62 }
  0xd4   : > { %v1015_v0 = vmul.f32 %v358_v36, %v9427_v5  ;;  %v2905_v47 = vmul.f32 %v2248_v49, %v9429_v62  ;;  %v1081_v56 = vmul.f32 %v622_v60, %v9427_v5  ;;  %v2971_v1 = vmul.f32 %v2512_v2, %v9429_v62 }
  0xd5   : > { %v1018_v36 = vmul.f32 %v370_v42, %v9427_v5  ;;  %v2908_v49 = vmul.f32 %v2260_v52, %v9429_v62  ;;  %v1084_v60 = vmul.f32 %v634_v7, %v9427_v5  ;;  %v2974_v2 = vmul.f32 %v2524_v11, %v9429_v62 }
  0xd6   : > { %v1017_v42 = vmul.f32 %v366_v46, %v9427_v5 }
  0xd7   : > { %v9489_v16 = vpop.permute.xlu0 %1214 }
  0xd8   : > { %v1895_v52 = vmul.f32 %v1241_v37, %v9489_v16  ;;  %v1961_v7 = vmul.f32 %v1505_v59, %v9489_v16  ;;  %v1894_v11 = vmul.f32 %v1237_v44, %v9489_v16  ;;  %v1960_v46 = vmul.f32 %v1501_v61, %v9489_v16 }
  0xd9   : > { %v1897_v37 = vmul.f32 %v11815_v58, %v9489_v16  ;;  %v1963_v59 = vmul.f32 %v11816_v57, %v9489_v16  ;;  %v1896_v44 = vmul.f32 %v11817_v21, %v9489_v16  ;;  %v2907_v61 = vmul.f32 %v11818_v8, %v9429_v62 }
  0xda   : > { %v2027_v20 = vadd.f32 %v1895_v52, %v1016_v53  ;;  %v2093_v17 = vadd.f32 %v1961_v7, %v1082_v35  ;;  %v2026_v13 = vadd.f32 %v1894_v11, %v1015_v0  ;;  %v2092_v31 = vadd.f32 %v1960_v46, %v1081_v56 }
  0xdb   : > { %v2029_v58 = vadd.f32 %v1897_v37, %v1018_v36  ;;  %v2095_v55 = vadd.f32 %v1963_v59, %v1084_v60  ;;  %v2028_v10 = vadd.f32 %v1896_v44, %v1017_v42  ;;  %v11819_v57 = vrot.slane %v9013_v43, %v8989_v27 }
  0xdc   : > { %v3038_v41 = vadd.f32 %v2906_v50, %v2027_v20  ;;  %v3104_v29 = vadd.f32 %v2972_v33, %v2093_v17  ;;  %v3037_v21 = vadd.f32 %v2905_v47, %v2026_v13  ;;  %v3103_v54 = vadd.f32 %v2971_v1, %v2092_v31 }
  0xdd   : > { %v1962_v15 = vmul.f32 %v11819_v57, %v9489_v16  ;;  %v3040_v32 = vadd.f32 %v2908_v49, %v2029_v58  ;;  %v3106_v9 = vadd.f32 %v2974_v2, %v2095_v55  ;;  %v11820_v8 = vrot.slane %v9007_v39, %v8989_v27 }
  0xde   : > { %v11821_v35 = vrot.slane %v9023_v48, %v8989_v27  ;;  %v11822_v56 = vrot.slane %v9005_v38, %v8975_v19  ;;  %v11823_v50 = vrot.slane %v9029_v51, %v8979_v22  ;;  %v11824_v55 = vrot.slane %v9005_v38, %v8981_v23 }
  0xdf   : > { %v1083_v53 = vmul.f32 %v11820_v8, %v9427_v5  ;;  %v11825_v13 = vrot.slane %v9029_v51, %v8985_v25  ;;  %v11826_v33 = vrot.slane %v9005_v38, %v8979_v22  ;;  %v3039_v49 = vadd.f32 %v2907_v61, %v2028_v10 }
  0xe0   : > { %v2973_v0 = vmul.f32 %v11821_v35, %v9429_v62  ;;  %v3913_v36 = vadd.f32 %v11822_v56, %v3038_v41  ;;  %v3979_v17 = vadd.f32 %v11823_v50, %v3104_v29  ;;  %v3912_v31 = vadd.f32 %v11824_v55, %v3037_v21  ;;  %v8485_v56 = vld [vmem:[%s8952_s30 + $0x11c] ss:$528 sps:$4 sm:$0xff]  }
  0xe1   : > { %v3978_v20 = vadd.f32 %v11825_v13, %v3103_v54  ;;  %v3915_v47 = vadd.f32 %v11826_v33, %v3040_v32  ;;  %v11827_v41 = vrot.slane %v9029_v51, %v8987_v26  ;;  %v2094_v29 = vadd.f32 %v1962_v15, %v1083_v53  ;;  %v8477_v15 = vld [vmem:[%s8952_s30 + $0x110] ss:$528 sps:$4 sm:$0xff]  }
  0xe2   : > { %v4045_v60 = vmax.f32 %v3913_v36, 0.0  ;;  %v4111_v2 = vmax.f32 %v3979_v17, 0.0  ;;  %v4044_v42 = vmax.f32 %v3912_v31, 0.0  ;;  %v11828_v54 = vrot.slane %v8973_v18, %v8987_v26 }
  0xe3   : > { %v3981_v1 = vadd.f32 %v11827_v41, %v3106_v9  ;;  %v4110_v52 = vmax.f32 %v3978_v20, 0.0  ;;  %v4047_v7 = vmax.f32 %v3915_v47, 0.0  ;;  %v2340_v32 = vrot.slane %v9313_v12, %v9059_v3  ;;  %v8474_v9 = vld [vmem:[%s8952_s30 + $0x8] ss:$528 sps:$4 sm:$0xff]  }
  0xe4   : > { %v1020_v46 = vmul.f32 %v11828_v54, %v9427_v5  ;;  %v4177_v37 = vpack.c.bf16 %v4045_v60, %v4045_v60  ;;  %v4243_v10 = vpack.c.bf16 %v4111_v2, %v4111_v2  ;;  %v4176_v59 = vpack.c.bf16 %v4044_v42, %v4044_v42 }
  0xe5   : > { %v4113_v11 = vmax.f32 %v3981_v1, 0.0  ;;  %v4242_v44 = vpack.c.bf16 %v4110_v52, %v4110_v52  ;;  %v3105_v61 = vadd.f32 %v2973_v0, %v2094_v29  ;;  %v11829_v58 = vrot.slane %v8993_v30, %v8987_v26  ;;  %v8482_v0 = vld [vmem:[%s8952_s30 + $0x14] ss:$528 sps:$4 sm:$0xff]   ;;  %v7958_v1 = vld [vmem:[%s8946_s11 + $0x2c2] ss:$8 sm:$0xf] }
  0xe6   : > { %v11830_v21 = vrot.slane %v9007_v39, %v9059_v3  ;;  %v11831_v53 = vrot.slane %v9023_v48, %v9059_v3  ;;  %5132 = vmatprep.mubr.bf16.mxu1 %v4177_v37  ;;  %6452 = vmatprep.mubr.bf16.mxu0 %v4243_v10  ;;  %v11832_v36 = vrot.slane %v9005_v38, %v8985_v25 }
  0xe7   : > { %v2910_v57 = vmul.f32 %v11829_v58, %v9429_v62  ;;  %v11833_v17 = vrot.slane %v8983_v24, %v8987_v26  ;;  %v11834_v31 = vrot.slane %v9013_v43, %v9059_v3  ;;  %5133 = vmatmul.mubr.bf16.vlgmr.msra.gmra.mrb[0].mxu1 %v4176_v59  ;;  %6453 = vmatmul.mubr.bf16.vlgmr.msra.gmra.mrb[0].mxu0 %v4242_v44 }
  0xe8   : > { %v1086_v8 = vmul.f32 %v11830_v21, %v9427_v5  ;;  %v2976_v35 = vmul.f32 %v11831_v53, %v9429_v62  ;;  %v3914_v50 = vadd.f32 %v11832_v36, %v3039_v49  ;;  %v4179_v20 = vpack.c.bf16 %v4047_v7, %v4047_v7  ;;  %v7959_v49 = vld [vmem:[%s8946_s11 + $0x2c2] ss:$8 sm:$0xf0]  ;;  %5141 = vmatpush1.bf16.xpose.msra.mxu1 %v8474_v9 }
  0xe9   : > { %v1899_v55 = vmul.f32 %v11833_v17, %v9489_v16  ;;  %v1965_v13 = vmul.f32 %v11834_v31, %v9489_v16  ;;  %v4245_v33 = vpack.c.bf16 %v4113_v11, %v4113_v11  ;;  %v11835_v47 = vrot.slane %v8983_v24, %v8989_v27  ;;  %6461 = vmatpush1.bf16.xpose.msra.mxu0 %v8477_v15 }
  0xea   : > { %v1593_v2 = vrot.slane %v9445_v45, %v8975_v19  ;;  %5172 = vmatprep.mubr.bf16.mxu1 %v4179_v20  ;;  %v11836_v42 = vrot.slane %v9029_v51, %v8989_v27  ;;  %v11837_v7 = vrot.slane %v8973_v18, %v8989_v27  ;;  %v11838_v54 = vrot.slane %v9013_v43, %v9061_v4 }
  0xeb   : > { %v1898_v41 = vmul.f32 %v11835_v47, %v9489_v16  ;;  %v2031_v29 = vadd.f32 %v1899_v55, %v1020_v46  ;;  %v2097_v60 = vadd.f32 %v1965_v13, %v1086_v8  ;;  %6492 = vmatprep.mubr.bf16.mxu0 %v4245_v33  ;;  %5180 = vmatprep.subr.bf16.mxu1 %v8482_v0  ;;  %v4046_v37 = vmax.f32 %v3914_v50, 0.0 }
  0xec   : > { %v3980_v52 = vadd.f32 %v11836_v42, %v3105_v61  ;;  %v1019_v11 = vmul.f32 %v11837_v7, %v9427_v5  ;;  %v1964_v46 = vmul.f32 %v11838_v54, %v9489_v16  ;;  %6500 = vmatprep.subr.bf16.mxu0 %v8485_v56  ;;  %v9621_v15 = vor.u32 %v7959_v49, %v7958_v1  ;;  %v7991_v42 = vld [vmem:[%s8946_s11 + $0x2c3] ss:$8 sm:$0xf] }
  0xed   : > { %v3042_v9 = vadd.f32 %v2910_v57, %v2031_v29  ;;  %v3108_v10 = vadd.f32 %v2976_v35, %v2097_v60  ;;  %v11839_v44 = vrot.slane %v8993_v30, %v8989_v27  ;;  %v11840_v58 = vrot.slane %v9007_v39, %v9061_v4 }
  0xee   : > { %v2030_v59 = vadd.f32 %v1898_v41, %v1019_v11  ;;  %v11841_v8 = vrot.slane %v8983_v24, %v9059_v3  ;;  %v11842_v53 = vrot.slane %v9005_v38, %v8987_v26  ;;  %v11843_v0 = vrot.slane %v9029_v51, %v9059_v3 }
  0xef   : > { %v2909_v61 = vmul.f32 %v11839_v44, %v9429_v62  ;;  %v1085_v21 = vmul.f32 %v11840_v58, %v9427_v5  ;;  %v11844_v36 = vrot.slane %v8973_v18, %v9059_v3  ;;  %v11845_v17 = vrot.slane %v9107_v28, %v8975_v19  ;;  %v8480_v44 = vld [vmem:[%s8952_s30 + $0x10] ss:$528 sps:$4 sm:$0xff]   ;;  %v8483_v58 = vld [vmem:[%s8952_s30 + $0x118] ss:$528 sps:$4 sm:$0xff]  }
  0xf0   : > { %v1901_v57 = vmul.f32 %v11841_v8, %v9489_v16  ;;  %v3917_v35 = vadd.f32 %v11842_v53, %v3042_v9  ;;  %v3983_v56 = vadd.f32 %v11843_v0, %v3108_v10  ;;  %v4112_v31 = vmax.f32 %v3980_v52, 0.0  ;;  %v7992_v10 = vld [vmem:[%s8946_s11 + $0x2c3] ss:$8 sm:$0xf0] }
  0xf1   : > { %v1022_v50 = vmul.f32 %v11844_v36, %v9427_v5  ;;  %v1967_v55 = vmul.f32 %v11845_v17, %v9489_v16  ;;  %v2096_v13 = vadd.f32 %v1964_v46, %v1085_v21  ;;  %v11846_v20 = vrot.slane %v9023_v48, %v9061_v4  ;;  %v11850_v53 = vld [vmem:[#allocation18_spill] sm:$0xff] }
  0xf2   : > { %v11847_v47 = vrot.slane %v9079_v14, %v8975_v19  ;;  %v11848_v49 = vrot.slane %v8993_v30, %v9059_v3  ;;  %v3335_v60 = vrot.slane %v9331_v6, %v8989_v27  ;;  %v4049_v7 = vmax.f32 %v3917_v35, 0.0 }
  0xf3   : > { %v2975_v33 = vmul.f32 %v11846_v20, %v9429_v62  ;;  %v2033_v1 = vadd.f32 %v1901_v57, %v1022_v50  ;;  %v4115_v11 = vmax.f32 %v3983_v56, 0.0  ;;  %v11849_v46 = vrot.slane %v9115_v34, %v8975_v19  ;;  %v11851_v50 = vld [vmem:[#allocation17_spill] sm:$0xff]  ;;  %v8491_v20 = vld [vmem:[%s8952_s30 + $0x124] ss:$528 sps:$4 sm:$0xff]  }
  0xf4   : > { %v1088_v41 = vmul.f32 %v11847_v47, %v9427_v5  ;;  %v2912_v29 = vmul.f32 %v11848_v49, %v9429_v62  ;;  %v3041_v21 = vadd.f32 %v2909_v61, %v2030_v59  ;;  %v4178_v0 = vpack.c.bf16 %v4046_v37, %v4046_v37  ;;  %v8494_v57 = vld [vmem:[%s8952_s30 + $0x24] ss:$528 sps:$4 sm:$0xff]  }
  0xf5   : > { %v2978_v9 = vmul.f32 %v11849_v46, %v9429_v62  ;;  %v4244_v56 = vpack.c.bf16 %v4112_v31, %v4112_v31  ;;  %v3107_v36 = vadd.f32 %v2975_v33, %v2096_v13  ;;  %v1325_v17 = vrot.slane %v11851_v50, %v9061_v4 }
  0xf6   : > { %v2099_v54 = vadd.f32 %v1967_v55, %v1088_v41  ;;  %v8488_v55 = vld [vmem:[%s8952_s30 + $0x1c] ss:$528 sps:$4 sm:$0xff]   ;;  %v3044_v47 = vadd.f32 %v2912_v29, %v2033_v1  ;;  %v11852_v59 = vrot.slane %v8983_v24, %v9061_v4  ;;  %v9689_v49 = vor.u32 %v7992_v10, %v7991_v42  ;;  %5173 = vmatmul.mubr.bf16.vlgmr.msra.gmra.mrb[0].mxu1 %v4178_v0  ;;  %v11858_v10 = vld [vmem:[#allocation10_spill] sm:$0xff] }
  0xf7   : > { %6493 = vmatmul.mubr.bf16.vlgmr.msra.gmra.mrb[0].mxu0 %v4244_v56  ;;  %v4181_v37 = vpack.c.bf16 %v4049_v7, %v4049_v7  ;;  %v4247_v31 = vpack.c.bf16 %v4115_v11, %v4115_v11  ;;  %5181 = vmatpush1.bf16.xpose.msra.mxu1 %v8480_v44  ;;  %v11853_v33 = vrot.slane %v9005_v38, %v8989_v27 }
  0xf8   : > { %v1900_v61 = vmul.f32 %v11852_v59, %v9489_v16  ;;  %v3110_v13 = vadd.f32 %v2978_v9, %v2099_v54  ;;  %6501 = vmatpush1.bf16.xpose.msra.mxu0 %v8483_v58  ;;  %v11854_v24 = vrot.slane %v8973_v18, %v9061_v4  ;;  %v11855_v42 = vrot.slane %v9107_v28, %v8981_v23  ;;  %v7909_v58 = vld [vmem:[%s8946_s11 + $0xc1] ss:$8 sm:$0xf] }
  0xf9   : > { %v3916_v1 = vadd.f32 %v11853_v33, %v3041_v21  ;;  %5212 = vmatprep.mubr.bf16.mxu1 %v4181_v37  ;;  %6532 = vmatprep.mubr.bf16.mxu0 %v4247_v31  ;;  %v11856_v7 = vrot.slane %v9029_v51, %v9061_v4  ;;  %v11857_v54 = vrot.slane %v8993_v30, %v9061_v4  ;;  %v7910_v21 = vld [vmem:[%s8946_s11 + $0xc1] ss:$8 sm:$0xf0] }
  0xfa   : > { %v1021_v29 = vmul.f32 %v11854_v24, %v9427_v5  ;;  %v1966_v46 = vmul.f32 %v11855_v42, %v9489_v16  ;;  %v11859_v18 = vrot.slane %v11858_v10, %v8975_v19  ;;  %5220 = vmatprep.subr.bf16.mxu1 %v8488_v55  ;;  %6540 = vmatprep.subr.bf16.mxu0 %v8491_v20  ;;  %v11862_v37 = vld [vmem:[#allocation9_spill] sm:$0xff]  ;;  %v11864_v24 = vld [vmem:[#allocation8_spill] sm:$0xff] }
  0xfb   : > { %v3982_v11 = vadd.f32 %v11856_v7, %v3107_v36  ;;  %v2911_v9 = vmul.f32 %v11857_v54, %v9429_v62  ;;  %v11860_v0 = vrot.slane %v9005_v38, %v9059_v3  ;;  %v11861_v30 = vrot.slane %v9079_v14, %v8981_v23 }
  0xfc   : > { %v1903_v44 = vmul.f32 %v11859_v18, %v9489_v16  ;;  %v2032_v36 = vadd.f32 %v1900_v61, %v1021_v29  ;;  %v11863_v31 = vrot.slane %v11862_v37, %v8975_v19  ;;  %v11865_v55 = vrot.slane %v11864_v24, %v8975_v19 }
  0xfd   : > { %v3919_v56 = vadd.f32 %v11860_v0, %v3044_v47  ;;  %v1087_v59 = vmul.f32 %v11861_v30, %v9427_v5  ;;  %v11866_v42 = vrot.slane %v9107_v28, %v8979_v22  ;;  %v4048_v29 = vmax.f32 %v3916_v1, 0.0 }
  0xfe   : > { %v3985_v33 = vadd.f32 %v11863_v31, %v3110_v13  ;;  %v1024_v20 = vmul.f32 %v11865_v55, %v9427_v5  ;;  %v11867_v13 = vrot.slane %v9115_v34, %v8981_v23  ;;  %v9739_v18 = vor.u32 %v7910_v21, %v7909_v58  ;;  %v11868_v31 = vld [vmem:[#allocation11_spill] sm:$0xff] }
  0xff   : > { %v1969_v47 = vmul.f32 %v11866_v42, %v9489_v16  ;;  %v2098_v7 = vadd.f32 %v1966_v46, %v1087_v59  ;;  %v4114_v0 = vmax.f32 %v3982_v11, 0.0  ;;  %v11869_v55 = vrot.slane %v11868_v31, %v8975_v19  ;;  %v7942_v59 = vld [vmem:[%s8946_s11 + $0xc2] ss:$8 sm:$0xf] }
 0x100   : > { %v2977_v54 = vmul.f32 %v11867_v13, %v9429_v62  ;;  %v2035_v30 = vadd.f32 %v1903_v44, %v1024_v20  ;;  %v11870_v1 = vrot.slane %v9079_v14, %v8979_v22  ;;  %v4051_v61 = vmax.f32 %v3919_v56, 0.0  ;;  %v7943_v44 = vld [vmem:[%s8946_s11 + $0xc2] ss:$8 sm:$0xf0]  ;;  %v8497_v56 = vld [vmem:[%s8952_s30 + $0x12c] ss:$528 sps:$4 sm:$0xff]  }
 0x101   : > { %v2914_v42 = vmul.f32 %v11869_v55, %v9429_v62  ;;  %v3043_v35 = vadd.f32 %v2911_v9, %v2032_v36  ;;  %v4117_v21 = vmax.f32 %v3985_v33, 0.0  ;;  %v11871_v13 = vrot.slane %v9115_v34, %v8979_v22  ;;  %v8486_v9 = vld [vmem:[%s8952_s30 + $0x18] ss:$528 sps:$4 sm:$0xff]   ;;  %v8489_v36 = vld [vmem:[%s8952_s30 + $0x120] ss:$528 sps:$4 sm:$0xff]  }
 0x102   : > { %v1090_v46 = vmul.f32 %v11870_v1, %v9427_v5  ;;  %v3109_v1 = vadd.f32 %v2977_v54, %v2098_v7  ;;  %v9769_v41 = vor.u32 %v7943_v44, %v7942_v59  ;;  %v11872_v7 = vrot.slane %v9005_v38, %v9061_v4 }
 0x103   : > { %v2980_v55 = vmul.f32 %v11871_v13, %v9429_v62  ;;  %v3046_v58 = vadd.f32 %v2914_v42, %v2035_v30  ;;  %v4183_v13 = vpack.c.bf16 %v4051_v61, %v4051_v61  ;;  %v11873_v52 = vrot.slane %v11858_v10, %v8981_v23 }
 0x104   : > { %v2101_v20 = vadd.f32 %v1969_v47, %v1090_v46  ;;  %v4180_v47 = vpack.c.bf16 %v4048_v29, %v4048_v29  ;;  %v4246_v46 = vpack.c.bf16 %v4114_v0, %v4114_v0  ;;  %v3918_v54 = vadd.f32 %v11872_v7, %v3043_v35 }
 0x105   : > { %v1902_v11 = vmul.f32 %v11873_v52, %v9489_v16  ;;  %v4249_v29 = vpack.c.bf16 %v4117_v21, %v4117_v21  ;;  %v11874_v61 = vrot.slane %v9107_v28, %v8985_v25  ;;  %v11875_v38 = vrot.slane %v11862_v37, %v8981_v23  ;;  %v11878_v21 = vld [vmem:[#allocation12_spill] sm:$0xff] }
 0x106   : > { %5213 = vmatmul.mubr.bf16.vlgmr.msra.gmra.mrb[0].mxu1 %v4180_v47  ;;  %6533 = vmatmul.mubr.bf16.vlgmr.msra.gmra.mrb[0].mxu0 %v4246_v46  ;;  %v3112_v0 = vadd.f32 %v2980_v55, %v2101_v20  ;;  %v11876_v35 = vrot.slane %v11864_v24, %v8981_v23  ;;  %v11877_v59 = vrot.slane %v11858_v10, %v8979_v22 }
 0x107   : > { %v1968_v30 = vmul.f32 %v11874_v61, %v9489_v16  ;;  %5221 = vmatpush1.bf16.xpose.msra.mxu1 %v8486_v9  ;;  %6541 = vmatpush1.bf16.xpose.msra.mxu0 %v8489_v36  ;;  %v3984_v52 = vadd.f32 %v11875_v38, %v3109_v1  ;;  %v11879_v20 = vrot.slane %v11878_v21, %v8975_v19  ;;  %v7975_v61 = vld [vmem:[%s8946_s11 + $0xc3] ss:$8 sm:$0xf] }
 0x108   : > { %v1023_v42 = vmul.f32 %v11876_v35, %v9427_v5  ;;  %v1905_v44 = vmul.f32 %v11877_v59, %v9489_v16  ;;  %5252 = vmatprep.mubr.bf16.mxu1 %v4183_v13  ;;  %6572 = vmatprep.mubr.bf16.mxu0 %v4249_v29  ;;  %v11880_v9 = vrot.slane %v11868_v31, %v8981_v23  ;;  %v7976_v38 = vld [vmem:[%s8946_s11 + $0xc3] ss:$8 sm:$0xf0] }
 0x109   : > { %v3921_v55 = vadd.f32 %v11879_v20, %v3046_v58  ;;  %v11881_v1 = vrot.slane %v9079_v14, %v8985_v25  ;;  %5260 = vmatprep.subr.bf16.mxu1 %v8494_v57  ;;  %6580 = vmatprep.subr.bf16.mxu0 %v8497_v56  ;;  %v11882_v13 = vrot.slane %v11864_v24, %v8979_v22 }
 0x10a   : > { %v2913_v36 = vmul.f32 %v11880_v9, %v9429_v62  ;;  %v2034_v46 = vadd.f32 %v1902_v11, %v1023_v42  ;;  %v11883_v58 = vrot.slane %v9107_v28, %v8987_v26  ;;  %v11884_v35 = vrot.slane %v11862_v37, %v8979_v22 }
 0x10b   : > { %v1089_v47 = vmul.f32 %v11881_v1, %v9427_v5  ;;  %v1026_v7 = vmul.f32 %v11882_v13, %v9427_v5  ;;  %v11885_v57 = vrot.slane %v9115_v34, %v8985_v25  ;;  %v11886_v9 = vrot.slane %v11868_v31, %v8979_v22 }
 0x10c   : > { %v1971_v29 = vmul.f32 %v11883_v58, %v9489_v16  ;;  %v3987_v59 = vadd.f32 %v11884_v35, %v3112_v0  ;;  %v11887_v0 = vrot.slane %v9079_v14, %v8987_v26  ;;  %v4050_v13 = vmax.f32 %v3918_v54, 0.0 }
 0x10d   : > { %v2100_v20 = vadd.f32 %v1968_v30, %v1089_v47  ;;  %v2979_v11 = vmul.f32 %v11885_v57, %v9429_v62  ;;  %v2037_v42 = vadd.f32 %v1905_v44, %v1026_v7  ;;  %v2916_v1 = vmul.f32 %v11886_v9, %v9429_v62 }
 0x10e   : > { %v1092_v30 = vmul.f32 %v11887_v0, %v9427_v5  ;;  %v4116_v58 = vmax.f32 %v3984_v52, 0.0  ;;  %v9837_v35 = vor.u32 %v7976_v38, %v7975_v61  ;;  %v4053_v7 = vmax.f32 %v3921_v55, 0.0  ;;  %v8492_v61 = vld [vmem:[%s8952_s30 + $0x20] ss:$528 sps:$4 sm:$0xff]   ;;  %v8495_v38 = vld [vmem:[%s8952_s30 + $0x128] ss:$528 sps:$4 sm:$0xff]  }
 0x10f   : > { %v3045_v57 = vadd.f32 %v2913_v36, %v2034_v46  ;;  %v11888_v9 = vrot.slane %v9115_v34, %v8987_v26  ;;  %v4119_v0 = vmax.f32 %v3987_v59, 0.0  ;;  %v3111_v8 = vadd.f32 %v2979_v11, %v2100_v20  ;;  %v8500_v52 = vld [vmem:[%s8952_s30 + $0x2c] ss:$528 sps:$4 sm:$0xff]  }
 0x110   : > { %v2103_v33 = vadd.f32 %v1971_v29, %v1092_v30  ;;  %v3048_v55 = vadd.f32 %v2916_v1, %v2037_v42  ;;  %v4182_v59 = vpack.c.bf16 %v4050_v13, %v4050_v13  ;;  %v4248_v20 = vpack.c.bf16 %v4116_v58, %v4116_v58  ;;  %v8503_v42 = vld [vmem:[%s8952_s30 + $0x134] ss:$528 sps:$4 sm:$0xff]  }
 0x111   : > { %v2982_v56 = vmul.f32 %v11888_v9, %v9429_v62  ;;  %v4185_v9 = vpack.c.bf16 %v4053_v7, %v4053_v7  ;;  %v11889_v1 = vrot.slane %v11878_v21, %v8981_v23  ;;  %v11890_v47 = vrot.slane %v11858_v10, %v8985_v25 }
 0x112   : > { %5253 = vmatmul.mubr.bf16.vlgmr.msra.gmra.mrb[0].mxu1 %v4182_v59  ;;  %6573 = vmatmul.mubr.bf16.vlgmr.msra.gmra.mrb[0].mxu0 %v4248_v20  ;;  %v4251_v58 = vpack.c.bf16 %v4119_v0, %v4119_v0  ;;  %v11891_v11 = vrot.slane %v11862_v37, %v8985_v25  ;;  %v11892_v7 = vrot.slane %v9107_v28, %v8989_v27 }
 0x113   : > { %v3920_v54 = vadd.f32 %v11889_v1, %v3045_v57  ;;  %v3114_v36 = vadd.f32 %v2982_v56, %v2103_v33  ;;  %v1904_v13 = vmul.f32 %v11890_v47, %v9489_v16  ;;  %5261 = vmatpush1.bf16.xpose.msra.mxu1 %v8492_v61  ;;  %6581 = vmatpush1.bf16.xpose.msra.mxu0 %v8495_v38 }
 0x114   : > { %v3986_v30 = vadd.f32 %v11891_v11, %v3111_v8  ;;  %v1970_v29 = vmul.f32 %v11892_v7, %v9489_v16  ;;  %v11893_v33 = vrot.slane %v11878_v21, %v8979_v22  ;;  %v11894_v47 = vrot.slane %v11864_v24, %v8985_v25  ;;  %5292 = vmatprep.mubr.bf16.mxu1 %v4185_v9 }
 0x115   : > { %v11895_v8 = vrot.slane %v11858_v10, %v8987_v26  ;;  %6612 = vmatprep.mubr.bf16.mxu0 %v4251_v58  ;;  %v11896_v61 = vrot.slane %v11868_v31, %v8985_v25  ;;  %v11898_v20 = vrot.slane %v9107_v28, %v9059_v3  ;;  %5300 = vmatprep.subr.bf16.mxu1 %v8500_v52 }
 0x116   : > { %v3923_v56 = vadd.f32 %v11893_v33, %v3048_v55  ;;  %v1025_v57 = vmul.f32 %v11894_v47, %v9427_v5  ;;  %v11897_v55 = vrot.slane %v9079_v14, %v8989_v27  ;;  %6620 = vmatprep.subr.bf16.mxu0 %v8503_v42  ;;  %v11899_v9 = vrot.slane %v11862_v37, %v8987_v26 }
 0x117   : > { %v1907_v0 = vmul.f32 %v11895_v8, %v9489_v16  ;;  %v2915_v38 = vmul.f32 %v11896_v61, %v9429_v62  ;;  %v1973_v11 = vmul.f32 %v11898_v20, %v9489_v16  ;;  %v11900_v7 = vrot.slane %v11864_v24, %v8987_v26 }
 0x118   : > { %v1091_v59 = vmul.f32 %v11897_v55, %v9427_v5  ;;  %v3989_v1 = vadd.f32 %v11899_v9, %v3114_v36  ;;  %v2036_v58 = vadd.f32 %v1904_v13, %v1025_v57  ;;  %v11901_v8 = vrot.slane %v9115_v34, %v8989_v27 }
 0x119   : > { %v1028_v33 = vmul.f32 %v11900_v7, %v9427_v5  ;;  %v11902_v52 = vrot.slane %v9079_v14, %v9059_v3  ;;  %v11903_v57 = vrot.slane %v11868_v31, %v8987_v26  ;;  %v4052_v20 = vmax.f32 %v3920_v54, 0.0 }
 0x11a   : > { %v2102_v47 = vadd.f32 %v1970_v29, %v1091_v59  ;;  %v2981_v61 = vmul.f32 %v11901_v8, %v9429_v62  ;;  %v4118_v9 = vmax.f32 %v3986_v30, 0.0  ;;  %v4055_v8 = vmax.f32 %v3923_v56, 0.0  ;;  %v8498_v56 = vld [vmem:[%s8952_s30 + $0x28] ss:$528 sps:$4 sm:$0xff]  }
 0x11b   : > { %v1094_v42 = vmul.f32 %v11902_v52, %v9427_v5  ;;  %v2039_v13 = vadd.f32 %v1907_v0, %v1028_v33  ;;  %v2918_v29 = vmul.f32 %v11903_v57, %v9429_v62  ;;  %v11904_v0 = vrot.slane %v9115_v34, %v9059_v3 }
 0x11c   : > { %v4121_v52 = vmax.f32 %v3989_v1, 0.0  ;;  %v3047_v36 = vadd.f32 %v2915_v38, %v2036_v58  ;;  %v3113_v46 = vadd.f32 %v2981_v61, %v2102_v47  ;;  %v11905_v55 = vrot.slane %v11858_v10, %v8989_v27  ;;  %v8501_v1 = vld [vmem:[%s8952_s30 + $0x130] ss:$528 sps:$4 sm:$0xff]  }
 0x11d   : > { %v2105_v7 = vadd.f32 %v1973_v11, %v1094_v42  ;;  %v2984_v33 = vmul.f32 %v11904_v0, %v9429_v62  ;;  %v3050_v38 = vadd.f32 %v2918_v29, %v2039_v13  ;;  %v4184_v42 = vpack.c.bf16 %v4052_v20, %v4052_v20  ;;  %v8506_v13 = vld [vmem:[%s8952_s30 + $0x34] ss:$528 sps:$4 sm:$0xff]   ;;  %v8509_v29 = vld [vmem:[%s8952_s30 + $0x13c] ss:$528 sps:$4 sm:$0xff]  }
 0x11e   : > { %v1906_v54 = vmul.f32 %v11905_v55, %v9489_v16  ;;  %v4250_v55 = vpack.c.bf16 %v4118_v9, %v4118_v9  ;;  %v11906_v57 = vrot.slane %v11864_v24, %v8989_v27  ;;  %v4187_v59 = vpack.c.bf16 %v4055_v8, %v4055_v8 }
 0x11f   : > { %v3116_v0 = vadd.f32 %v2984_v33, %v2105_v7  ;;  %v4253_v30 = vpack.c.bf16 %v4121_v52, %v4121_v52  ;;  %v11907_v58 = vrot.slane %v11878_v21, %v8985_v25  ;;  %v11908_v47 = vrot.slane %v9107_v28, %v9061_v4  ;;  %5293 = vmatmul.mubr.bf16.vlgmr.msra.gmra.mrb[0].mxu1 %v4184_v42 }
 0x120   : > { %v1027_v11 = vmul.f32 %v11906_v57, %v9427_v5  ;;  %6613 = vmatmul.mubr.bf16.vlgmr.msra.gmra.mrb[0].mxu0 %v4250_v55  ;;  %v11909_v9 = vrot.slane %v11862_v37, %v8989_v27  ;;  %v11910_v8 = vrot.slane %v11858_v10, %v9059_v3  ;;  %5301 = vmatpush1.bf16.xpose.msra.mxu1 %v8498_v56 }
 0x121   : > { %v3922_v44 = vadd.f32 %v11907_v58, %v3047_v36  ;;  %v1972_v20 = vmul.f32 %v11908_v47, %v9489_v16  ;;  %6621 = vmatpush1.bf16.xpose.msra.mxu0 %v8501_v1  ;;  %v11911_v36 = vrot.slane %v11878_v21, %v8987_v26  ;;  %v11912_v28 = vrot.slane %v11868_v31, %v8989_v27  ;;  %v11916_v47 = vld [vmem:[#allocation14_spill] sm:$0xff] }
 0x122   : > { %v3988_v7 = vadd.f32 %v11909_v9, %v3113_v46  ;;  %v2038_v33 = vadd.f32 %v1906_v54, %v1027_v11  ;;  %v1909_v52 = vmul.f32 %v11910_v8, %v9489_v16  ;;  %v11913_v46 = vrot.slane %v9079_v14, %v9061_v4  ;;  %5332 = vmatprep.mubr.bf16.mxu1 %v4187_v59 }
 0x123   : > { %v3925_v57 = vadd.f32 %v11911_v36, %v3050_v38  ;;  %v2917_v58 = vmul.f32 %v11912_v28, %v9429_v62  ;;  %6652 = vmatprep.mubr.bf16.mxu0 %v4253_v30  ;;  %v11914_v11 = vrot.slane %v11862_v37, %v9059_v3  ;;  %v11915_v1 = vrot.slane %v11864_v24, %v9059_v3  ;;  %v11920_v28 = vld [vmem:[#allocation13_spill] sm:$0xff] }
 0x124   : > { %v1093_v54 = vmul.f32 %v11913_v46, %v9427_v5  ;;  %v11917_v42 = vrot.slane %v11916_v47, %v8975_v19  ;;  %5340 = vmatprep.subr.bf16.mxu1 %v8506_v13  ;;  %6660 = vmatprep.subr.bf16.mxu0 %v8509_v29  ;;  %v11918_v59 = vrot.slane %v9115_v34, %v9061_v4  ;;  %v4054_v46 = vmax.f32 %v3922_v44, 0.0 }
 0x125   : > { %v3991_v56 = vadd.f32 %v11914_v11, %v3116_v0  ;;  %v1030_v38 = vmul.f32 %v11915_v1, %v9427_v5  ;;  %v11919_v8 = vrot.slane %v11868_v31, %v9059_v3  ;;  %v11921_v13 = vrot.slane %v11920_v28, %v8975_v19 }
 0x126   : > { %v1975_v55 = vmul.f32 %v11917_v42, %v9489_v16  ;;  %v2104_v14 = vadd.f32 %v1972_v20, %v1093_v54  ;;  %v2983_v30 = vmul.f32 %v11918_v59, %v9429_v62  ;;  %v4120_v34 = vmax.f32 %v3988_v7, 0.0  ;;  %v11922_v42 = vld [vmem:[#allocation16_spill] sm:$0xff] }
 0x127   : > { %v2041_v9 = vadd.f32 %v1909_v52, %v1030_v38  ;;  %v2920_v36 = vmul.f32 %v11919_v8, %v9429_v62  ;;  %v1096_v29 = vmul.f32 %v11921_v13, %v9427_v5  ;;  %v3049_v54 = vadd.f32 %v2917_v58, %v2038_v33  ;;  %v8512_v52 = vld [vmem:[%s8952_s30 + $0x3c] ss:$528 sps:$4 sm:$0xff]  }
 0x128   : > { %v4057_v11 = vmax.f32 %v3925_v57, 0.0  ;;  %v4123_v1 = vmax.f32 %v3991_v56, 0.0  ;;  %v11923_v59 = vrot.slane %v11922_v42, %v8975_v19  ;;  %v3115_v13 = vadd.f32 %v2983_v30, %v2104_v14  ;;  %v8507_v14 = vld [vmem:[%s8952_s30 + $0x138] ss:$528 sps:$4 sm:$0xff]  }
 0x129   : > { %v2107_v38 = vadd.f32 %v1975_v55, %v1096_v29  ;;  %v3052_v33 = vadd.f32 %v2920_v36, %v2041_v9  ;;  %v8504_v55 = vld [vmem:[%s8952_s30 + $0x30] ss:$528 sps:$4 sm:$0xff]   ;;  %v4186_v30 = vpack.c.bf16 %v4054_v46, %v4054_v46  ;;  %v4252_v29 = vpack.c.bf16 %v4120_v34, %v4120_v34  ;;  %v8515_v46 = vld [vmem:[%s8952_s30 + $0x144] ss:$528 sps:$4 sm:$0xff]  }
 0x12a   : > { %v2986_v8 = vmul.f32 %v11923_v59, %v9429_v62  ;;  %v11924_v59 = vrot.slane %v11878_v21, %v8989_v27  ;;  %v11925_v9 = vrot.slane %v11858_v10, %v9061_v4  ;;  %v4189_v7 = vpack.c.bf16 %v4057_v11, %v4057_v11 }
 0x12b   : > { %v4255_v44 = vpack.c.bf16 %v4123_v1, %v4123_v1  ;;  %v11926_v56 = vrot.slane %v11916_v47, %v8981_v23  ;;  %v11927_v34 = vrot.slane %v11862_v37, %v9061_v4  ;;  %v11929_v11 = vrot.slane %v11868_v31, %v9061_v4  ;;  %5333 = vmatmul.mubr.bf16.vlgmr.msra.gmra.mrb[0].mxu1 %v4186_v30 }
 0x12c   : > { %v3924_v20 = vadd.f32 %v11924_v59, %v3049_v54  ;;  %v1908_v36 = vmul.f32 %v11925_v9, %v9489_v16  ;;  %v3118_v57 = vadd.f32 %v2986_v8, %v2107_v38  ;;  %v11928_v54 = vrot.slane %v11864_v24, %v9061_v4  ;;  %6653 = vmatmul.mubr.bf16.vlgmr.msra.gmra.mrb[0].mxu0 %v4252_v29 }
 0x12d   : > { %v1974_v58 = vmul.f32 %v11926_v56, %v9489_v16  ;;  %v3990_v0 = vadd.f32 %v11927_v34, %v3115_v13  ;;  %v2919_v1 = vmul.f32 %v11929_v11, %v9429_v62  ;;  %v11930_v38 = vrot.slane %v11851_v50, %v8975_v19  ;;  %5341 = vmatpush1.bf16.xpose.msra.mxu1 %v8504_v55 }
 0x12e   : > { %v1029_v10 = vmul.f32 %v11928_v54, %v9427_v5  ;;  %v11931_v37 = vrot.slane %v11878_v21, %v9059_v3  ;;  %v11932_v24 = vrot.slane %v11920_v28, %v8981_v23  ;;  %v11933_v31 = vrot.slane %v11916_v47, %v8979_v22  ;;  %6661 = vmatpush1.bf16.xpose.msra.mxu0 %v8507_v14 }
 0x12f   : > { %v1911_v8 = vmul.f32 %v11930_v38, %v9489_v16  ;;  %v11934_v30 = vrot.slane %v11922_v42, %v8981_v23  ;;  %5372 = vmatprep.mubr.bf16.mxu1 %v4189_v7  ;;  %6692 = vmatprep.mubr.bf16.mxu0 %v4255_v44  ;;  %v11937_v11 = vrot.slane %v9303_v40, %v8975_v19 }
 0x130   : > { %v3927_v13 = vadd.f32 %v11931_v37, %v3052_v33  ;;  %v1095_v56 = vmul.f32 %v11932_v24, %v9427_v5  ;;  %v1977_v59 = vmul.f32 %v11933_v31, %v9489_v16  ;;  %v2040_v9 = vadd.f32 %v1908_v36, %v1029_v10  ;;  %v11935_v33 = vld [vmem:[#allocation15_spill] sm:$0xff]  ;;  %5380 = vmatprep.subr.bf16.mxu1 %v8512_v52 }
 0x131   : > { %v2985_v29 = vmul.f32 %v11934_v30, %v9429_v62  ;;  %v11936_v34 = vrot.slane %v11935_v33, %v8975_v19  ;;  %v3993_v38 = vadd.f32 %v11937_v11, %v3118_v57  ;;  %v11938_v14 = vrot.slane %v11920_v28, %v8979_v22  ;;  %6700 = vmatprep.subr.bf16.mxu0 %v8515_v46  ;;  %v7894_v46 = vld [vmem:[%s8946_s11 + $0x300] ss:$8 sm:$0xf] }
 0x132   : > { %v2106_v55 = vadd.f32 %v1974_v58, %v1095_v56  ;;  %v11939_v37 = vrot.slane %v9313_v12, %v8975_v19  ;;  %v4056_v24 = vmax.f32 %v3924_v20, 0.0  ;;  %v11940_v58 = vrot.slane %v11922_v42, %v8979_v22 }
 0x133   : > { %v1032_v54 = vmul.f32 %v11936_v34, %v9427_v5  ;;  %v1098_v36 = vmul.f32 %v11938_v14, %v9427_v5  ;;  %v4059_v31 = vmax.f32 %v3927_v13, 0.0  ;;  %v3051_v30 = vadd.f32 %v2919_v1, %v2040_v9 }
 0x134   : > { %v2922_v7 = vmul.f32 %v11939_v37, %v9429_v62  ;;  %v2988_v56 = vmul.f32 %v11940_v58, %v9429_v62  ;;  %v4125_v20 = vmax.f32 %v3993_v38, 0.0  ;;  %v4188_v9 = vpack.c.bf16 %v4056_v24, %v4056_v24 }
 0x135   : > { %v2043_v10 = vadd.f32 %v1911_v8, %v1032_v54  ;;  %v2109_v57 = vadd.f32 %v1977_v59, %v1098_v36  ;;  %v4122_v8 = vmax.f32 %v3990_v0, 0.0  ;;  %v7895_v54 = vld [vmem:[%s8946_s11 + $0x300] ss:$8 sm:$0xf0]  ;;  %v3117_v59 = vadd.f32 %v2985_v29, %v2106_v55 }
 0x136   : > { %v11941_v38 = vrot.slane %v11851_v50, %v8981_v23  ;;  %v10109_v37 = vor.u32 %v7895_v54, %v7894_v46  ;;  %v4191_v0 = vpack.c.bf16 %v4059_v31, %v4059_v31  ;;  %v11942_v11 = vrot.slane %v11878_v21, %v9061_v4  ;;  %v8521_v54 = vld [vmem:[%s8952_s30 + $0x14c] ss:$528 sps:$4 sm:$0xff]  }
 0x137   : > { %v3054_v36 = vadd.f32 %v2922_v7, %v2043_v10  ;;  %v3120_v29 = vadd.f32 %v2988_v56, %v2109_v57  ;;  %v8510_v10 = vld [vmem:[%s8952_s30 + $0x38] ss:$528 sps:$4 sm:$0xff]   ;;  %v8513_v7 = vld [vmem:[%s8952_s30 + $0x140] ss:$528 sps:$4 sm:$0xff]   ;;  %v4254_v58 = vpack.c.bf16 %v4122_v8, %v4122_v8  ;;  %v11943_v24 = vrot.slane %v11916_v47, %v8985_v25  ;;  %5373 = vmatmul.mubr.bf16.vlgmr.msra.gmra.mrb[0].mxu1 %v4188_v9 }
 0x138   : > { %v1910_v55 = vmul.f32 %v11941_v38, %v9489_v16  ;;  %v3926_v34 = vadd.f32 %v11942_v11, %v3051_v30  ;;  %v4257_v56 = vpack.c.bf16 %v4125_v20, %v4125_v20  ;;  %v11944_v13 = vrot.slane %v9303_v40, %v8981_v23  ;;  %v8518_v30 = vld [vmem:[%s8952_s30 + $0x44] ss:$528 sps:$4 sm:$0xff]   ;;  %5381 = vmatpush1.bf16.xpose.msra.mxu1 %v8510_v10 }
 0x139   : > { %v1976_v57 = vmul.f32 %v11943_v24, %v9489_v16  ;;  %v11945_v46 = vrot.slane %v11935_v33, %v8981_v23  ;;  %v11946_v21 = vrot.slane %v11851_v50, %v8979_v22  ;;  %v11947_v11 = vrot.slane %v9331_v6, %v8975_v19  ;;  %6693 = vmatmul.mubr.bf16.vlgmr.msra.gmra.mrb[0].mxu0 %v4254_v58 }
 0x13a   : > { %v3992_v38 = vadd.f32 %v11944_v13, %v3117_v59  ;;  %v11948_v59 = vrot.slane %v9313_v12, %v8981_v23  ;;  %v11949_v24 = vrot.slane %v11920_v28, %v8985_v25  ;;  %6701 = vmatpush1.bf16.xpose.msra.mxu0 %v8513_v7  ;;  %v11953_v44 = vrot.slane %v11922_v42, %v8985_v25  ;;  %v8524_v7 = vld [vmem:[%s8952_s30 + $0x4c] ss:$528 sps:$4 sm:$0xff]  }
 0x13b   : > { %v1031_v8 = vmul.f32 %v11945_v46, %v9427_v5  ;;  %v1913_v31 = vmul.f32 %v11946_v21, %v9489_v16  ;;  %v3929_v20 = vadd.f32 %v11947_v11, %v3054_v36  ;;  %v11950_v21 = vrot.slane %v11916_v47, %v8987_v26  ;;  %5412 = vmatprep.mubr.bf16.mxu1 %v4191_v0 }
 0x13c   : > { %v2921_v13 = vmul.f32 %v11948_v59, %v9429_v62  ;;  %v1097_v46 = vmul.f32 %v11949_v24, %v9427_v5  ;;  %v11951_v36 = vrot.slane %v9303_v40, %v8979_v22  ;;  %v11952_v59 = vrot.slane %v11935_v33, %v8979_v22  ;;  %6732 = vmatprep.mubr.bf16.mxu0 %v4257_v56 }
 0x13d   : > { %v1979_v52 = vmul.f32 %v11950_v21, %v9489_v16  ;;  %v2042_v14 = vadd.f32 %v1910_v55, %v1031_v8  ;;  %v2987_v21 = vmul.f32 %v11953_v44, %v9429_v62  ;;  %v11954_v9 = vrot.slane %v11920_v28, %v8987_v26  ;;  %5420 = vmatprep.subr.bf16.mxu1 %v8518_v30 }
 0x13e   : > { %v3995_v11 = vadd.f32 %v11951_v36, %v3120_v29  ;;  %v1034_v1 = vmul.f32 %v11952_v59, %v9427_v5  ;;  %v2108_v24 = vadd.f32 %v1976_v57, %v1097_v46  ;;  %v11955_v55 = vrot.slane %v9313_v12, %v8979_v22  ;;  %6740 = vmatprep.subr.bf16.mxu0 %v8521_v54 }
 0x13f   : > { %v1100_v58 = vmul.f32 %v11954_v9, %v9427_v5  ;;  %v4058_v57 = vmax.f32 %v3926_v34, 0.0  ;;  %v4124_v44 = vmax.f32 %v3992_v38, 0.0  ;;  %v11956_v46 = vrot.slane %v11922_v42, %v8987_v26 }
 0x140   : > { %v2045_v29 = vadd.f32 %v1913_v31, %v1034_v1  ;;  %v2924_v10 = vmul.f32 %v11955_v55, %v9429_v62  ;;  %v4061_v56 = vmax.f32 %v3929_v20, 0.0  ;;  %v4127_v1 = vmax.f32 %v3995_v11, 0.0 }
 0x141   : > { %v2111_v8 = vadd.f32 %v1979_v52, %v1100_v58  ;;  %v2990_v0 = vmul.f32 %v11956_v46, %v9429_v62  ;;  %v3053_v31 = vadd.f32 %v2921_v13, %v2042_v14  ;;  %v3119_v59 = vadd.f32 %v2987_v21, %v2108_v24  ;;  %v8527_v13 = vld [vmem:[%s8952_s30 + $0x154] ss:$528 sps:$4 sm:$0xff]  }
 0x142   : > { %v3056_v38 = vadd.f32 %v2924_v10, %v2045_v29  ;;  %v11957_v14 = vrot.slane %v11851_v50, %v8985_v25  ;;  %v4190_v11 = vpack.c.bf16 %v4058_v57, %v4058_v57  ;;  %v4256_v24 = vpack.c.bf16 %v4124_v44, %v4124_v44  ;;  %v8516_v44 = vld [vmem:[%s8952_s30 + $0x40] ss:$528 sps:$4 sm:$0xff]  }
 0x143   : > { %v3122_v21 = vadd.f32 %v2990_v0, %v2111_v8  ;;  %v11958_v9 = vrot.slane %v11916_v47, %v8989_v27  ;;  %v4193_v29 = vpack.c.bf16 %v4061_v56, %v4061_v56  ;;  %v4259_v55 = vpack.c.bf16 %v4127_v1, %v4127_v1  ;;  %v8519_v8 = vld [vmem:[%s8952_s30 + $0x148] ss:$528 sps:$4 sm:$0xff]  }
 0x144   : > { %v1912_v54 = vmul.f32 %v11957_v14, %v9489_v16  ;;  %v11959_v10 = vrot.slane %v9331_v6, %v8981_v23  ;;  %v11960_v14 = vrot.slane %v11935_v33, %v8985_v25  ;;  %v11961_v0 = vrot.slane %v9303_v40, %v8985_v25  ;;  %5413 = vmatmul.mubr.bf16.vlgmr.msra.gmra.mrb[0].mxu1 %v4190_v11 }
 0x145   : > { %v1978_v58 = vmul.f32 %v11958_v9, %v9489_v16  ;;  %v11962_v56 = vrot.slane %v9313_v12, %v8985_v25  ;;  %v11965_v52 = vrot.slane %v9331_v6, %v8979_v22  ;;  %v11967_v20 = vrot.slane %v11916_v47, %v9059_v3  ;;  %6733 = vmatmul.mubr.bf16.vlgmr.msra.gmra.mrb[0].mxu0 %v4256_v24 }
 0x146   : > { %v3928_v46 = vadd.f32 %v11959_v10, %v3053_v31  ;;  %v1033_v57 = vmul.f32 %v11960_v14, %v9427_v5  ;;  %v3994_v34 = vadd.f32 %v11961_v0, %v3119_v59  ;;  %v11963_v31 = vrot.slane %v11920_v28, %v8989_v27  ;;  %5421 = vmatpush1.bf16.xpose.msra.mxu1 %v8516_v44 }
 0x147   : > { %v2923_v1 = vmul.f32 %v11962_v56, %v9429_v62  ;;  %v11964_v10 = vrot.slane %v11851_v50, %v8987_v26  ;;  %v3931_v30 = vadd.f32 %v11965_v52, %v3056_v38  ;;  %v11966_v0 = vrot.slane %v11922_v42, %v8989_v27  ;;  %6741 = vmatpush1.bf16.xpose.msra.mxu0 %v8519_v8 }
 0x148   : > { %v1099_v9 = vmul.f32 %v11963_v31, %v9427_v5  ;;  %v2044_v59 = vadd.f32 %v1912_v54, %v1033_v57  ;;  %v1981_v31 = vmul.f32 %v11967_v20, %v9489_v16  ;;  %v11969_v52 = vrot.slane %v11935_v33, %v8987_v26  ;;  %5452 = vmatprep.mubr.bf16.mxu1 %v4193_v29 }
 0x149   : > { %v1915_v14 = vmul.f32 %v11964_v10, %v9489_v16  ;;  %v2989_v56 = vmul.f32 %v11966_v0, %v9429_v62  ;;  %v11968_v10 = vrot.slane %v9303_v40, %v8987_v26  ;;  %v11970_v54 = vrot.slane %v11851_v50, %v8989_v27  ;;  %6772 = vmatprep.mubr.bf16.mxu0 %v4259_v55 }
 0x14a   : > { %v2110_v61 = vadd.f32 %v1978_v58, %v1099_v9  ;;  %v1036_v38 = vmul.f32 %v11969_v52, %v9427_v5  ;;  %v11971_v20 = vrot.slane %v9313_v12, %v8987_v26  ;;  %v11973_v9 = vrot.slane %v11916_v47, %v9061_v4  ;;  %5460 = vmatprep.subr.bf16.mxu1 %v8524_v7  ;;  %v7927_v7 = vld [vmem:[%s8946_s11 + $0x301] ss:$8 sm:$0xf] }
 0x14b   : > { %v3997_v36 = vadd.f32 %v11968_v10, %v3122_v21  ;;  %v1914_v57 = vmul.f32 %v11970_v54, %v9489_v16  ;;  %v11972_v21 = vrot.slane %v11920_v28, %v9059_v3  ;;  %v11974_v11 = vrot.slane %v11935_v33, %v8989_v27  ;;  %6780 = vmatprep.subr.bf16.mxu0 %v8527_v13 }
 0x14c   : > { %v2926_v0 = vmul.f32 %v11971_v20, %v9429_v62  ;;  %v1980_v10 = vmul.f32 %v11973_v9, %v9489_v16  ;;  %v2047_v52 = vadd.f32 %v1915_v14, %v1036_v38  ;;  %v11975_v54 = vrot.slane %v11851_v50, %v9059_v3 }
 0x14d   : > { %v1102_v58 = vmul.f32 %v11972_v21, %v9427_v5  ;;  %v1035_v24 = vmul.f32 %v11974_v11, %v9427_v5  ;;  %v11976_v47 = vrot.slane %v11922_v42, %v9059_v3  ;;  %v11977_v8 = vrot.slane %v11920_v28, %v9061_v4 }
 0x14e   : > { %v1917_v20 = vmul.f32 %v11975_v54, %v9489_v16  ;;  %v11978_v29 = vrot.slane %v9313_v12, %v8989_v27  ;;  %v4060_v9 = vmax.f32 %v3928_v46, 0.0  ;;  %v11980_v28 = vrot.slane %v11922_v42, %v9061_v4 }
 0x14f   : > { %v2113_v21 = vadd.f32 %v1981_v31, %v1102_v58  ;;  %v2992_v44 = vmul.f32 %v11976_v47, %v9429_v62  ;;  %v1101_v14 = vmul.f32 %v11977_v8, %v9427_v5  ;;  %v2046_v38 = vadd.f32 %v1914_v57, %v1035_v24 }
 0x150   : > { %v2925_v55 = vmul.f32 %v11978_v29, %v9429_v62  ;;  %v11979_v31 = vrot.slane %v11935_v33, %v9059_v3  ;;  %v2991_v54 = vmul.f32 %v11980_v28, %v9429_v62  ;;  %v4126_v57 = vmax.f32 %v3994_v34, 0.0 }
 0x151   : > { %v2112_v11 = vadd.f32 %v1980_v10, %v1101_v14  ;;  %v3055_v24 = vadd.f32 %v2923_v1, %v2044_v59  ;;  %v2928_v46 = vmul.f32 %v2340_v32, %v9429_v62  ;;  %v7928_v10 = vld [vmem:[%s8946_s11 + $0x301] ss:$8 sm:$0xf0]  ;;  %v4063_v8 = vmax.f32 %v3931_v30, 0.0 }
 0x152   : > { %v1038_v58 = vmul.f32 %v11979_v31, %v9427_v5  ;;  %v3121_v14 = vadd.f32 %v2989_v56, %v2110_v61  ;;  %v3058_v29 = vadd.f32 %v2926_v0, %v2047_v52  ;;  %v4129_v31 = vmax.f32 %v3997_v36, 0.0  ;;  %v8522_v30 = vld [vmem:[%s8952_s30 + $0x48] ss:$528 sps:$4 sm:$0xff]   ;;  %v8525_v56 = vld [vmem:[%s8952_s30 + $0x150] ss:$528 sps:$4 sm:$0xff]  }
 0x153   : > { %v3124_v28 = vadd.f32 %v2992_v44, %v2113_v21  ;;  %v3057_v13 = vadd.f32 %v2925_v55, %v2046_v38  ;;  %v1983_v34 = vmul.f32 %v1593_v2, %v9489_v16  ;;  %v4192_v1 = vpack.c.bf16 %v4060_v9, %v4060_v9 }
 0x154   : > { %v2049_v47 = vadd.f32 %v1917_v20, %v1038_v58  ;;  %v3123_v59 = vadd.f32 %v2991_v54, %v2112_v11  ;;  %v2624_v32 = vrot.slane %v9621_v15, %v9061_v4  ;;  %v10297_v61 = vor.u32 %v7928_v10, %v7927_v7  ;;  %v8530_v7 = vld [vmem:[%s8952_s30 + $0x54] ss:$528 sps:$4 sm:$0xff]  }
 0x155   : > { %v4258_v0 = vpack.c.bf16 %v4126_v57, %v4126_v57  ;;  %v11981_v36 = vrot.slane %v9331_v6, %v8985_v25  ;;  %v11982_v2 = vrot.slane %v11850_v53, %v8975_v19  ;;  %v4195_v44 = vpack.c.bf16 %v4063_v8, %v4063_v8  ;;  %v8533_v57 = vld [vmem:[%s8952_s30 + $0x15c] ss:$528 sps:$4 sm:$0xff]   ;;  %5453 = vmatmul.mubr.bf16.vlgmr.msra.gmra.mrb[0].mxu1 %v4192_v1 }
 0x156   : > { %v3060_v20 = vadd.f32 %v2928_v46, %v2049_v47  ;;  %v11983_v38 = vrot.slane %v9303_v40, %v8989_v27  ;;  %v11984_v58 = vrot.slane %v9331_v6, %v8987_v26  ;;  %v1916_v11 = vmul.f32 %v1325_v17, %v9489_v16  ;;  %5461 = vmatpush1.bf16.xpose.msra.mxu1 %v8522_v30 }
 0x157   : > { %v3930_v52 = vadd.f32 %v11981_v36, %v3055_v24  ;;  %v1104_v21 = vmul.f32 %v11982_v2, %v9427_v5  ;;  %v4261_v54 = vpack.c.bf16 %v4129_v31, %v4129_v31  ;;  %v11985_v24 = vrot.slane %v9303_v40, %v9059_v3  ;;  %6773 = vmatmul.mubr.bf16.vlgmr.msra.gmra.mrb[0].mxu0 %v4258_v0  ;;  %v7878_v0 = vld [vmem:[%s8946_s11 + $0x100] ss:$8 sm:$0xf] }
 0x158   : > { %v3996_v55 = vadd.f32 %v11983_v38, %v3121_v14  ;;  %v3933_v9 = vadd.f32 %v11984_v58, %v3058_v29  ;;  %v3932_v46 = vadd.f32 %v3335_v60, %v3057_v13  ;;  %v11986_v8 = vrot.slane %v9303_v40, %v9061_v4  ;;  %v7961_v60 = vld [vmem:[%s8946_s11 + $0x302] ss:$8 sm:$0xf0]  ;;  %6781 = vmatpush1.bf16.xpose.msra.mxu0 %v8525_v56 }
 0x159   : > { %v3999_v47 = vadd.f32 %v11985_v24, %v3124_v28  ;;  %v2115_v10 = vadd.f32 %v1983_v34, %v1104_v21  ;;  %v11987_v17 = vrot.slane %v9621_v15, %v8975_v19  ;;  %v11988_v29 = vrot.slane %v11935_v33, %v9061_v4  ;;  %v7960_v28 = vld [vmem:[%s8946_s11 + $0x302] ss:$8 sm:$0xf]  ;;  %5492 = vmatprep.mubr.bf16.mxu1 %v4195_v44 }
 0x15a   : > { %v3998_v50 = vadd.f32 %v11986_v8, %v3123_v59  ;;  %v4062_v13 = vmax.f32 %v3930_v52, 0.0  ;;  %v11989_v40 = vrot.slane %v9331_v6, %v9059_v3  ;;  %v1361_v59 = vrot.slane %v9739_v18, %v9059_v3  ;;  %6812 = vmatprep.mubr.bf16.mxu0 %v4261_v54  ;;  %v7879_v52 = vld [vmem:[%s8946_s11 + $0x100] ss:$8 sm:$0xf0]  ;;  %5500 = vmatprep.subr.bf16.mxu1 %v8530_v7 }
 0x15b   : > { %v2994_v14 = vmul.f32 %v11987_v17, %v9429_v62  ;;  %v1037_v31 = vmul.f32 %v11988_v29, %v9427_v5  ;;  %v4128_v33 = vmax.f32 %v3996_v55, 0.0  ;;  %v4065_v36 = vmax.f32 %v3933_v9, 0.0  ;;  %6820 = vmatprep.subr.bf16.mxu0 %v8533_v57 }
 0x15c   : > { %v3935_v34 = vadd.f32 %v11989_v40, %v3060_v20  ;;  %v11990_v30 = vrot.slane %v9313_v12, %v9061_v4  ;;  %v4131_v20 = vmax.f32 %v3999_v47, 0.0  ;;  %v11991_v21 = vrot.slane %v9445_v45, %v8981_v23 }
 0x15d   : > { %v2048_v2 = vadd.f32 %v1916_v11, %v1037_v31  ;;  %v2372_v44 = vrot.slane %v9769_v41, %v9059_v3  ;;  %v1625_v55 = vrot.slane %v10297_v61, %v8975_v19  ;;  %v4064_v58 = vmax.f32 %v3932_v46, 0.0 }
 0x15e   : > { %v2927_v56 = vmul.f32 %v11990_v30, %v9429_v62  ;;  %v1982_v38 = vmul.f32 %v11991_v21, %v9489_v16  ;;  %v4130_v9 = vmax.f32 %v3998_v50, 0.0  ;;  %v3126_v11 = vadd.f32 %v2994_v14, %v2115_v10  ;;  %v8528_v30 = vld [vmem:[%s8952_s30 + $0x50] ss:$528 sps:$4 sm:$0xff]  }
 0x15f   : > { %v10360_v12 = vor.u32 %v7961_v60, %v7960_v28  ;;  %v4067_v54 = vmax.f32 %v3935_v34, 0.0  ;;  %v11992_v7 = vrot.slane %v11850_v53, %v8981_v23  ;;  %v11993_v24 = vrot.slane %v9739_v18, %v8975_v19 }
 0x160   : > { %v10370_v8 = vor.u32 %v7879_v52, %v7878_v0  ;;  %v4194_v46 = vpack.c.bf16 %v4062_v13, %v4062_v13  ;;  %v4260_v50 = vpack.c.bf16 %v4128_v33, %v4128_v33  ;;  %v4197_v10 = vpack.c.bf16 %v4065_v36, %v4065_v36 }
 0x161   : > { %v1103_v57 = vmul.f32 %v11992_v7, %v9427_v5  ;;  %v1919_v47 = vmul.f32 %v11993_v24, %v9489_v16  ;;  %v3059_v17 = vadd.f32 %v2927_v56, %v2048_v2  ;;  %v4263_v14 = vpack.c.bf16 %v4131_v20, %v4131_v20  ;;  %v8531_v56 = vld [vmem:[%s8952_s30 + $0x158] ss:$528 sps:$4 sm:$0xff]  }
 0x162   : > { %v11994_v31 = vrot.slane %v9621_v15, %v8981_v23  ;;  %v11995_v60 = vrot.slane %v9455_v63, %v8975_v19  ;;  %v10380_v34 = vpack.c.bf16 %v4064_v58, %v4064_v58  ;;  %v10382_v13 = vpack.c.bf16 %v4130_v9, %v4130_v9  ;;  %5493 = vmatmul.mubr.bf16.vlgmr.msra.gmra.mrb[0].mxu1 %v4194_v46 }
 0x163   : > { %v2114_v29 = vadd.f32 %v1982_v38, %v1103_v57  ;;  %v11996_v0 = vrot.slane %v9689_v49, %v8975_v19  ;;  %v11997_v36 = vrot.slane %v9445_v45, %v8979_v22  ;;  %v10393_v52 = vpack.c.bf16 %v4067_v54, %v4067_v54  ;;  %6813 = vmatmul.mubr.bf16.vlgmr.msra.gmra.mrb[0].mxu0 %v4260_v50 }
 0x164   : > { %v2993_v28 = vmul.f32 %v11994_v31, %v9429_v62  ;;  %v1040_v40 = vmul.f32 %v11995_v60, %v9427_v5  ;;  %v11998_v21 = vrot.slane %v9739_v18, %v8981_v23  ;;  %v11999_v58 = vrot.slane %v9445_v45, %v8985_v25  ;;  %5501 = vmatpush1.bf16.xpose.msra.mxu1 %v8528_v30 }
 0x165   : > { %v4001_v33 = vadd.f32 %v11996_v0, %v3126_v11  ;;  %v1985_v2 = vmul.f32 %v11997_v36, %v9489_v16  ;;  %v12000_v11 = vrot.slane %v9331_v6, %v9061_v4  ;;  %v12001_v54 = vrot.slane %v9769_v41, %v8975_v19  ;;  %v8539_v0 = vld [vmem:[%s8952_s30 + $0x164] ss:$528 sps:$4 sm:$0xff]   ;;  %6821 = vmatpush1.bf16.xpose.msra.mxu0 %v8531_v56 }
 0x166   : > { %v2051_v20 = vadd.f32 %v1919_v47, %v1040_v40  ;;  %v1918_v38 = vmul.f32 %v11998_v21, %v9489_v16  ;;  %v1984_v9 = vmul.f32 %v11999_v58, %v9489_v16  ;;  %v12002_v24 = vrot.slane %v11850_v53, %v8979_v22  ;;  %v8536_v40 = vld [vmem:[%s8952_s30 + $0x5c] ss:$528 sps:$4 sm:$0xff]   ;;  %5532 = vmatprep.mubr.bf16.mxu1 %v4197_v10 }
 0x167   : > { %v3934_v7 = vadd.f32 %v12000_v11, %v3059_v17  ;;  %v2930_v57 = vmul.f32 %v12001_v54, %v9429_v62  ;;  %v12003_v31 = vrot.slane %v9739_v18, %v8979_v22  ;;  %v3125_v36 = vadd.f32 %v2993_v28, %v2114_v29  ;;  %6852 = vmatprep.mubr.bf16.mxu0 %v4263_v14 }
 0x168   : > { %v1106_v47 = vmul.f32 %v12002_v24, %v9427_v5  ;;  %v12004_v6 = vrot.slane %v9621_v15, %v8979_v22  ;;  %v12005_v21 = vrot.slane %v9455_v63, %v8981_v23  ;;  %v12006_v11 = vrot.slane %v11850_v53, %v8985_v25  ;;  %5540 = vmatprep.subr.bf16.mxu1 %v8536_v40 }
 0x169   : > { %v1921_v60 = vmul.f32 %v12003_v31, %v9489_v16  ;;  %v12007_v29 = vrot.slane %v9769_v41, %v8981_v23  ;;  %v12008_v31 = vrot.slane %v9455_v63, %v8979_v22  ;;  %v12009_v46 = vrot.slane %v9621_v15, %v8985_v25  ;;  %6860 = vmatprep.subr.bf16.mxu0 %v8539_v0 }
 0x16a   : > { %v2996_v17 = vmul.f32 %v12004_v6, %v9429_v62  ;;  %v1039_v58 = vmul.f32 %v12005_v21, %v9427_v5  ;;  %v1105_v54 = vmul.f32 %v12006_v11, %v9427_v5  ;;  %v2117_v24 = vadd.f32 %v1985_v2, %v1106_v47 }
 0x16b   : > { %v2929_v28 = vmul.f32 %v12007_v29, %v9429_v62  ;;  %v1042_v6 = vmul.f32 %v12008_v31, %v9427_v5  ;;  %v2995_v50 = vmul.f32 %v12009_v46, %v9429_v62  ;;  %v12010_v47 = vrot.slane %v9769_v41, %v8979_v22 }
 0x16c   : > { %v2050_v21 = vadd.f32 %v1918_v38, %v1039_v58  ;;  %v2116_v1 = vadd.f32 %v1984_v9, %v1105_v54  ;;  %v12011_v30 = vrot.slane %v9445_v45, %v8987_v26  ;;  %v4133_v38 = vmax.f32 %v4001_v33, 0.0 }
 0x16d   : > { %v2053_v2 = vadd.f32 %v1921_v60, %v1042_v6  ;;  %v2932_v11 = vmul.f32 %v12010_v47, %v9429_v62  ;;  %v3062_v9 = vadd.f32 %v2930_v57, %v2051_v20  ;;  %v12012_v10 = vrot.slane %v9739_v18, %v8985_v25 }
 0x16e   : > { %v1987_v56 = vmul.f32 %v12011_v30, %v9489_v16  ;;  %v12013_v60 = vrot.slane %v9445_v45, %v8989_v27  ;;  %v4066_v54 = vmax.f32 %v3934_v7, 0.0  ;;  %v12014_v29 = vrot.slane %v9689_v49, %v8981_v23  ;;  %5533 = vmatmul.mubr.bf16.vlgmr.msra.gmra.mrb[0].mxu1 %v10380_v34 }
 0x16f   : > { %v1920_v14 = vmul.f32 %v12012_v10, %v9489_v16  ;;  %v3128_v6 = vadd.f32 %v2996_v17, %v2117_v24  ;;  %v12015_v33 = vrot.slane %v11850_v53, %v8987_v26  ;;  %v3061_v57 = vadd.f32 %v2929_v28, %v2050_v21  ;;  %6853 = vmatmul.mubr.bf16.vlgmr.msra.gmra.mrb[0].mxu0 %v10382_v13 }
 0x170   : > { %v1986_v58 = vmul.f32 %v12013_v60, %v9489_v16  ;;  %v4000_v31 = vadd.f32 %v12014_v29, %v3125_v36  ;;  %v3127_v40 = vadd.f32 %v2995_v50, %v2116_v1  ;;  %v12016_v0 = vrot.slane %v9455_v63, %v8985_v25  ;;  %5572 = vmatprep.mubr.bf16.mxu1 %v10393_v52 }
 0x171   : > { %v1108_v20 = vmul.f32 %v12015_v33, %v9427_v5  ;;  %v12017_v7 = vrot.slane %v11850_v53, %v8989_v27  ;;  %v3064_v17 = vadd.f32 %v2932_v11, %v2053_v2  ;;  %v12018_v47 = vrot.slane %v9621_v15, %v8987_v26 }
 0x172   : > { %v1041_v46 = vmul.f32 %v12016_v0, %v9427_v5  ;;  %v12019_v1 = vrot.slane %v9769_v41, %v8985_v25  ;;  %v12020_v10 = vrot.slane %v9621_v15, %v8989_v27  ;;  %v12021_v2 = vrot.slane %v9739_v18, %v8987_v26  ;;  %v8537_v0 = vld [vmem:[%s8952_s30 + $0x160] ss:$528 sps:$4 sm:$0xff]  }
 0x173   : > { %v1107_v36 = vmul.f32 %v12017_v7, %v9427_v5  ;;  %v2119_v24 = vadd.f32 %v1987_v56, %v1108_v20  ;;  %v2998_v28 = vmul.f32 %v12018_v47, %v9429_v62  ;;  %v4265_v56 = vpack.c.bf16 %v4133_v38, %v4133_v38  ;;  %v8534_v20 = vld [vmem:[%s8952_s30 + $0x58] ss:$528 sps:$4 sm:$0xff]   ;;  %6861 = vmatpush1.bf16.xpose.msra.mxu0 %v8537_v0 }
 0x174   : > { %v2931_v21 = vmul.f32 %v12019_v1, %v9429_v62  ;;  %v2052_v50 = vadd.f32 %v1920_v14, %v1041_v46  ;;  %v2997_v60 = vmul.f32 %v12020_v10, %v9429_v62  ;;  %v1923_v11 = vmul.f32 %v12021_v2, %v9489_v16  ;;  %5541 = vmatpush1.bf16.xpose.msra.mxu1 %v8534_v20 }
 0x175   : > { %v2118_v30 = vadd.f32 %v1986_v58, %v1107_v36  ;;  %v10491_v29 = vpack.c.bf16 %v4066_v54, %v4066_v54  ;;  %v4132_v33 = vmax.f32 %v4000_v31, 0.0  ;;  %v12022_v14 = vrot.slane %v9837_v35, %v8975_v19  ;;  %6892 = vmatprep.mubr.bf16.mxu0 %v4265_v56 }
 0x176   : > { %v12023_v46 = vrot.slane %v9689_v49, %v8979_v22  ;;  %v12024_v36 = vrot.slane %v9837_v35, %v8981_v23  ;;  %v12025_v38 = vrot.slane %v9689_v49, %v8985_v25  ;;  %v12026_v31 = vrot.slane %v9455_v63, %v8987_v26 }
 0x177   : > { %v3937_v58 = vadd.f32 %v12022_v14, %v3062_v9  ;;  %v12027_v9 = vrot.slane %v9837_v35, %v8979_v22  ;;  %v3130_v2 = vadd.f32 %v2998_v28, %v2119_v24  ;;  %v3129_v42 = vadd.f32 %v2997_v60, %v2118_v30 }
 0x178   : > { %v4003_v7 = vadd.f32 %v12023_v46, %v3128_v6  ;;  %v3936_v47 = vadd.f32 %v12024_v36, %v3061_v57  ;;  %v4002_v54 = vadd.f32 %v12025_v38, %v3127_v40  ;;  %v1044_v1 = vmul.f32 %v12026_v31, %v9427_v5  ;;  %v8542_v46 = vld [vmem:[%s8952_s30 + $0x64] ss:$528 sps:$4 sm:$0xff]   ;;  %v8545_v36 = vld [vmem:[%s8952_s30 + $0x16c] ss:$528 sps:$4 sm:$0xff]  }
 0x179   : > { %v3939_v10 = vadd.f32 %v12027_v9, %v3064_v17  ;;  %v12028_v6 = vrot.slane %v9445_v45, %v9059_v3  ;;  %v12029_v57 = vrot.slane %v9739_v18, %v8989_v27  ;;  %v3063_v38 = vadd.f32 %v2931_v21, %v2052_v50  ;;  %5580 = vmatprep.subr.bf16.mxu1 %v8542_v46 }
 0x17a   : > { %v2055_v31 = vadd.f32 %v1923_v11, %v1044_v1  ;;  %v12030_v17 = vrot.slane %v9445_v45, %v9061_v4  ;;  %v4069_v28 = vmax.f32 %v3937_v58, 0.0  ;;  %v12031_v9 = vrot.slane %v9769_v41, %v8987_v26  ;;  %6900 = vmatprep.subr.bf16.mxu0 %v8545_v36 }
 0x17b   : > { %v1989_v14 = vmul.f32 %v12028_v6, %v9489_v16  ;;  %v1922_v40 = vmul.f32 %v12029_v57, %v9489_v16  ;;  %v12032_v21 = vrot.slane %v11850_v53, %v9059_v3  ;;  %v12033_v45 = vrot.slane %v9455_v63, %v8989_v27  ;;  %5573 = vmatmul.mubr.bf16.vlgmr.msra.gmra.mrb[0].mxu1 %v10491_v29 }
 0x17c   : > { %v1988_v24 = vmul.f32 %v12030_v17, %v9489_v16  ;;  %v2934_v6 = vmul.f32 %v12031_v9, %v9429_v62  ;;  %v4135_v34 = vmax.f32 %v4003_v7, 0.0  ;;  %v12034_v13 = vrot.slane %v9621_v15, %v9059_v3 }
 0x17d   : > { %v1110_v50 = vmul.f32 %v12032_v21, %v9427_v5  ;;  %v1043_v30 = vmul.f32 %v12033_v45, %v9427_v5  ;;  %v12035_v11 = vrot.slane %v11850_v53, %v9061_v4  ;;  %v1925_v1 = vmul.f32 %v1361_v59, %v9489_v16 }
 0x17e   : > { %v3000_v60 = vmul.f32 %v12034_v13, %v9429_v62  ;;  %v4068_v20 = vmax.f32 %v3936_v47, 0.0  ;;  %v12036_v57 = vrot.slane %v9769_v41, %v8989_v27  ;;  %v2999_v9 = vmul.f32 %v2624_v32, %v9429_v62 }
 0x17f   : > { %v1109_v58 = vmul.f32 %v12035_v11, %v9427_v5  ;;  %v2121_v0 = vadd.f32 %v1989_v14, %v1110_v50  ;;  %v2054_v7 = vadd.f32 %v1922_v40, %v1043_v30  ;;  %v12037_v59 = vrot.slane %v9455_v63, %v9059_v3  ;;  %v7993_v30 = vld [vmem:[%s8946_s11 + $0x303] ss:$8 sm:$0xf]  ;;  %v7912_v11 = vld [vmem:[%s8946_s11 + $0x101] ss:$8 sm:$0xf0] }
 0x180   : > { %v2933_v17 = vmul.f32 %v12036_v57, %v9429_v62  ;;  %v4264_v56 = vpack.c.bf16 %v4132_v33, %v4132_v33  ;;  %v4201_v47 = vpack.c.bf16 %v4069_v28, %v4069_v28  ;;  %v4134_v14 = vmax.f32 %v4002_v54, 0.0 }
 0x181   : > { %v2120_v53 = vadd.f32 %v1988_v24, %v1109_v58  ;;  %v1046_v52 = vmul.f32 %v12037_v59, %v9427_v5  ;;  %v4071_v40 = vmax.f32 %v3939_v10, 0.0  ;;  %v4267_v21 = vpack.c.bf16 %v4135_v34, %v4135_v34  ;;  %v7994_v34 = vld [vmem:[%s8946_s11 + $0x303] ss:$8 sm:$0xf0] }
 0x182   : > { %v3066_v46 = vadd.f32 %v2934_v6, %v2055_v31  ;;  %v2936_v15 = vmul.f32 %v2372_v44, %v9429_v62  ;;  %v10571_v32 = vpack.c.bf16 %v4068_v20, %v4068_v20  ;;  %v12038_v33 = vrot.slane %v9689_v49, %v8987_v26  ;;  %v8540_v58 = vld [vmem:[%s8952_s30 + $0x60] ss:$528 sps:$4 sm:$0xff]   ;;  %6893 = vmatmul.mubr.bf16.vlgmr.msra.gmra.mrb[0].mxu0 %v4264_v56 }
 0x183   : > { %v2057_v36 = vadd.f32 %v1925_v1, %v1046_v52  ;;  %v12039_v54 = vrot.slane %v9837_v35, %v8985_v25  ;;  %v3132_v31 = vadd.f32 %v3000_v60, %v2121_v0  ;;  %v12040_v28 = vrot.slane %v9689_v49, %v8989_v27  ;;  %v7911_v60 = vld [vmem:[%s8946_s11 + $0x101] ss:$8 sm:$0xf]  ;;  %5581 = vmatpush1.bf16.xpose.msra.mxu1 %v8540_v58 }
 0x184   : > { %v4005_v24 = vadd.f32 %v12038_v33, %v3130_v2  ;;  %v3065_v50 = vadd.f32 %v2933_v17, %v2054_v7  ;;  %v3131_v44 = vadd.f32 %v2999_v9, %v2120_v53  ;;  %v3631_v45 = vrot.slane %v9689_v49, %v9061_v4  ;;  %v8543_v1 = vld [vmem:[%s8952_s30 + $0x168] ss:$528 sps:$4 sm:$0xff]   ;;  %5612 = vmatprep.mubr.bf16.mxu1 %v4201_v47 }
 0x185   : > { %v3938_v10 = vadd.f32 %v12039_v54, %v3063_v38  ;;  %v4004_v6 = vadd.f32 %v12040_v28, %v3129_v42  ;;  %v10586_v13 = vpack.c.bf16 %v4134_v14, %v4134_v14  ;;  %v10588_v2 = vpack.c.bf16 %v4071_v40, %v4071_v40  ;;  %v8548_v40 = vld [vmem:[%s8952_s30 + $0x6c] ss:$528 sps:$4 sm:$0xff]   ;;  %6901 = vmatpush1.bf16.xpose.msra.mxu0 %v8543_v1  ;;  %v7977_v1 = vld [vmem:[%s8946_s11 + $0x103] ss:$8 sm:$0xf] }
 0x186   : > { %v1991_v38 = vmul.f32 %v1625_v55, %v9489_v16  ;;  %v2636_v42 = vrot.slane %v10360_v12, %v8975_v19  ;;  %v12041_v20 = vrot.slane %v9837_v35, %v8987_v26  ;;  %v3068_v7 = vadd.f32 %v2936_v15, %v2057_v36  ;;  %6932 = vmatprep.mubr.bf16.mxu0 %v4267_v21 }
 0x187   : > { %v3379_v57 = vrot.slane %v9837_v35, %v9059_v3  ;;  %v1357_v17 = vrot.slane %v9739_v18, %v9061_v4  ;;  %v4137_v55 = vmax.f32 %v4005_v24, 0.0  ;;  %v4070_v53 = vmax.f32 %v3938_v10, 0.0  ;;  %5620 = vmatprep.subr.bf16.mxu1 %v8548_v40 }
 0x188   : > { %v3941_v0 = vadd.f32 %v12041_v20, %v3066_v46  ;;  %v12042_v9 = vrot.slane %v9689_v49, %v9059_v3  ;;  %v12043_v52 = vrot.slane %v10109_v37, %v8975_v19  ;;  %v8551_v46 = vld [vmem:[%s8952_s30 + $0x174] ss:$528 sps:$4 sm:$0xff]   ;;  %v4136_v36 = vmax.f32 %v4004_v6, 0.0 }
 0x189   : > { %v12044_v15 = vrot.slane %v9837_v35, %v8989_v27  ;;  %v4006_v33 = vadd.f32 %v3631_v45, %v3131_v44  ;;  %v10619_v24 = vor.u32 %v7994_v34, %v7993_v30  ;;  %v3002_v54 = vmul.f32 %v2636_v42, %v9429_v62  ;;  %v7945_v44 = vld [vmem:[%s8946_s11 + $0x102] ss:$8 sm:$0xf0]  ;;  %6940 = vmatprep.subr.bf16.mxu0 %v8551_v46 }
 0x18a   : > { %v4007_v59 = vadd.f32 %v12042_v9, %v3132_v31  ;;  %v1112_v14 = vmul.f32 %v12043_v52, %v9427_v5  ;;  %v10623_v10 = vor.u32 %v7912_v11, %v7911_v60  ;;  %v7944_v31 = vld [vmem:[%s8946_s11 + $0x102] ss:$8 sm:$0xf]  ;;  %v4073_v28 = vmax.f32 %v3941_v0, 0.0  ;;  %5613 = vmatmul.mubr.bf16.vlgmr.msra.gmra.mrb[0].mxu1 %v10571_v32 }
 0x18b   : > { %v3940_v18 = vadd.f32 %v12044_v15, %v3065_v50  ;;  %v3943_v6 = vadd.f32 %v3379_v57, %v3068_v7  ;;  %v1924_v20 = vmul.f32 %v1357_v17, %v9489_v16  ;;  %v2368_v50 = vrot.slane %v9769_v41, %v9061_v4  ;;  %v7978_v0 = vld [vmem:[%s8946_s11 + $0x103] ss:$8 sm:$0xf0]  ;;  %5652 = vmatprep.mubr.bf16.mxu1 %v10588_v2 }
 0x18c   : > { %v2123_v49 = vadd.f32 %v1991_v38, %v1112_v14  ;;  %v4269_v29 = vpack.c.bf16 %v4137_v55, %v4137_v55  ;;  %v10630_v56 = vpack.c.bf16 %v4070_v53, %v4070_v53  ;;  %v4139_v45 = vmax.f32 %v4007_v59, 0.0 }
 0x18d   : > { %v1621_v30 = vrot.slane %v10297_v61, %v8981_v23  ;;  %v10634_v34 = vpack.c.bf16 %v4136_v36, %v4136_v36  ;;  %v4072_v38 = vmax.f32 %v3940_v18, 0.0  ;;  %v4138_v42 = vmax.f32 %v4006_v33, 0.0 }
 0x18e   : > { %v12045_v41 = vrot.slane %v9455_v63, %v9061_v4  ;;  %v3134_v21 = vadd.f32 %v3002_v54, %v2123_v49  ;;  %v3643_v60 = vrot.slane %v10619_v24, %v8975_v19  ;;  %v1369_v11 = vrot.slane %v10623_v10, %v8975_v19  ;;  %v8546_v54 = vld [vmem:[%s8952_s30 + $0x68] ss:$528 sps:$4 sm:$0xff]   ;;  %6933 = vmatmul.mubr.bf16.vlgmr.msra.gmra.mrb[0].mxu0 %v10586_v13 }
 0x18f   : > { %v10644_v58 = vor.u32 %v7945_v44, %v7944_v31  ;;  %v10648_v7 = vpack.c.bf16 %v4073_v28, %v4073_v28  ;;  %v4075_v57 = vmax.f32 %v3943_v6, 0.0  ;;  %v2935_v63 = vmul.f32 %v2368_v50, %v9429_v62  ;;  %v8549_v31 = vld [vmem:[%s8952_s30 + $0x170] ss:$528 sps:$4 sm:$0xff]   ;;  %5621 = vmatpush1.bf16.xpose.msra.mxu1 %v8546_v54  ;;  %6972 = vmatprep.mubr.bf16.mxu0 %v4269_v29 }
 0x190   : > { %v1045_v47 = vmul.f32 %v12045_v41, %v9427_v5  ;;  %v10651_v55 = vpack.c.bf16 %v4139_v45, %v4139_v45  ;;  %v1990_v53 = vmul.f32 %v1621_v30, %v9489_v16  ;;  %v2632_v9 = vrot.slane %v10360_v12, %v8981_v23  ;;  %6941 = vmatpush1.bf16.xpose.msra.mxu0 %v8549_v31 }
 0x191   : > { %v490_v59 = vrot.slane %v10370_v8, %v8975_v19  ;;  %v10658_v52 = vpack.c.bf16 %v4072_v38, %v4072_v38  ;;  %v10660_v14 = vpack.c.bf16 %v4138_v42, %v4138_v42  ;;  %v3375_v40 = vrot.slane %v9837_v35, %v9061_v4  ;;  %v8554_v38 = vld [vmem:[%s8952_s30 + $0x74] ss:$528 sps:$4 sm:$0xff]   ;;  %v8557_v42 = vld [vmem:[%s8952_s30 + $0x17c] ss:$528 sps:$4 sm:$0xff]  }
 0x192   : > { %v2056_v17 = vadd.f32 %v1924_v20, %v1045_v47  ;;  %v10664_v46 = vor.u32 %v7978_v0, %v7977_v1  ;;  %v10666_v36 = vadd.f32 %v3643_v60, %v3134_v21  ;;  %v12046_v15 = vrot.slane %v10109_v37, %v8981_v23  ;;  %5660 = vmatprep.subr.bf16.mxu1 %v8554_v38 }
 0x193   : > { %v1927_v33 = vmul.f32 %v1369_v11, %v9489_v16  ;;  %v2380_v49 = vrot.slane %v10644_v58, %v8975_v19  ;;  %v10677_v28 = vpack.c.bf16 %v4075_v57, %v4075_v57  ;;  %v3639_v6 = vrot.slane %v10619_v24, %v8981_v23  ;;  %6980 = vmatprep.subr.bf16.mxu0 %v8557_v42 }
 0x194   : > { %v1111_v18 = vmul.f32 %v12046_v15, %v9427_v5  ;;  %v3067_v35 = vadd.f32 %v2935_v63, %v2056_v17  ;;  %v1633_v20 = vrot.slane %v10297_v61, %v8979_v22  ;;  %v3001_v44 = vmul.f32 %v2632_v9, %v9429_v62 }
 0x195   : > { %v1048_v45 = vmul.f32 %v490_v59, %v9427_v5  ;;  %v1365_v30 = vrot.slane %v10623_v10, %v8981_v23  ;;  %v3387_v41 = vrot.slane %v10664_v46, %v8975_v19  ;;  %v754_v47 = vrot.slane %v10109_v37, %v8979_v22 }
 0x196   : > { %v2122_v50 = vadd.f32 %v1990_v53, %v1111_v18  ;;  %v2644_v21 = vrot.slane %v10360_v12, %v8979_v22  ;;  %v1629_v60 = vrot.slane %v10297_v61, %v8985_v25  ;;  %v2938_v1 = vmul.f32 %v2380_v49, %v9429_v62  ;;  %5653 = vmatmul.mubr.bf16.vlgmr.msra.gmra.mrb[0].mxu1 %v10630_v56 }
 0x197   : > { %v2059_v11 = vadd.f32 %v1927_v33, %v1048_v45  ;;  %v486_v0 = vrot.slane %v10370_v8, %v8981_v23  ;;  %v1993_v57 = vmul.f32 %v1633_v20, %v9489_v16  ;;  %v2376_v17 = vrot.slane %v10644_v58, %v8981_v23  ;;  %5692 = vmatprep.mubr.bf16.mxu1 %v10648_v7 }
 0x198   : > { %v750_v63 = vrot.slane %v10109_v37, %v8985_v25  ;;  %v3133_v32 = vadd.f32 %v3001_v44, %v2122_v50  ;;  %v1926_v13 = vmul.f32 %v1365_v30, %v9489_v16  ;;  %v1377_v53 = vrot.slane %v10623_v10, %v8979_v22 }
 0x199   : > { %v1114_v9 = vmul.f32 %v754_v47, %v9427_v5  ;;  %v1992_v59 = vmul.f32 %v1629_v60, %v9489_v16  ;;  %v2640_v15 = vrot.slane %v10360_v12, %v8985_v25  ;;  %v3004_v18 = vmul.f32 %v2644_v21, %v9429_v62 }
 0x19a   : > { %v1047_v2 = vmul.f32 %v486_v0, %v9427_v5  ;;  %v498_v29 = vrot.slane %v10370_v8, %v8979_v22  ;;  %v1641_v33 = vrot.slane %v10297_v61, %v8987_v26  ;;  %v3070_v49 = vadd.f32 %v2938_v1, %v2059_v11  ;;  %6973 = vmatmul.mubr.bf16.vlgmr.msra.gmra.mrb[0].mxu0 %v10634_v34 }
 0x19b   : > { %v2125_v54 = vadd.f32 %v1993_v57, %v1114_v9  ;;  %v2937_v31 = vmul.f32 %v2376_v17, %v9429_v62  ;;  %v1113_v20 = vmul.f32 %v750_v63, %v9427_v5  ;;  %v1929_v44 = vmul.f32 %v1377_v53, %v9489_v16  ;;  %v8552_v57 = vld [vmem:[%s8952_s30 + $0x70] ss:$528 sps:$4 sm:$0xff]   ;;  %v8555_v17 = vld [vmem:[%s8952_s30 + $0x178] ss:$528 sps:$4 sm:$0xff]   ;;  %v8560_v9 = vld [vmem:[%s8952_s30 + $0x7c] ss:$528 sps:$4 sm:$0xff]   ;;  %7012 = vmatprep.mubr.bf16.mxu0 %v10651_v55 }
 0x19c   : > { %v2058_v50 = vadd.f32 %v1926_v13, %v1047_v2  ;;  %v2388_v45 = vrot.slane %v10644_v58, %v8979_v22  ;;  %v762_v30 = vrot.slane %v10109_v37, %v8987_v26  ;;  %v4141_v38 = vmax.f32 %v10666_v36, 0.0  ;;  %5661 = vmatpush1.bf16.xpose.msra.mxu1 %v8552_v57  ;;  %6981 = vmatpush1.bf16.xpose.msra.mxu0 %v8555_v17 }
 0x19d   : > { %v3942_v42 = vadd.f32 %v3375_v40, %v3067_v35  ;;  %v2124_v47 = vadd.f32 %v1992_v59, %v1113_v20  ;;  %v3003_v21 = vmul.f32 %v2640_v15, %v9429_v62  ;;  %v4008_v60 = vadd.f32 %v3639_v6, %v3133_v32  ;;  %v8563_v59 = vld [vmem:[%s8952_s30 + $0x184] ss:$528 sps:$4 sm:$0xff]   ;;  %5700 = vmatprep.subr.bf16.mxu1 %v8560_v9 }
 0x19e   : > { %v1050_v11 = vmul.f32 %v498_v29, %v9427_v5  ;;  %v1995_v1 = vmul.f32 %v1641_v33, %v9489_v16  ;;  %v2652_v0 = vrot.slane %v10360_v12, %v8987_v26  ;;  %v3945_v63 = vadd.f32 %v3387_v41, %v3070_v49  ;;  %7020 = vmatprep.subr.bf16.mxu0 %v8563_v59  ;;  %v8558_v59 = vld [vmem:[%s8952_s30 + $0x78] ss:$528 sps:$4 sm:$0xff]  }
 0x19f   : > { %v3136_v13 = vadd.f32 %v3004_v18, %v2125_v54  ;;  %v3651_v40 = vrot.slane %v10619_v24, %v8979_v22  ;;  %v3383_v36 = vrot.slane %v10664_v46, %v8981_v23  ;;  %v3069_v35 = vadd.f32 %v2937_v31, %v2058_v50 }
 0x1a0   : > { %v2061_v53 = vadd.f32 %v1929_v44, %v1050_v11  ;;  %v2940_v6 = vmul.f32 %v2388_v45, %v9429_v62  ;;  %v1116_v32 = vmul.f32 %v762_v30, %v9427_v5  ;;  %v10744_v15 = vpack.c.bf16 %v4141_v38, %v4141_v38 }
 0x1a1   : > { %v4074_v2 = vmax.f32 %v3942_v42, 0.0  ;;  %v3135_v29 = vadd.f32 %v3003_v21, %v2124_v47  ;;  %v3647_v41 = vrot.slane %v10619_v24, %v8985_v25  ;;  %v3006_v33 = vmul.f32 %v2652_v0, %v9429_v62 }
 0x1a2   : > { %v2127_v18 = vadd.f32 %v1995_v1, %v1116_v32  ;;  %v1373_v49 = vrot.slane %v10623_v10, %v8985_v25  ;;  %v4140_v54 = vmax.f32 %v4008_v60, 0.0  ;;  %v4077_v31 = vmax.f32 %v3945_v63, 0.0 }
 0x1a3   : > { %v4011_v20 = vadd.f32 %v3651_v40, %v3136_v13  ;;  %v3395_v50 = vrot.slane %v10664_v46, %v8979_v22  ;;  %v3944_v56 = vadd.f32 %v3383_v36, %v3069_v35  ;;  %v3072_v34 = vadd.f32 %v2940_v6, %v2061_v53  ;;  %5693 = vmatmul.mubr.bf16.vlgmr.msra.gmra.mrb[0].mxu1 %v10658_v52 }
 0x1a4   : > { %v494_v44 = vrot.slane %v10370_v8, %v8985_v25  ;;  %v10759_v45 = vpack.c.bf16 %v4074_v2, %v4074_v2  ;;  %v4010_v30 = vadd.f32 %v3647_v41, %v3135_v29  ;;  %v2384_v38 = vrot.slane %v10644_v58, %v8985_v25  ;;  %v8561_v2 = vld [vmem:[%s8952_s30 + $0x180] ss:$528 sps:$4 sm:$0xff]   ;;  %5701 = vmatpush1.bf16.xpose.msra.mxu1 %v8558_v59 }
 0x1a5   : > { %v3138_v42 = vadd.f32 %v3006_v33, %v2127_v18  ;;  %v3659_v47 = vrot.slane %v10619_v24, %v8987_v26  ;;  %v1928_v7 = vmul.f32 %v1373_v49, %v9489_v16  ;;  %v1637_v55 = vrot.slane %v10297_v61, %v8989_v27  ;;  %5732 = vmatprep.mubr.bf16.mxu1 %v10677_v28 }
 0x1a6   : > { %v10768_v21 = vpack.c.bf16 %v4140_v54, %v4140_v54  ;;  %v10770_v60 = vpack.c.bf16 %v4077_v31, %v4077_v31  ;;  %v4143_v11 = vmax.f32 %v4011_v20, 0.0  ;;  %v1385_v1 = vrot.slane %v10623_v10, %v8987_v26  ;;  %7013 = vmatmul.mubr.bf16.vlgmr.msra.gmra.mrb[0].mxu0 %v10660_v14 }
 0x1a7   : > { %v4076_v0 = vmax.f32 %v3944_v56, 0.0  ;;  %v3947_v57 = vadd.f32 %v3395_v50, %v3072_v34  ;;  %v1049_v17 = vmul.f32 %v494_v44, %v9427_v5  ;;  %v758_v63 = vrot.slane %v10109_v37, %v8989_v27  ;;  %v8566_v50 = vld [vmem:[%s8952_s30 + $0x84] ss:$528 sps:$4 sm:$0xff]   ;;  %v8569_v56 = vld [vmem:[%s8952_s30 + $0x18c] ss:$528 sps:$4 sm:$0xff]   ;;  %7021 = vmatpush1.bf16.xpose.msra.mxu0 %v8561_v2  ;;  %7052 = vmatprep.mubr.bf16.mxu0 %v10744_v15 }
 0x1a8   : > { %v4142_v13 = vmax.f32 %v4010_v30, 0.0  ;;  %v2939_v40 = vmul.f32 %v2384_v38, %v9429_v62  ;;  %v506_v36 = vrot.slane %v10370_v8, %v8987_v26  ;;  %v1649_v35 = vrot.slane %v10297_v61, %v9059_v3  ;;  %5740 = vmatprep.subr.bf16.mxu1 %v8566_v50  ;;  %7060 = vmatprep.subr.bf16.mxu0 %v8569_v56 }
 0x1a9   : > { %v4013_v53 = vadd.f32 %v3659_v47, %v3138_v42  ;;  %v2060_v6 = vadd.f32 %v1928_v7, %v1049_v17  ;;  %v1994_v32 = vmul.f32 %v1637_v55, %v9489_v16  ;;  %v2648_v9 = vrot.slane %v10360_v12, %v8989_v27  ;;  %v7929_v17 = vld [vmem:[%s8946_s11 + $0x341] ss:$8 sm:$0xf] }
 0x1aa   : > { %v10787_v29 = vpack.c.bf16 %v4143_v11, %v4143_v11  ;;  %v1931_v41 = vmul.f32 %v1385_v1, %v9489_v16  ;;  %v2396_v18 = vrot.slane %v10644_v58, %v8987_v26  ;;  %v770_v33 = vrot.slane %v10109_v37, %v9059_v3 }
 0x1ab   : > { %v10794_v49 = vpack.c.bf16 %v4076_v0, %v4076_v0  ;;  %v4079_v54 = vmax.f32 %v3947_v57, 0.0  ;;  %v3391_v31 = vrot.slane %v10664_v46, %v8985_v25  ;;  %v1115_v20 = vmul.f32 %v758_v63, %v9427_v5  ;;  %v7930_v63 = vld [vmem:[%s8946_s11 + $0x341] ss:$8 sm:$0xf0] }
 0x1ac   : > { %v10801_v34 = vpack.c.bf16 %v4142_v13, %v4142_v13  ;;  %v1052_v44 = vmul.f32 %v506_v36, %v9427_v5  ;;  %v1997_v30 = vmul.f32 %v1649_v35, %v9489_v16  ;;  %v2660_v38 = vrot.slane %v10360_v12, %v9059_v3 }
 0x1ad   : > { %v4145_v42 = vmax.f32 %v4013_v53, 0.0  ;;  %v3071_v47 = vadd.f32 %v2939_v40, %v2060_v6  ;;  %v2126_v7 = vadd.f32 %v1994_v32, %v1115_v20  ;;  %v3005_v55 = vmul.f32 %v2648_v9, %v9429_v62  ;;  %v7896_v6 = vld [vmem:[%s8946_s11 + $0x340] ss:$8 sm:$0xf] }
 0x1ae   : > { %v2063_v11 = vadd.f32 %v1931_v41, %v1052_v44  ;;  %v2942_v1 = vmul.f32 %v2396_v18, %v9429_v62  ;;  %v1118_v0 = vmul.f32 %v770_v33, %v9427_v5  ;;  %v10814_v52 = vpack.c.bf16 %v4079_v54, %v4079_v54  ;;  %v7897_v32 = vld [vmem:[%s8946_s11 + $0x340] ss:$8 sm:$0xf0]  ;;  %v7962_v20 = vld [vmem:[%s8946_s11 + $0x342] ss:$8 sm:$0xf] }
 0x1af   : > { %v3655_v14 = vrot.slane %v10619_v24, %v8989_v27  ;;  %v1381_v57 = vrot.slane %v10623_v10, %v8989_v27  ;;  %v3403_v13 = vrot.slane %v10664_v46, %v8987_v26  ;;  %v3008_v15 = vmul.f32 %v2660_v38, %v9429_v62  ;;  %5733 = vmatmul.mubr.bf16.vlgmr.msra.gmra.mrb[0].mxu1 %v10759_v45 }
 0x1b0   : > { %v2129_v28 = vadd.f32 %v1997_v30, %v1118_v0  ;;  %v10825_v40 = vpack.c.bf16 %v4145_v42, %v4145_v42  ;;  %v502_v36 = vrot.slane %v10370_v8, %v8989_v27  ;;  %v1645_v35 = vrot.slane %v10297_v61, %v9061_v4  ;;  %5772 = vmatprep.mubr.bf16.mxu1 %v10770_v60 }
 0x1b1   : > { %v1393_v53 = vrot.slane %v10623_v10, %v9059_v3  ;;  %v10835_v9 = vadd.f32 %v3391_v31, %v3071_v47  ;;  %v3137_v59 = vadd.f32 %v3005_v55, %v2126_v7  ;;  %v3074_v2 = vadd.f32 %v2942_v1, %v2063_v11  ;;  %v7963_v31 = vld [vmem:[%s8946_s11 + $0x342] ss:$8 sm:$0xf0] }
 0x1b2   : > { %v10837_v41 = vor.u32 %v7930_v63, %v7929_v17  ;;  %v1930_v18 = vmul.f32 %v1381_v57, %v9489_v16  ;;  %v2392_v33 = vrot.slane %v10644_v58, %v8989_v27  ;;  %v766_v61 = vrot.slane %v10109_v37, %v9061_v4  ;;  %v8564_v7 = vld [vmem:[%s8952_s30 + $0x80] ss:$528 sps:$4 sm:$0xff]   ;;  %v8567_v55 = vld [vmem:[%s8952_s30 + $0x188] ss:$528 sps:$4 sm:$0xff]   ;;  %7053 = vmatmul.mubr.bf16.vlgmr.msra.gmra.mrb[0].mxu0 %v10768_v21 }
 0x1b3   : > { %v514_v54 = vrot.slane %v10370_v8, %v9059_v3  ;;  %v3140_v50 = vadd.f32 %v3008_v15, %v2129_v28  ;;  %v3667_v56 = vrot.slane %v10619_v24, %v9059_v3  ;;  %v2656_v44 = vrot.slane %v10360_v12, %v9061_v4  ;;  %v8572_v15 = vld [vmem:[%s8952_s30 + $0x8c] ss:$528 sps:$4 sm:$0xff]   ;;  %5741 = vmatpush1.bf16.xpose.msra.mxu1 %v8564_v7  ;;  %v7880_v7 = vld [vmem:[%s8946_s11 + $0x140] ss:$8 sm:$0xf] }
 0x1b4   : > { %v10852_v30 = vor.u32 %v7897_v32, %v7896_v6  ;;  %v1051_v38 = vmul.f32 %v502_v36, %v9427_v5  ;;  %v1996_v37 = vmul.f32 %v1645_v35, %v9489_v16  ;;  %v1933_v42 = vmul.f32 %v1393_v53, %v9489_v16  ;;  %v8575_v36 = vld [vmem:[%s8952_s30 + $0x194] ss:$528 sps:$4 sm:$0xff]   ;;  %7061 = vmatpush1.bf16.xpose.msra.mxu0 %v8567_v55 }
 0x1b5   : > { %v2404_v47 = vrot.slane %v10644_v58, %v9059_v3  ;;  %v10861_v11 = vadd.f32 %v3655_v14, %v3137_v59  ;;  %v10863_v1 = vadd.f32 %v3403_v13, %v3074_v2  ;;  %v1657_v12 = vrot.slane %v10837_v41, %v8975_v19  ;;  %7092 = vmatprep.mubr.bf16.mxu0 %v10787_v29 }
 0x1b6   : > { %v10867_v0 = vor.u32 %v7963_v31, %v7962_v20  ;;  %v2062_v57 = vadd.f32 %v1930_v18, %v1051_v38  ;;  %v2941_v17 = vmul.f32 %v2392_v33, %v9429_v62  ;;  %v1117_v63 = vmul.f32 %v766_v61, %v9427_v5  ;;  %v7995_v33 = vld [vmem:[%s8946_s11 + $0x343] ss:$8 sm:$0xf]  ;;  %5780 = vmatprep.subr.bf16.mxu1 %v8572_v15  ;;  %v7913_v38 = vld [vmem:[%s8946_s11 + $0x141] ss:$8 sm:$0xf] }
 0x1b7   : > { %v1054_v28 = vmul.f32 %v514_v54, %v9427_v5  ;;  %v10874_v14 = vadd.f32 %v3667_v56, %v3140_v50  ;;  %v3399_v13 = vrot.slane %v10664_v46, %v8989_v27  ;;  %v3007_v35 = vmul.f32 %v2656_v44, %v9429_v62  ;;  %v7996_v61 = vld [vmem:[%s8946_s11 + $0x343] ss:$8 sm:$0xf0]  ;;  %7100 = vmatprep.subr.bf16.mxu0 %v8575_v36 }
 0x1b8   : > { %v778_v53 = vrot.slane %v10852_v30, %v8975_v19  ;;  %v2128_v6 = vadd.f32 %v1996_v37, %v1117_v63  ;;  %v2944_v59 = vmul.f32 %v2404_v47, %v9429_v62  ;;  %v1999_v2 = vmul.f32 %v1657_v12, %v9489_v16  ;;  %v7914_v37 = vld [vmem:[%s8946_s11 + $0x141] ss:$8 sm:$0xf0] }
 0x1b9   : > { %v2065_v32 = vadd.f32 %v1933_v42, %v1054_v28  ;;  %v2668_v18 = vrot.slane %v10867_v0, %v8975_v19  ;;  %v1389_v54 = vrot.slane %v10623_v10, %v9061_v4  ;;  %v3073_v45 = vadd.f32 %v2941_v17, %v2062_v57  ;;  %v7881_v17 = vld [vmem:[%s8946_s11 + $0x140] ss:$8 sm:$0xf0] }
 0x1ba   : > { %v3663_v21 = vrot.slane %v10619_v24, %v9061_v4  ;;  %v3411_v20 = vrot.slane %v10664_v46, %v9059_v3  ;;  %v4078_v31 = vmax.f32 %v10835_v9, 0.0  ;;  %v1120_v10 = vmul.f32 %v778_v53, %v9427_v5 }
 0x1bb   : > { %v510_v60 = vrot.slane %v10370_v8, %v9061_v4  ;;  %v1653_v29 = vrot.slane %v10837_v41, %v8981_v23  ;;  %v3139_v50 = vadd.f32 %v3007_v35, %v2128_v6  ;;  %v3076_v56 = vadd.f32 %v2944_v59, %v2065_v32  ;;  %v8570_v6 = vld [vmem:[%s8952_s30 + $0x88] ss:$528 sps:$4 sm:$0xff]   ;;  %v8573_v32 = vld [vmem:[%s8952_s30 + $0x190] ss:$528 sps:$4 sm:$0xff]   ;;  %5773 = vmatmul.mubr.bf16.vlgmr.msra.gmra.mrb[0].mxu1 %v10794_v49 }
 0x1bc   : > { %v10903_v24 = vor.u32 %v7996_v61, %v7995_v33  ;;  %v2400_v44 = vrot.slane %v10644_v58, %v9061_v4  ;;  %v2131_v42 = vadd.f32 %v1999_v2, %v1120_v10  ;;  %v3010_v9 = vmul.f32 %v2668_v18, %v9429_v62  ;;  %v8581_v10 = vld [vmem:[%s8952_s30 + $0x19c] ss:$528 sps:$4 sm:$0xff]   ;;  %5781 = vmatpush1.bf16.xpose.msra.mxu1 %v8570_v6 }
 0x1bd   : > { %v1932_v47 = vmul.f32 %v1389_v54, %v9489_v16  ;;  %v774_v8 = vrot.slane %v10852_v30, %v8981_v23  ;;  %v4144_v55 = vmax.f32 %v10861_v11, 0.0  ;;  %v4081_v12 = vmax.f32 %v10863_v1, 0.0  ;;  %5812 = vmatprep.mubr.bf16.mxu1 %v10814_v52  ;;  %v7980_v52 = vld [vmem:[%s8946_s11 + $0x143] ss:$8 sm:$0xf0] }
 0x1be   : > { %v4147_v58 = vmax.f32 %v10874_v14, 0.0  ;;  %v3948_v57 = vadd.f32 %v3399_v13, %v3073_v45  ;;  %v1053_v63 = vmul.f32 %v510_v60, %v9427_v5  ;;  %v1998_v28 = vmul.f32 %v1653_v29, %v9489_v16  ;;  %v7946_v14 = vld [vmem:[%s8946_s11 + $0x142] ss:$8 sm:$0xf]  ;;  %7093 = vmatmul.mubr.bf16.vlgmr.msra.gmra.mrb[0].mxu0 %v10801_v34 }
 0x1bf   : > { %v2664_v15 = vrot.slane %v10867_v0, %v8981_v23  ;;  %v10922_v36 = vor.u32 %v7914_v37, %v7913_v38  ;;  %v4014_v35 = vadd.f32 %v3663_v21, %v3139_v50  ;;  %v3951_v53 = vadd.f32 %v3411_v20, %v3076_v56  ;;  %v7947_v13 = vld [vmem:[%s8946_s11 + $0x142] ss:$8 sm:$0xf0]  ;;  %v8578_v20 = vld [vmem:[%s8952_s30 + $0x94] ss:$528 sps:$4 sm:$0xff]   ;;  %7101 = vmatpush1.bf16.xpose.msra.mxu0 %v8573_v32 }
 0x1c0   : > { %v3675_v11 = vrot.slane %v10903_v24, %v8975_v19  ;;  %v2943_v1 = vmul.f32 %v2400_v44, %v9429_v62  ;;  %v3142_v59 = vadd.f32 %v3010_v9, %v2131_v42  ;;  %v2064_v2 = vadd.f32 %v1932_v47, %v1053_v63  ;;  %7132 = vmatprep.mubr.bf16.mxu0 %v10825_v40 }
 0x1c1   : > { %v1119_v18 = vmul.f32 %v774_v8, %v9427_v5  ;;  %v10932_v33 = vor.u32 %v7881_v17, %v7880_v7  ;;  %v10934_v61 = vpack.c.bf16 %v4078_v31, %v4078_v31  ;;  %v10936_v54 = vpack.c.bf16 %v4144_v55, %v4144_v55  ;;  %5820 = vmatprep.subr.bf16.mxu1 %v8578_v20 }
 0x1c2   : > { %v10938_v45 = vpack.c.bf16 %v4081_v12, %v4081_v12  ;;  %v4080_v21 = vmax.f32 %v3948_v57, 0.0  ;;  %v3009_v29 = vmul.f32 %v2664_v15, %v9429_v62  ;;  %v1401_v50 = vrot.slane %v10922_v36, %v8975_v19  ;;  %7140 = vmatprep.subr.bf16.mxu0 %v8581_v10  ;;  %v7979_v12 = vld [vmem:[%s8946_s11 + $0x143] ss:$8 sm:$0xf] }
 0x1c3   : > { %v2130_v60 = vadd.f32 %v1998_v28, %v1119_v18  ;;  %v10945_v56 = vor.u32 %v7947_v13, %v7946_v14  ;;  %v10949_v31 = vpack.c.bf16 %v4147_v58, %v4147_v58  ;;  %v4146_v44 = vmax.f32 %v4014_v35, 0.0  ;;  %v8576_v10 = vld [vmem:[%s8952_s30 + $0x90] ss:$528 sps:$4 sm:$0xff]  }
 0x1c4   : > { %v4083_v38 = vmax.f32 %v3951_v53, 0.0  ;;  %v3407_v37 = vrot.slane %v10664_v46, %v9061_v4  ;;  %v4017_v42 = vadd.f32 %v3675_v11, %v3142_v59  ;;  %v3075_v9 = vadd.f32 %v2943_v1, %v2064_v2 }
 0x1c5   : > { %v522_v47 = vrot.slane %v10932_v33, %v8975_v19  ;;  %v10957_v49 = vpack.c.bf16 %v4080_v21, %v4080_v21  ;;  %v3671_v34 = vrot.slane %v10903_v24, %v8981_v23  ;;  %v1665_v46 = vrot.slane %v10837_v41, %v8979_v22 }
 0x1c6   : > { %v3141_v8 = vadd.f32 %v3009_v29, %v2130_v60  ;;  %v1935_v7 = vmul.f32 %v1401_v50, %v9489_v16  ;;  %v2412_v55 = vrot.slane %v10945_v56, %v8975_v19  ;;  %v10968_v58 = vpack.c.bf16 %v4146_v44, %v4146_v44  ;;  %v8579_v60 = vld [vmem:[%s8952_s30 + $0x198] ss:$528 sps:$4 sm:$0xff]  }
 0x1c7   : > { %v10970_v40 = vpack.c.bf16 %v4083_v38, %v4083_v38  ;;  %v786_v57 = vrot.slane %v10852_v30, %v8979_v22  ;;  %v1397_v17 = vrot.slane %v10922_v36, %v8981_v23  ;;  %v4149_v63 = vmax.f32 %v4017_v42, 0.0  ;;  %5813 = vmatmul.mubr.bf16.vlgmr.msra.gmra.mrb[0].mxu1 %v10934_v61 }
 0x1c8   : > { %v3950_v28 = vadd.f32 %v3407_v37, %v3075_v9  ;;  %v1056_v15 = vmul.f32 %v522_v47, %v9427_v5  ;;  %v2676_v35 = vrot.slane %v10867_v0, %v8979_v22  ;;  %v10979_v53 = vor.u32 %v7980_v52, %v7979_v12  ;;  %5821 = vmatpush1.bf16.xpose.msra.mxu1 %v8576_v10 }
 0x1c9   : > { %v2001_v11 = vmul.f32 %v1665_v46, %v9489_v16  ;;  %v518_v1 = vrot.slane %v10932_v33, %v8981_v23  ;;  %v1661_v14 = vrot.slane %v10837_v41, %v8985_v25  ;;  %v4016_v13 = vadd.f32 %v3671_v34, %v3141_v8  ;;  %v8584_v34 = vld [vmem:[%s8952_s30 + $0x9c] ss:$528 sps:$4 sm:$0xff]   ;;  %v8587_v46 = vld [vmem:[%s8952_s30 + $0x1a4] ss:$528 sps:$4 sm:$0xff]   ;;  %5852 = vmatprep.mubr.bf16.mxu1 %v10938_v45 }
 0x1ca   : > { %v2067_v6 = vadd.f32 %v1935_v7, %v1056_v15  ;;  %v2946_v32 = vmul.f32 %v2412_v55, %v9429_v62  ;;  %v1409_v59 = vrot.slane %v10922_v36, %v8979_v22  ;;  %v1122_v2 = vmul.f32 %v786_v57, %v9427_v5  ;;  %7133 = vmatmul.mubr.bf16.vlgmr.msra.gmra.mrb[0].mxu0 %v10936_v54 }
 0x1cb   : > { %v1934_v18 = vmul.f32 %v1397_v17, %v9489_v16  ;;  %v2408_v21 = vrot.slane %v10945_v56, %v8981_v23  ;;  %v782_v20 = vrot.slane %v10852_v30, %v8985_v25  ;;  %v10997_v29 = vpack.c.bf16 %v4149_v63, %v4149_v63  ;;  %7141 = vmatpush1.bf16.xpose.msra.mxu0 %v8579_v60 }
 0x1cc   : > { %v4082_v50 = vmax.f32 %v3950_v28, 0.0  ;;  %v3012_v44 = vmul.f32 %v2676_v35, %v9429_v62  ;;  %v530_v38 = vrot.slane %v10932_v33, %v8979_v22  ;;  %v2133_v37 = vadd.f32 %v2001_v11, %v1122_v2  ;;  %7172 = vmatprep.mubr.bf16.mxu0 %v10949_v31  ;;  %5860 = vmatprep.subr.bf16.mxu1 %v8584_v34 }
 0x1cd   : > { %v1055_v42 = vmul.f32 %v518_v1, %v9427_v5  ;;  %v2000_v9 = vmul.f32 %v1661_v14, %v9489_v16  ;;  %v2672_v47 = vrot.slane %v10867_v0, %v8985_v25  ;;  %v3078_v8 = vadd.f32 %v2946_v32, %v2067_v6  ;;  %7180 = vmatprep.subr.bf16.mxu0 %v8587_v46 }
 0x1ce   : > { %v3419_v7 = vrot.slane %v10979_v53, %v8975_v19  ;;  %v1937_v55 = vmul.f32 %v1409_v59, %v9489_v16  ;;  %v2420_v12 = vrot.slane %v10945_v56, %v8979_v22  ;;  %v4148_v52 = vmax.f32 %v4016_v13, 0.0 }
 0x1cf   : > { %v2066_v57 = vadd.f32 %v1934_v18, %v1055_v42  ;;  %v2945_v17 = vmul.f32 %v2408_v21, %v9429_v62  ;;  %v1121_v63 = vmul.f32 %v782_v20, %v9427_v5  ;;  %v11017_v28 = vpack.c.bf16 %v4082_v50, %v4082_v50 }
 0x1d0   : > { %v3683_v15 = vrot.slane %v10903_v24, %v8979_v22  ;;  %v1058_v35 = vmul.f32 %v530_v38, %v9427_v5  ;;  %v3144_v61 = vadd.f32 %v3012_v44, %v2133_v37  ;;  %v3011_v11 = vmul.f32 %v2672_v47, %v9429_v62 }
 0x1d1   : > { %v2132_v54 = vadd.f32 %v2000_v9, %v1121_v63  ;;  %v2948_v14 = vmul.f32 %v2420_v12, %v9429_v62  ;;  %v1673_v13 = vrot.slane %v10837_v41, %v8987_v26  ;;  %v11028_v6 = vpack.c.bf16 %v4148_v52, %v4148_v52 }
 0x1d2   : > { %v2069_v1 = vadd.f32 %v1937_v55, %v1058_v35  ;;  %v3953_v32 = vadd.f32 %v3419_v7, %v3078_v8  ;;  %v3077_v59 = vadd.f32 %v2945_v17, %v2066_v57  ;;  %v3415_v45 = vrot.slane %v10979_v53, %v8981_v23  ;;  %v8582_v8 = vld [vmem:[%s8952_s30 + $0x98] ss:$528 sps:$4 sm:$0xff]   ;;  %v8585_v7 = vld [vmem:[%s8952_s30 + $0x1a0] ss:$528 sps:$4 sm:$0xff]  }
 0x1d3   : > { %v3679_v31 = vrot.slane %v10903_v24, %v8985_v25  ;;  %v794_v2 = vrot.slane %v10852_v30, %v8987_v26  ;;  %v1405_v18 = vrot.slane %v10922_v36, %v8985_v25  ;;  %v1669_v21 = vrot.slane %v10837_v41, %v8989_v27  ;;  %5853 = vmatmul.mubr.bf16.vlgmr.msra.gmra.mrb[0].mxu1 %v10957_v49 }
 0x1d4   : > { %v4019_v20 = vadd.f32 %v3683_v15, %v3144_v61  ;;  %v3143_v10 = vadd.f32 %v3011_v11, %v2132_v54  ;;  %v3427_v60 = vrot.slane %v10979_v53, %v8979_v22  ;;  %v2684_v50 = vrot.slane %v10867_v0, %v8987_v26  ;;  %v8590_v61 = vld [vmem:[%s8952_s30 + $0xa4] ss:$528 sps:$4 sm:$0xff]   ;;  %v8593_v54 = vld [vmem:[%s8952_s30 + $0x1ac] ss:$528 sps:$4 sm:$0xff]   ;;  %5861 = vmatpush1.bf16.xpose.msra.mxu1 %v8582_v8 }
 0x1d5   : > { %v3080_v44 = vadd.f32 %v2948_v14, %v2069_v1  ;;  %v2003_v38 = vmul.f32 %v1673_v13, %v9489_v16  ;;  %v526_v37 = vrot.slane %v10932_v33, %v8985_v25  ;;  %v790_v42 = vrot.slane %v10852_v30, %v8989_v27  ;;  %5892 = vmatprep.mubr.bf16.mxu1 %v10970_v40 }
 0x1d6   : > { %v4085_v9 = vmax.f32 %v3953_v32, 0.0  ;;  %v3952_v47 = vadd.f32 %v3415_v45, %v3077_v59  ;;  %v2416_v34 = vrot.slane %v10945_v56, %v8985_v25  ;;  %v1417_v46 = vrot.slane %v10922_v36, %v8987_v26  ;;  %7173 = vmatmul.mubr.bf16.vlgmr.msra.gmra.mrb[0].mxu0 %v10968_v58  ;;  %5900 = vmatprep.subr.bf16.mxu1 %v8590_v61 }
 0x1d7   : > { %v1124_v55 = vmul.f32 %v794_v2, %v9427_v5  ;;  %v1936_v12 = vmul.f32 %v1405_v18, %v9489_v16  ;;  %v2002_v52 = vmul.f32 %v1669_v21, %v9489_v16  ;;  %v2680_v57 = vrot.slane %v10867_v0, %v8989_v27  ;;  %7181 = vmatpush1.bf16.xpose.msra.mxu0 %v8585_v7 }
 0x1d8   : > { %v4151_v17 = vmax.f32 %v4019_v20, 0.0  ;;  %v4018_v63 = vadd.f32 %v3679_v31, %v3143_v10  ;;  %v3014_v15 = vmul.f32 %v2684_v50, %v9429_v62  ;;  %v538_v35 = vrot.slane %v10932_v33, %v8987_v26  ;;  %7212 = vmatprep.mubr.bf16.mxu0 %v10997_v29  ;;  %7220 = vmatprep.subr.bf16.mxu0 %v8593_v54 }
 0x1d9   : > { %v3955_v11 = vadd.f32 %v3427_v60, %v3080_v44  ;;  %v2135_v1 = vadd.f32 %v2003_v38, %v1124_v55  ;;  %v1057_v14 = vmul.f32 %v526_v37, %v9427_v5  ;;  %v1123_v13 = vmul.f32 %v790_v42, %v9427_v5 }
 0x1da   : > { %v4084_v32 = vmax.f32 %v3952_v47, 0.0  ;;  %v2947_v59 = vmul.f32 %v2416_v34, %v9429_v62  ;;  %v1939_v45 = vmul.f32 %v1417_v46, %v9489_v16  ;;  %v2428_v31 = vrot.slane %v10945_v56, %v8987_v26 }
 0x1db   : > { %v2068_v2 = vadd.f32 %v1936_v12, %v1057_v14  ;;  %v2134_v18 = vadd.f32 %v2002_v52, %v1123_v13  ;;  %v3013_v21 = vmul.f32 %v2680_v57, %v9429_v62  ;;  %v11076_v49 = vpack.c.bf16 %v4085_v9, %v4085_v9  ;;  %v7898_v14 = vld [vmem:[%s8946_s11 + $0x380] ss:$8 sm:$0xf] }
 0x1dc   : > { %v4150_v58 = vmax.f32 %v4018_v63, 0.0  ;;  %v1060_v20 = vmul.f32 %v538_v35, %v9427_v5  ;;  %v1681_v10 = vrot.slane %v10837_v41, %v9059_v3  ;;  %v4283_v60 = vpack.c.bf16 %v4151_v17, %v4151_v17  ;;  %v7932_v35 = vld [vmem:[%s8946_s11 + $0x381] ss:$8 sm:$0xf0] }
 0x1dd   : > { %v4087_v50 = vmax.f32 %v3955_v11, 0.0  ;;  %v3146_v44 = vadd.f32 %v3014_v15, %v2135_v1  ;;  %v3691_v38 = vrot.slane %v10903_v24, %v8987_v26  ;;  %v11083_v37 = vpack.c.bf16 %v4084_v32, %v4084_v32  ;;  %v7931_v15 = vld [vmem:[%s8946_s11 + $0x381] ss:$8 sm:$0xf] }
 0x1de   : > { %v2071_v40 = vadd.f32 %v1939_v45, %v1060_v20  ;;  %v2950_v29 = vmul.f32 %v2428_v31, %v9429_v62  ;;  %v802_v42 = vrot.slane %v10852_v30, %v9059_v3  ;;  %v3079_v9 = vadd.f32 %v2947_v59, %v2068_v2  ;;  %v7899_v13 = vld [vmem:[%s8946_s11 + $0x380] ss:$8 sm:$0xf0] }
 0x1df   : > { %v3423_v47 = vrot.slane %v10979_v53, %v8985_v25  ;;  %v3145_v34 = vadd.f32 %v3013_v21, %v2134_v18  ;;  %v3687_v46 = vrot.slane %v10903_v24, %v8989_v27  ;;  %v11092_v8 = vpack.c.bf16 %v4150_v58, %v4150_v58  ;;  %v8588_v32 = vld [vmem:[%s8952_s30 + $0xa0] ss:$528 sps:$4 sm:$0xff]   ;;  %v8591_v59 = vld [vmem:[%s8952_s30 + $0x1a8] ss:$528 sps:$4 sm:$0xff]   ;;  %5893 = vmatmul.mubr.bf16.vlgmr.msra.gmra.mrb[0].mxu1 %v11017_v28 }
 0x1e0   : > { %v2005_v7 = vmul.f32 %v1681_v10, %v9489_v16  ;;  %v2692_v55 = vrot.slane %v10867_v0, %v9059_v3  ;;  %v1413_v12 = vrot.slane %v10922_v36, %v8989_v27  ;;  %v11099_v52 = vpack.c.bf16 %v4087_v50, %v4087_v50  ;;  %v7964_v10 = vld [vmem:[%s8946_s11 + $0x382] ss:$8 sm:$0xf]  ;;  %5901 = vmatpush1.bf16.xpose.msra.mxu1 %v8588_v32 }
 0x1e1   : > { %v4021_v57 = vadd.f32 %v3691_v38, %v3146_v44  ;;  %v534_v17 = vrot.slane %v10932_v33, %v8989_v27  ;;  %v1677_v63 = vrot.slane %v10837_v41, %v9061_v4  ;;  %v3082_v61 = vadd.f32 %v2950_v29, %v2071_v40  ;;  %v7965_v50 = vld [vmem:[%s8946_s11 + $0x382] ss:$8 sm:$0xf0]  ;;  %v8596_v44 = vld [vmem:[%s8952_s30 + $0xac] ss:$528 sps:$4 sm:$0xff]   ;;  %5932 = vmatprep.mubr.bf16.mxu1 %v11076_v49 }
 0x1e2   : > { %v3435_v54 = vrot.slane %v10979_v53, %v8987_v26  ;;  %v1126_v11 = vmul.f32 %v802_v42, %v9427_v5  ;;  %v2424_v1 = vrot.slane %v10945_v56, %v8989_v27  ;;  %v3954_v41 = vadd.f32 %v3423_v47, %v3079_v9  ;;  %v8599_v38 = vld [vmem:[%s8952_s30 + $0x1b4] ss:$528 sps:$4 sm:$0xff]   ;;  %7213 = vmatmul.mubr.bf16.vlgmr.msra.gmra.mrb[0].mxu0 %v11028_v6 }
 0x1e3   : > { %v11116_v45 = vadd.f32 %v3687_v46, %v3145_v34  ;;  %v798_v31 = vrot.slane %v10852_v30, %v9061_v4  ;;  %v1425_v2 = vrot.slane %v10922_v36, %v9059_v3  ;;  %v3016_v21 = vmul.f32 %v2692_v55, %v9429_v62  ;;  %7221 = vmatpush1.bf16.xpose.msra.mxu0 %v8591_v59  ;;  %v7915_v59 = vld [vmem:[%s8946_s11 + $0x181] ss:$8 sm:$0xf] }
 0x1e4   : > { %v2137_v18 = vadd.f32 %v2005_v7, %v1126_v11  ;;  %v1938_v58 = vmul.f32 %v1413_v12, %v9489_v16  ;;  %v11124_v20 = vor.u32 %v7932_v35, %v7931_v15  ;;  %v1059_v40 = vmul.f32 %v534_v17, %v9427_v5  ;;  %7252 = vmatprep.mubr.bf16.mxu0 %v4283_v60  ;;  %v7998_v11 = vld [vmem:[%s8946_s11 + $0x383] ss:$8 sm:$0xf0] }
 0x1e5   : > { %v2004_v29 = vmul.f32 %v1677_v63, %v9489_v16  ;;  %v2688_v30 = vrot.slane %v10867_v0, %v9061_v4  ;;  %v546_v42 = vrot.slane %v10932_v33, %v9059_v3  ;;  %v4153_v9 = vmax.f32 %v4021_v57, 0.0  ;;  %5940 = vmatprep.subr.bf16.mxu1 %v8596_v44  ;;  %7260 = vmatprep.subr.bf16.mxu0 %v8599_v38 }
 0x1e6   : > { %v3957_v47 = vadd.f32 %v3435_v54, %v3082_v61  ;;  %v2949_v34 = vmul.f32 %v2424_v1, %v9429_v62  ;;  %v11139_v46 = vor.u32 %v7899_v13, %v7898_v14  ;;  %v4086_v7 = vmax.f32 %v3954_v41, 0.0  ;;  %v7997_v54 = vld [vmem:[%s8946_s11 + $0x383] ss:$8 sm:$0xf] }
 0x1e7   : > { %v1125_v55 = vmul.f32 %v798_v31, %v9427_v5  ;;  %v1941_v0 = vmul.f32 %v1425_v2, %v9489_v16  ;;  %v2436_v12 = vrot.slane %v10945_v56, %v9059_v3  ;;  %v2070_v28 = vadd.f32 %v1938_v58, %v1059_v40 }
 0x1e8   : > { %v1689_v6 = vrot.slane %v11124_v20, %v8975_v19  ;;  %v11148_v57 = vor.u32 %v7965_v50, %v7964_v10  ;;  %v3015_v63 = vmul.f32 %v2688_v30, %v9429_v62  ;;  %v1062_v15 = vmul.f32 %v546_v42, %v9427_v5  ;;  %v7882_v30 = vld [vmem:[%s8946_s11 + $0x180] ss:$8 sm:$0xf] }
 0x1e9   : > { %v2136_v17 = vadd.f32 %v2004_v29, %v1125_v55  ;;  %v4285_v35 = vpack.c.bf16 %v4153_v9, %v4153_v9  ;;  %v3148_v61 = vadd.f32 %v3016_v21, %v2137_v18  ;;  %v3699_v49 = vrot.slane %v10903_v24, %v9059_v3  ;;  %v7916_v21 = vld [vmem:[%s8946_s11 + $0x181] ss:$8 sm:$0xf0]  ;;  %v7883_v42 = vld [vmem:[%s8946_s11 + $0x180] ss:$8 sm:$0xf0] }
 0x1ea   : > { %v810_v60 = vrot.slane %v11139_v46, %v8975_v19  ;;  %v11158_v1 = vpack.c.bf16 %v4086_v7, %v4086_v7  ;;  %v4152_v14 = vmax.f32 %v11116_v45, 0.0  ;;  %v2073_v13 = vadd.f32 %v1941_v0, %v1062_v15  ;;  %v8594_v9 = vld [vmem:[%s8952_s30 + $0xa8] ss:$528 sps:$4 sm:$0xff]  }
 0x1eb   : > { %v2952_v32 = vmul.f32 %v2436_v12, %v9429_v62  ;;  %v4089_v41 = vmax.f32 %v3957_v47, 0.0  ;;  %v3431_v31 = vrot.slane %v10979_v53, %v8989_v27  ;;  %v2007_v2 = vmul.f32 %v1689_v6, %v9489_v16  ;;  %v8597_v47 = vld [vmem:[%s8952_s30 + $0x1b0] ss:$528 sps:$4 sm:$0xff]   ;;  %5933 = vmatmul.mubr.bf16.vlgmr.msra.gmra.mrb[0].mxu1 %v11083_v37 }
 0x1ec   : > { %v2700_v18 = vrot.slane %v11148_v57, %v8975_v19  ;;  %v3081_v58 = vadd.f32 %v2949_v34, %v2070_v28  ;;  %v3147_v45 = vadd.f32 %v3015_v63, %v2136_v17  ;;  %v3695_v10 = vrot.slane %v10903_v24, %v9061_v4  ;;  %v7948_v28 = vld [vmem:[%s8946_s11 + $0x182] ss:$8 sm:$0xf]  ;;  %v8602_v17 = vld [vmem:[%s8952_s30 + $0xb4] ss:$528 sps:$4 sm:$0xff]   ;;  %5941 = vmatpush1.bf16.xpose.msra.mxu1 %v8594_v9 }
 0x1ed   : > { %v1421_v50 = vrot.slane %v10922_v36, %v9061_v4  ;;  %v4023_v44 = vadd.f32 %v3699_v49, %v3148_v61  ;;  %v1128_v38 = vmul.f32 %v810_v60, %v9427_v5  ;;  %v11174_v40 = vor.u32 %v7998_v11, %v7997_v54  ;;  %v7949_v6 = vld [vmem:[%s8946_s11 + $0x182] ss:$8 sm:$0xf0]  ;;  %v8605_v63 = vld [vmem:[%s8952_s30 + $0x1bc] ss:$528 sps:$4 sm:$0xff]   ;;  %5972 = vmatprep.mubr.bf16.mxu1 %v11099_v52 }
 0x1ee   : > { %v542_v29 = vrot.slane %v10932_v33, %v9061_v4  ;;  %v11182_v24 = vpack.c.bf16 %v4152_v14, %v4152_v14  ;;  %v3084_v34 = vadd.f32 %v2952_v32, %v2073_v13  ;;  %v3443_v36 = vrot.slane %v10979_v53, %v9059_v3  ;;  %7253 = vmatmul.mubr.bf16.vlgmr.msra.gmra.mrb[0].mxu0 %v11092_v8 }
 0x1ef   : > { %v11186_v7 = vor.u32 %v7916_v21, %v7915_v59  ;;  %v11188_v55 = vpack.c.bf16 %v4089_v41, %v4089_v41  ;;  %v2139_v0 = vadd.f32 %v2007_v2, %v1128_v38  ;;  %v3018_v12 = vmul.f32 %v2700_v18, %v9429_v62  ;;  %7261 = vmatpush1.bf16.xpose.msra.mxu0 %v8597_v47  ;;  %v7982_v47 = vld [vmem:[%s8946_s11 + $0x183] ss:$8 sm:$0xf0] }
 0x1f0   : > { %v2432_v33 = vrot.slane %v10945_v56, %v9061_v4  ;;  %v3956_v15 = vadd.f32 %v3431_v31, %v3081_v58  ;;  %v4022_v61 = vadd.f32 %v3695_v10, %v3147_v45  ;;  %v1940_v49 = vmul.f32 %v1421_v50, %v9489_v16  ;;  %7292 = vmatprep.mubr.bf16.mxu0 %v4285_v35 }
 0x1f1   : > { %v11198_v60 = vor.u32 %v7883_v42, %v7882_v30  ;;  %v4155_v54 = vmax.f32 %v4023_v44, 0.0  ;;  %v3707_v11 = vrot.slane %v11174_v40, %v8975_v19  ;;  %v1061_v56 = vmul.f32 %v542_v29, %v9427_v5  ;;  %5980 = vmatprep.subr.bf16.mxu1 %v8602_v17  ;;  %7300 = vmatprep.subr.bf16.mxu0 %v8605_v63  ;;  %v7981_v44 = vld [vmem:[%s8946_s11 + $0x183] ss:$8 sm:$0xf] }
 0x1f2   : > { %v1685_v14 = vrot.slane %v11124_v20, %v8981_v23  ;;  %v3959_v13 = vadd.f32 %v3443_v36, %v3084_v34  ;;  %v1433_v32 = vrot.slane %v11186_v7, %v8975_v19  ;;  %v11209_v59 = vor.u32 %v7949_v6, %v7948_v28  ;;  %v8600_v17 = vld [vmem:[%s8952_s30 + $0xb0] ss:$528 sps:$4 sm:$0xff]   ;;  %v8603_v63 = vld [vmem:[%s8952_s30 + $0x1b8] ss:$528 sps:$4 sm:$0xff]  }
 0x1f3   : > { %v3150_v37 = vadd.f32 %v3018_v12, %v2139_v0  ;;  %v2951_v8 = vmul.f32 %v2432_v33, %v9429_v62  ;;  %v806_v41 = vrot.slane %v11139_v46, %v8981_v23  ;;  %v2072_v31 = vadd.f32 %v1940_v49, %v1061_v56 }
 0x1f4   : > { %v554_v2 = vrot.slane %v11198_v60, %v8975_v19  ;;  %v1697_v18 = vrot.slane %v11124_v20, %v8979_v22  ;;  %v4287_v21 = vpack.c.bf16 %v4155_v54, %v4155_v54  ;;  %v4088_v52 = vmax.f32 %v3956_v15, 0.0 }
 0x1f5   : > { %v2006_v35 = vmul.f32 %v1685_v14, %v9489_v16  ;;  %v2696_v58 = vrot.slane %v11148_v57, %v8981_v23  ;;  %v4154_v45 = vmax.f32 %v4022_v61, 0.0  ;;  %v1943_v10 = vmul.f32 %v1433_v32, %v9489_v16  ;;  %v8608_v32 = vld [vmem:[%s8952_s30 + $0xbc] ss:$528 sps:$4 sm:$0xff]  }
 0x1f6   : > { %v2444_v50 = vrot.slane %v11209_v59, %v8975_v19  ;;  %v818_v38 = vrot.slane %v11139_v46, %v8979_v22  ;;  %v4091_v29 = vmax.f32 %v3959_v13, 0.0  ;;  %v4025_v30 = vadd.f32 %v3707_v11, %v3150_v37  ;;  %v8611_v37 = vld [vmem:[%s8952_s30 + $0x1c4] ss:$528 sps:$4 sm:$0xff]  }
 0x1f7   : > { %v3439_v42 = vrot.slane %v10979_v53, %v9061_v4  ;;  %v1127_v9 = vmul.f32 %v806_v41, %v9427_v5  ;;  %v3083_v34 = vadd.f32 %v2951_v8, %v2072_v31  ;;  %v1064_v36 = vmul.f32 %v554_v2, %v9427_v5  ;;  %5973 = vmatmul.mubr.bf16.vlgmr.msra.gmra.mrb[0].mxu1 %v11158_v1 }
 0x1f8   : > { %v2009_v0 = vmul.f32 %v1697_v18, %v9489_v16  ;;  %v2708_v12 = vrot.slane %v11148_v57, %v8979_v22  ;;  %v11236_v33 = vpack.c.bf16 %v4088_v52, %v4088_v52  ;;  %v3017_v6 = vmul.f32 %v2696_v58, %v9429_v62  ;;  %5981 = vmatpush1.bf16.xpose.msra.mxu1 %v8600_v17 }
 0x1f9   : > { %v2138_v28 = vadd.f32 %v2006_v35, %v1127_v9  ;;  %v1429_v53 = vrot.slane %v11186_v7, %v8981_v23  ;;  %v2075_v15 = vadd.f32 %v1943_v10, %v1064_v36  ;;  %v2954_v61 = vmul.f32 %v2444_v50, %v9429_v62  ;;  %6012 = vmatprep.mubr.bf16.mxu1 %v11188_v55 }
 0x1fa   : > { %v11244_v49 = vor.u32 %v7982_v47, %v7981_v44  ;;  %v1130_v54 = vmul.f32 %v818_v38, %v9427_v5  ;;  %v11247_v11 = vpack.c.bf16 %v4154_v45, %v4154_v45  ;;  %v4157_v56 = vmax.f32 %v4025_v30, 0.0  ;;  %7293 = vmatmul.mubr.bf16.vlgmr.msra.gmra.mrb[0].mxu0 %v11182_v24  ;;  %6020 = vmatprep.subr.bf16.mxu1 %v8608_v32  ;;  %v8609_v32 = vld [vmem:[%s8952_s30 + $0x1c0] ss:$528 sps:$4 sm:$0xff]  }
 0x1fb   : > { %v3703_v14 = vrot.slane %v11174_v40, %v8981_v23  ;;  %v550_v13 = vrot.slane %v11198_v60, %v8981_v23  ;;  %v11255_v8 = vpack.c.bf16 %v4091_v29, %v4091_v29  ;;  %v11257_v41 = vadd.f32 %v3439_v42, %v3083_v34  ;;  %7301 = vmatpush1.bf16.xpose.msra.mxu0 %v8603_v63 }
 0x1fc   : > { %v2141_v31 = vadd.f32 %v2009_v0, %v1130_v54  ;;  %v3020_v2 = vmul.f32 %v2708_v12, %v9429_v62  ;;  %v3149_v18 = vadd.f32 %v3017_v6, %v2138_v28  ;;  %v1942_v52 = vmul.f32 %v1429_v53, %v9489_v16  ;;  %7332 = vmatprep.mubr.bf16.mxu0 %v4287_v21 }
 0x1fd   : > { %v2440_v35 = vrot.slane %v11209_v59, %v8981_v23  ;;  %v3086_v58 = vadd.f32 %v2954_v61, %v2075_v15  ;;  %v3451_v45 = vrot.slane %v11244_v49, %v8975_v19  ;;  %v1693_v10 = vrot.slane %v11124_v20, %v8985_v25  ;;  %7340 = vmatprep.subr.bf16.mxu0 %v8611_v37 }
 0x1fe   : > { %v4289_v1 = vpack.c.bf16 %v4157_v56, %v4157_v56  ;;  %v3715_v24 = vrot.slane %v11174_v40, %v8979_v22  ;;  %v1063_v50 = vmul.f32 %v550_v13, %v9427_v5  ;;  %v3152_v44 = vadd.f32 %v3020_v2, %v2141_v31  ;;  %v8606_v13 = vld [vmem:[%s8952_s30 + $0xb8] ss:$528 sps:$4 sm:$0xff]  }
 0x1ff   : > { %v814_v38 = vrot.slane %v11139_v46, %v8985_v25  ;;  %v1441_v29 = vrot.slane %v11186_v7, %v8979_v22  ;;  %v11277_v30 = vadd.f32 %v3703_v14, %v3149_v18  ;;  %v2953_v55 = vmul.f32 %v2440_v35, %v9429_v62 }
 0x200   : > { %v2074_v42 = vadd.f32 %v1942_v52, %v1063_v50  ;;  %v1705_v21 = vrot.slane %v11124_v20, %v8987_v26  ;;  %v11282_v9 = vadd.f32 %v3451_v45, %v3086_v58  ;;  %v2008_v47 = vmul.f32 %v1693_v10, %v9489_v16  ;;  %v8614_v10 = vld [vmem:[%s8952_s30 + $0xc4] ss:$528 sps:$4 sm:$0xff]  }
 0x201   : > { %v2704_v34 = vrot.slane %v11148_v57, %v8985_v25  ;;  %v562_v36 = vrot.slane %v11198_v60, %v8979_v22  ;;  %v3447_v0 = vrot.slane %v11244_v49, %v8981_v23  ;;  %v3711_v12 = vrot.slane %v11174_v40, %v8985_v25 }
 0x202   : > { %v826_v28 = vrot.slane %v11139_v46, %v8987_v26  ;;  %v1437_v6 = vrot.slane %v11186_v7, %v8985_v25  ;;  %v11297_v53 = vadd.f32 %v3715_v24, %v3152_v44  ;;  %v1129_v17 = vmul.f32 %v814_v38, %v9427_v5  ;;  %v8617_v24 = vld [vmem:[%s8952_s30 + $0x1cc] ss:$528 sps:$4 sm:$0xff]  }
 0x203   : > { %v1945_v63 = vmul.f32 %v1441_v29, %v9489_v16  ;;  %v2452_v15 = vrot.slane %v11209_v59, %v8979_v22  ;;  %v3085_v61 = vadd.f32 %v2953_v55, %v2074_v42  ;;  %v2011_v54 = vmul.f32 %v1705_v21, %v9489_v16  ;;  %6013 = vmatmul.mubr.bf16.vlgmr.msra.gmra.mrb[0].mxu1 %v11236_v33 }
 0x204   : > { %v2716_v56 = vrot.slane %v11148_v57, %v8987_v26  ;;  %v558_v14 = vrot.slane %v11198_v60, %v8985_v25  ;;  %v2140_v37 = vadd.f32 %v2008_v47, %v1129_v17  ;;  %v3019_v31 = vmul.f32 %v2704_v34, %v9429_v62  ;;  %6021 = vmatpush1.bf16.xpose.msra.mxu1 %v8606_v13 }
 0x205   : > { %v1066_v2 = vmul.f32 %v562_v36, %v9427_v5  ;;  %v1701_v18 = vrot.slane %v11124_v20, %v8989_v27  ;;  %v1132_v52 = vmul.f32 %v826_v28, %v9427_v5  ;;  %v1944_v35 = vmul.f32 %v1437_v6, %v9489_v16  ;;  %6052 = vmatprep.mubr.bf16.mxu1 %v11255_v8 }
 0x206   : > { %v2448_v58 = vrot.slane %v11209_v59, %v8985_v25  ;;  %v822_v45 = vrot.slane %v11139_v46, %v8989_v27  ;;  %v2956_v44 = vmul.f32 %v2452_v15, %v9429_v62  ;;  %v3459_v38 = vrot.slane %v11244_v49, %v8979_v22  ;;  %7333 = vmatmul.mubr.bf16.vlgmr.msra.gmra.mrb[0].mxu0 %v11247_v11 }
 0x207   : > { %v2077_v50 = vadd.f32 %v1945_v63, %v1066_v2  ;;  %v1449_v29 = vrot.slane %v11186_v7, %v8987_v26  ;;  %v2143_v42 = vadd.f32 %v2011_v54, %v1132_v52  ;;  %v3022_v55 = vmul.f32 %v2716_v56, %v9429_v62  ;;  %7341 = vmatpush1.bf16.xpose.msra.mxu0 %v8609_v32 }
 0x208   : > { %v1065_v21 = vmul.f32 %v558_v14, %v9427_v5  ;;  %v2010_v47 = vmul.f32 %v1701_v18, %v9489_v16  ;;  %v2712_v34 = vrot.slane %v11148_v57, %v8989_v27  ;;  %v570_v36 = vrot.slane %v11198_v60, %v8987_v26  ;;  %7372 = vmatprep.mubr.bf16.mxu0 %v4289_v1 }
 0x209   : > { %v2955_v11 = vmul.f32 %v2448_v58, %v9429_v62  ;;  %v1131_v28 = vmul.f32 %v822_v45, %v9427_v5  ;;  %6060 = vmatprep.subr.bf16.mxu1 %v8614_v10  ;;  %7380 = vmatprep.subr.bf16.mxu0 %v8617_v24  ;;  %v4090_v6 = vmax.f32 %v11257_v41, 0.0  ;;  %v1947_v17 = vmul.f32 %v1449_v29, %v9489_v16 }
 0x20a   : > { %v2076_v33 = vadd.f32 %v1944_v35, %v1065_v21  ;;  %v2460_v63 = vrot.slane %v11209_v59, %v8987_v26  ;;  %v1713_v15 = vrot.slane %v11124_v20, %v9059_v3  ;;  %v3151_v54 = vadd.f32 %v3019_v31, %v2140_v37 }
 0x20b   : > { %v3088_v8 = vadd.f32 %v2956_v44, %v2077_v50  ;;  %v3154_v1 = vadd.f32 %v3022_v55, %v2143_v42  ;;  %v3723_v56 = vrot.slane %v11174_v40, %v8987_v26  ;;  %v2142_v14 = vadd.f32 %v2010_v47, %v1131_v28  ;;  %v8612_v50 = vld [vmem:[%s8952_s30 + $0xc0] ss:$528 sps:$4 sm:$0xff]   ;;  %v8615_v44 = vld [vmem:[%s8952_s30 + $0x1c8] ss:$528 sps:$4 sm:$0xff]  }
 0x20c   : > { %v3021_v13 = vmul.f32 %v2712_v34, %v9429_v62  ;;  %v1068_v41 = vmul.f32 %v570_v36, %v9427_v5  ;;  %v834_v32 = vrot.slane %v11139_v46, %v9059_v3  ;;  %v4156_v2 = vmax.f32 %v11277_v30, 0.0 }
 0x20d   : > { %v4093_v18 = vmax.f32 %v11282_v9, 0.0  ;;  %v3087_v37 = vadd.f32 %v2955_v11, %v2076_v33  ;;  %v3455_v31 = vrot.slane %v11244_v49, %v8985_v25  ;;  %v2958_v35 = vmul.f32 %v2460_v63, %v9429_v62  ;;  %v8620_v33 = vld [vmem:[%s8952_s30 + $0xcc] ss:$528 sps:$4 sm:$0xff]  }
 0x20e   : > { %v2079_v52 = vadd.f32 %v1947_v17, %v1068_v41  ;;  %v2013_v58 = vmul.f32 %v1713_v15, %v9489_v16  ;;  %v2724_v45 = vrot.slane %v11148_v57, %v9059_v3  ;;  %v4159_v10 = vmax.f32 %v11297_v53, 0.0 }
 0x20f   : > { %v3960_v30 = vadd.f32 %v3447_v0, %v3085_v61  ;;  %v4026_v9 = vadd.f32 %v3711_v12, %v3151_v54  ;;  %v3963_v24 = vadd.f32 %v3459_v38, %v3088_v8  ;;  %v4029_v29 = vadd.f32 %v3723_v56, %v3154_v1  ;;  %v8623_v0 = vld [vmem:[%s8952_s30 + $0x1d4] ss:$528 sps:$4 sm:$0xff]  }
 0x210   : > { %v3153_v42 = vadd.f32 %v3021_v13, %v2142_v14  ;;  %v3719_v55 = vrot.slane %v11174_v40, %v8989_v27  ;;  %v1134_v21 = vmul.f32 %v834_v32, %v9427_v5  ;;  %v4222_v47 = vpack.c.bf16 %v4090_v6, %v4090_v6  ;;  %v7933_v32 = vld [vmem:[%s8946_s11 + $0x3c1] ss:$8 sm:$0xf] }
 0x211   : > { %v4288_v53 = vpack.c.bf16 %v4156_v2, %v4156_v2  ;;  %v4225_v34 = vpack.c.bf16 %v4093_v18, %v4093_v18  ;;  %v3962_v36 = vadd.f32 %v3455_v31, %v3087_v37  ;;  %v3090_v61 = vadd.f32 %v2958_v35, %v2079_v52  ;;  %v7934_v2 = vld [vmem:[%s8946_s11 + $0x3c1] ss:$8 sm:$0xf0]  ;;  %v7900_v35 = vld [vmem:[%s8946_s11 + $0x3c0] ss:$8 sm:$0xf] }
 0x212   : > { %v3467_v12 = vrot.slane %v11244_v49, %v8987_v26  ;;  %v2145_v38 = vadd.f32 %v2013_v58, %v1134_v21  ;;  %v3024_v11 = vmul.f32 %v2724_v45, %v9429_v62  ;;  %6053 = vmatmul.mubr.bf16.vlgmr.msra.gmra.mrb[0].mxu1 %v4222_v47  ;;  %v4291_v28 = vpack.c.bf16 %v4159_v10, %v4159_v10 }
 0x213   : > { %7373 = vmatmul.mubr.bf16.vlgmr.msra.gmra.mrb[0].mxu0 %v4288_v53  ;;  %v4092_v17 = vmax.f32 %v3960_v30, 0.0  ;;  %v4158_v63 = vmax.f32 %v4026_v9, 0.0  ;;  %v4095_v15 = vmax.f32 %v3963_v24, 0.0  ;;  %6061 = vmatpush1.bf16.xpose.msra.mxu1 %v8612_v50  ;;  %v4161_v6 = vmax.f32 %v4029_v29, 0.0 }
 0x214   : > { %7381 = vmatpush1.bf16.xpose.msra.mxu0 %v8615_v44  ;;  %v4028_v54 = vadd.f32 %v3719_v55, %v3153_v42  ;;  %v1445_v8 = vrot.slane %v11186_v7, %v8989_v27  ;;  %6092 = vmatprep.mubr.bf16.mxu1 %v4225_v34  ;;  %v4094_v1 = vmax.f32 %v3962_v36, 0.0  ;;  %v3731_v56 = vrot.slane %v11174_v40, %v9059_v3  ;;  %v7901_v9 = vld [vmem:[%s8946_s11 + $0x3c0] ss:$8 sm:$0xf0] }
 0x215   : > { %7412 = vmatprep.mubr.bf16.mxu0 %v4291_v28  ;;  %6100 = vmatprep.subr.bf16.mxu1 %v8620_v33  ;;  %v3965_v14 = vadd.f32 %v3467_v12, %v3090_v61  ;;  %v3156_v13 = vadd.f32 %v3024_v11, %v2145_v38  ;;  %v566_v41 = vrot.slane %v11198_v60, %v8989_v27  ;;  %v7966_v29 = vld [vmem:[%s8946_s11 + $0x3c2] ss:$8 sm:$0xf] }
 0x216   : > { %7420 = vmatprep.subr.bf16.mxu0 %v8623_v0  ;;  %v4224_v18 = vpack.c.bf16 %v4092_v17, %v4092_v17  ;;  %v4290_v37 = vpack.c.bf16 %v4158_v63, %v4158_v63  ;;  %v4227_v31 = vpack.c.bf16 %v4095_v15, %v4095_v15  ;;  %v1709_v52 = vrot.slane %v11124_v20, %v9061_v4  ;;  %v7967_v53 = vld [vmem:[%s8946_s11 + $0x3c2] ss:$8 sm:$0xf0] }
 0x217   : > { %v4293_v58 = vpack.c.bf16 %v4161_v6, %v4161_v6  ;;  %v4160_v45 = vmax.f32 %v4028_v54, 0.0  ;;  %v1946_v10 = vmul.f32 %v1445_v8, %v9489_v16  ;;  %v2456_v30 = vrot.slane %v11209_v59, %v8989_v27  ;;  %v8618_v0 = vld [vmem:[%s8952_s30 + $0xc8] ss:$528 sps:$4 sm:$0xff]   ;;  %v8621_v61 = vld [vmem:[%s8952_s30 + $0x1d0] ss:$528 sps:$4 sm:$0xff]  }
 0x218   : > { %v11391_v24 = vpack.c.bf16 %v4094_v1, %v4094_v1  ;;  %v830_v50 = vrot.slane %v11139_v46, %v9061_v4  ;;  %v1457_v20 = vrot.slane %v11186_v7, %v9059_v3  ;;  %v11397_v44 = vor.u32 %v7934_v2, %v7933_v32  ;;  %v7917_v6 = vld [vmem:[%s8946_s11 + $0x1c1] ss:$8 sm:$0xf]  ;;  %v8626_v8 = vld [vmem:[%s8952_s30 + $0xd4] ss:$528 sps:$4 sm:$0xff]  }
 0x219   : > { %v4097_v42 = vmax.f32 %v3965_v14, 0.0  ;;  %v4031_v55 = vadd.f32 %v3731_v56, %v3156_v13  ;;  %v1067_v21 = vmul.f32 %v566_v41, %v9427_v5  ;;  %v2720_v47 = vrot.slane %v11148_v57, %v9061_v4  ;;  %v7918_v54 = vld [vmem:[%s8946_s11 + $0x1c1] ss:$8 sm:$0xf0]  ;;  %v8629_v1 = vld [vmem:[%s8952_s30 + $0x1dc] ss:$528 sps:$4 sm:$0xff]  }
 0x21a   : > { %v3463_v34 = vrot.slane %v11244_v49, %v8989_v27  ;;  %v2012_v46 = vmul.f32 %v1709_v52, %v9489_v16  ;;  %v578_v36 = vrot.slane %v11198_v60, %v9059_v3  ;;  %v11409_v33 = vor.u32 %v7901_v9, %v7900_v35  ;;  %v7884_v35 = vld [vmem:[%s8946_s11 + $0x1c0] ss:$8 sm:$0xf]  ;;  %v7999_v9 = vld [vmem:[%s8946_s11 + $0x3c3] ss:$8 sm:$0xf] }
 0x21b   : > { %v11413_v12 = vpack.c.bf16 %v4160_v45, %v4160_v45  ;;  %v2078_v57 = vadd.f32 %v1946_v10, %v1067_v21  ;;  %v2957_v38 = vmul.f32 %v2456_v30, %v9429_v62  ;;  %v2468_v11 = vrot.slane %v11209_v59, %v9059_v3  ;;  %v7885_v45 = vld [vmem:[%s8946_s11 + $0x1c0] ss:$8 sm:$0xf0] }
 0x21c   : > { %v1133_v28 = vmul.f32 %v830_v50, %v9427_v5  ;;  %v1949_v17 = vmul.f32 %v1457_v20, %v9489_v16  ;;  %v1721_v63 = vrot.slane %v11397_v44, %v8975_v19  ;;  %v11422_v15 = vor.u32 %v7967_v53, %v7966_v29  ;;  %v8000_v50 = vld [vmem:[%s8946_s11 + $0x3c3] ss:$8 sm:$0xf0]  ;;  %v7950_v29 = vld [vmem:[%s8946_s11 + $0x1c2] ss:$8 sm:$0xf] }
 0x21d   : > { %v11428_v56 = vpack.c.bf16 %v4097_v42, %v4097_v42  ;;  %v4163_v14 = vmax.f32 %v4031_v55, 0.0  ;;  %v3023_v13 = vmul.f32 %v2720_v47, %v9429_v62  ;;  %v3727_v41 = vrot.slane %v11174_v40, %v9061_v4  ;;  %v7951_v42 = vld [vmem:[%s8946_s11 + $0x1c2] ss:$8 sm:$0xf0] }
 0x21e   : > { %6093 = vmatmul.mubr.bf16.vlgmr.msra.gmra.mrb[0].mxu1 %v4224_v18  ;;  %v2144_v32 = vadd.f32 %v2012_v46, %v1133_v28  ;;  %v1070_v2 = vmul.f32 %v578_v36, %v9427_v5  ;;  %v842_v52 = vrot.slane %v11409_v33, %v8975_v19  ;;  %v3089_v10 = vadd.f32 %v2957_v38, %v2078_v57 }
 0x21f   : > { %7413 = vmatmul.mubr.bf16.vlgmr.msra.gmra.mrb[0].mxu0 %v4290_v37  ;;  %6101 = vmatpush1.bf16.xpose.msra.mxu1 %v8618_v0  ;;  %v2960_v30 = vmul.f32 %v2468_v11, %v9429_v62  ;;  %v11441_v40 = vor.u32 %v7918_v54, %v7917_v6  ;;  %v2015_v37 = vmul.f32 %v1721_v63, %v9489_v16 }
 0x220   : > { %7421 = vmatpush1.bf16.xpose.msra.mxu0 %v8621_v61  ;;  %6132 = vmatprep.mubr.bf16.mxu1 %v4227_v31  ;;  %v2081_v18 = vadd.f32 %v1949_v17, %v1070_v2  ;;  %v2732_v20 = vrot.slane %v11422_v15, %v8975_v19  ;;  %v4295_v55 = vpack.c.bf16 %v4163_v14, %v4163_v14  ;;  %v8624_v14 = vld [vmem:[%s8952_s30 + $0xd0] ss:$528 sps:$4 sm:$0xff]  }
 0x221   : > { %7452 = vmatprep.mubr.bf16.mxu0 %v4293_v58  ;;  %6140 = vmatprep.subr.bf16.mxu1 %v8626_v8  ;;  %v1453_v21 = vrot.slane %v11186_v7, %v9061_v4  ;;  %v11450_v47 = vor.u32 %v7885_v45, %v7884_v35  ;;  %v3155_v53 = vadd.f32 %v3023_v13, %v2144_v32  ;;  %v8627_v13 = vld [vmem:[%s8952_s30 + $0x1d8] ss:$528 sps:$4 sm:$0xff]  }
 0x222   : > { %7460 = vmatprep.subr.bf16.mxu0 %v8629_v1  ;;  %v3475_v31 = vrot.slane %v11244_v49, %v9059_v3  ;;  %v1136_v58 = vmul.f32 %v842_v52, %v9427_v5  ;;  %v1717_v46 = vrot.slane %v11397_v44, %v8981_v23  ;;  %v11457_v36 = vor.u32 %v8000_v50, %v7999_v9  ;;  %v8632_v50 = vld [vmem:[%s8952_s30 + $0xdc] ss:$528 sps:$4 sm:$0xff]  }
 0x223   : > { %v574_v0 = vrot.slane %v11198_v60, %v9061_v4  ;;  %v1465_v7 = vrot.slane %v11441_v40, %v8975_v19  ;;  %v11463_v61 = vor.u32 %v7951_v42, %v7950_v29  ;;  %v3092_v57 = vadd.f32 %v2960_v30, %v2081_v18  ;;  %v7984_v30 = vld [vmem:[%s8946_s11 + $0x1c3] ss:$8 sm:$0xf0]  ;;  %v8635_v18 = vld [vmem:[%s8952_s30 + $0x1e4] ss:$528 sps:$4 sm:$0xff]  }
 0x224   : > { %v2147_v38 = vadd.f32 %v2015_v37, %v1136_v58  ;;  %v3026_v11 = vmul.f32 %v2732_v20, %v9429_v62  ;;  %v838_v28 = vrot.slane %v11409_v33, %v8981_v23  ;;  %v1948_v17 = vmul.f32 %v1453_v21, %v9489_v16 }
 0x225   : > { %v2464_v63 = vrot.slane %v11209_v59, %v9061_v4  ;;  %v2728_v60 = vrot.slane %v11422_v15, %v8981_v23  ;;  %v586_v6 = vrot.slane %v11450_v47, %v8975_v19  ;;  %v3964_v54 = vadd.f32 %v3463_v34, %v3089_v10  ;;  %v7983_v10 = vld [vmem:[%s8946_s11 + $0x1c3] ss:$8 sm:$0xf] }
 0x226   : > { %v4030_v8 = vadd.f32 %v3727_v41, %v3155_v53  ;;  %v2014_v1 = vmul.f32 %v1717_v46, %v9489_v16  ;;  %v1729_v59 = vrot.slane %v11397_v44, %v8979_v22  ;;  %v3739_v32 = vrot.slane %v11457_v36, %v8975_v19 }
 0x227   : > { %v1069_v2 = vmul.f32 %v574_v0, %v9427_v5  ;;  %v1951_v52 = vmul.f32 %v1465_v7, %v9489_v16  ;;  %v2476_v34 = vrot.slane %v11463_v61, %v8975_v19  ;;  %v3967_v35 = vadd.f32 %v3475_v31, %v3092_v57 }
 0x228   : > { %v3158_v41 = vadd.f32 %v3026_v11, %v2147_v38  ;;  %v1135_v45 = vmul.f32 %v838_v28, %v9427_v5  ;;  %v850_v9 = vrot.slane %v11409_v33, %v8979_v22  ;;  %v2959_v20 = vmul.f32 %v2464_v63, %v9429_v62 }
 0x229   : > { %v2080_v37 = vadd.f32 %v1948_v17, %v1069_v2  ;;  %v3025_v29 = vmul.f32 %v2728_v60, %v9429_v62  ;;  %v1072_v42 = vmul.f32 %v586_v6, %v9427_v5  ;;  %v2017_v53 = vmul.f32 %v1729_v59, %v9489_v16 }
 0x22a   : > { %6133 = vmatmul.mubr.bf16.vlgmr.msra.gmra.mrb[0].mxu1 %v11391_v24  ;;  %v2146_v21 = vadd.f32 %v2014_v1, %v1135_v45  ;;  %v2740_v31 = vrot.slane %v11422_v15, %v8979_v22  ;;  %v4096_v58 = vmax.f32 %v3964_v54, 0.0  ;;  %v2962_v0 = vmul.f32 %v2476_v34, %v9429_v62 }
 0x22b   : > { %7453 = vmatmul.mubr.bf16.vlgmr.msra.gmra.mrb[0].mxu0 %v11413_v12  ;;  %6141 = vmatpush1.bf16.xpose.msra.mxu1 %v8624_v14  ;;  %v2083_v46 = vadd.f32 %v1951_v52, %v1072_v42  ;;  %v11505_v7 = vor.u32 %v7984_v30, %v7983_v10  ;;  %v4162_v24 = vmax.f32 %v4030_v8, 0.0  ;;  %v4033_v57 = vadd.f32 %v3739_v32, %v3158_v41  ;;  %v8630_v30 = vld [vmem:[%s8952_s30 + $0xd8] ss:$528 sps:$4 sm:$0xff]  }
 0x22c   : > { %7461 = vmatpush1.bf16.xpose.msra.mxu0 %v8627_v13  ;;  %6172 = vmatprep.mubr.bf16.mxu1 %v11428_v56  ;;  %v3471_v12 = vrot.slane %v11244_v49, %v9061_v4  ;;  %v1138_v38 = vmul.f32 %v850_v9, %v9427_v5  ;;  %v3091_v11 = vadd.f32 %v2959_v20, %v2080_v37  ;;  %v4099_v59 = vmax.f32 %v3967_v35, 0.0  ;;  %v8633_v9 = vld [vmem:[%s8952_s30 + $0x1e0] ss:$528 sps:$4 sm:$0xff]  }
 0x22d   : > { %7492 = vmatprep.mubr.bf16.mxu0 %v4295_v55  ;;  %6180 = vmatprep.subr.bf16.mxu1 %v8632_v50  ;;  %v3735_v28 = vrot.slane %v11457_v36, %v8981_v23  ;;  %v1461_v17 = vrot.slane %v11441_v40, %v8981_v23  ;;  %v3157_v63 = vadd.f32 %v3025_v29, %v2146_v21  ;;  %v4165_v14 = vmax.f32 %v4033_v57, 0.0 }
 0x22e   : > { %7500 = vmatprep.subr.bf16.mxu0 %v8635_v18  ;;  %v2149_v60 = vadd.f32 %v2017_v53, %v1138_v38  ;;  %v3028_v56 = vmul.f32 %v2740_v31, %v9429_v62  ;;  %v582_v55 = vrot.slane %v11450_v47, %v8981_v23  ;;  %v4228_v6 = vpack.c.bf16 %v4096_v58, %v4096_v58  ;;  %v8638_v31 = vld [vmem:[%s8952_s30 + $0xe4] ss:$528 sps:$4 sm:$0xff]   ;;  %v8641_v58 = vld [vmem:[%s8952_s30 + $0x1ec] ss:$528 sps:$4 sm:$0xff]  }
 0x22f   : > { %v3094_v49 = vadd.f32 %v2962_v0, %v2083_v46  ;;  %v3483_v54 = vrot.slane %v11505_v7, %v8975_v19  ;;  %v1725_v8 = vrot.slane %v11397_v44, %v8985_v25  ;;  %v4294_v1 = vpack.c.bf16 %v4162_v24, %v4162_v24 }
 0x230   : > { %v2472_v13 = vrot.slane %v11463_v61, %v8981_v23  ;;  %v3966_v32 = vadd.f32 %v3471_v12, %v3091_v11  ;;  %v1950_v2 = vmul.f32 %v1461_v17, %v9489_v16  ;;  %v846_v52 = vrot.slane %v11409_v33, %v8985_v25 }
 0x231   : > { %v1473_v34 = vrot.slane %v11441_v40, %v8979_v22  ;;  %v4032_v41 = vadd.f32 %v3735_v28, %v3157_v63  ;;  %v3160_v45 = vadd.f32 %v3028_v56, %v2149_v60  ;;  %v3747_v35 = vrot.slane %v11457_v36, %v8979_v22 }
 0x232   : > { %v1071_v10 = vmul.f32 %v582_v55, %v9427_v5  ;;  %v3969_v50 = vadd.f32 %v3483_v54, %v3094_v49  ;;  %v2016_v18 = vmul.f32 %v1725_v8, %v9489_v16  ;;  %v2736_v37 = vrot.slane %v11422_v15, %v8985_v25 }
 0x233   : > { %v594_v20 = vrot.slane %v11450_v47, %v8979_v22  ;;  %v4231_v29 = vpack.c.bf16 %v4099_v59, %v4099_v59  ;;  %v4297_v42 = vpack.c.bf16 %v4165_v14, %v4165_v14  ;;  %v2961_v21 = vmul.f32 %v2472_v13, %v9429_v62 }
 0x234   : > { %v1737_v53 = vrot.slane %v11397_v44, %v8987_v26  ;;  %v2082_v46 = vadd.f32 %v1950_v2, %v1071_v10  ;;  %v1137_v0 = vmul.f32 %v846_v52, %v9427_v5  ;;  %v1953_v24 = vmul.f32 %v1473_v34, %v9489_v16 }
 0x235   : > { %v2484_v57 = vrot.slane %v11463_v61, %v8979_v22  ;;  %v4098_v12 = vmax.f32 %v3966_v32, 0.0  ;;  %v4164_v38 = vmax.f32 %v4032_v41, 0.0  ;;  %v4035_v11 = vadd.f32 %v3747_v35, %v3160_v45 }
 0x236   : > { %6173 = vmatmul.mubr.bf16.vlgmr.msra.gmra.mrb[0].mxu1 %v4228_v6  ;;  %v858_v28 = vrot.slane %v11409_v33, %v8987_v26  ;;  %v4101_v17 = vmax.f32 %v3969_v50, 0.0  ;;  %v2148_v63 = vadd.f32 %v2016_v18, %v1137_v0  ;;  %v3027_v60 = vmul.f32 %v2736_v37, %v9429_v62 }
 0x237   : > { %7493 = vmatmul.mubr.bf16.vlgmr.msra.gmra.mrb[0].mxu0 %v4294_v1  ;;  %6181 = vmatpush1.bf16.xpose.msra.mxu1 %v8630_v30  ;;  %v1074_v56 = vmul.f32 %v594_v20, %v9427_v5  ;;  %v3479_v55 = vrot.slane %v11505_v7, %v8981_v23  ;;  %v2019_v6 = vmul.f32 %v1737_v53, %v9489_v16  ;;  %v4167_v14 = vmax.f32 %v4035_v11, 0.0  ;;  %v8636_v53 = vld [vmem:[%s8952_s30 + $0xe0] ss:$528 sps:$4 sm:$0xff]  }
 0x238   : > { %7501 = vmatpush1.bf16.xpose.msra.mxu0 %v8633_v9  ;;  %6212 = vmatprep.mubr.bf16.mxu1 %v4231_v29  ;;  %v2748_v49 = vrot.slane %v11422_v15, %v8987_v26  ;;  %v3093_v54 = vadd.f32 %v2961_v21, %v2082_v46  ;;  %v2964_v1 = vmul.f32 %v2484_v57, %v9429_v62 }
 0x239   : > { %7532 = vmatprep.mubr.bf16.mxu0 %v4297_v42  ;;  %6220 = vmatprep.subr.bf16.mxu1 %v8638_v31  ;;  %v2085_v8 = vadd.f32 %v1953_v24, %v1074_v56  ;;  %v4230_v59 = vpack.c.bf16 %v4098_v12, %v4098_v12  ;;  %v1140_v13 = vmul.f32 %v858_v28, %v9427_v5  ;;  %v8639_v31 = vld [vmem:[%s8952_s30 + $0x1e8] ss:$528 sps:$4 sm:$0xff]   ;;  %v8644_v28 = vld [vmem:[%s8952_s30 + $0xec] ss:$528 sps:$4 sm:$0xff]  }
 0x23a   : > { %7540 = vmatprep.subr.bf16.mxu0 %v8641_v58  ;;  %v1469_v32 = vrot.slane %v11441_v40, %v8985_v25  ;;  %v4296_v2 = vpack.c.bf16 %v4164_v38, %v4164_v38  ;;  %v4233_v52 = vpack.c.bf16 %v4101_v17, %v4101_v17  ;;  %v3159_v34 = vadd.f32 %v3027_v60, %v2148_v63  ;;  %v8647_v17 = vld [vmem:[%s8952_s30 + $0x1f4] ss:$528 sps:$4 sm:$0xff]  }
 0x23b   : > { %v3743_v41 = vrot.slane %v11457_v36, %v8985_v25  ;;  %v2151_v45 = vadd.f32 %v2019_v6, %v1140_v13  ;;  %v3030_v35 = vmul.f32 %v2748_v49, %v9429_v62  ;;  %v590_v10 = vrot.slane %v11450_v47, %v8985_v25 }
 0x23c   : > { %v1733_v30 = vrot.slane %v11397_v44, %v8989_v27  ;;  %v3968_v9 = vadd.f32 %v3479_v55, %v3093_v54  ;;  %v3096_v50 = vadd.f32 %v2964_v1, %v2085_v8  ;;  %v3491_v18 = vrot.slane %v11505_v7, %v8979_v22 }
 0x23d   : > { %v1481_v37 = vrot.slane %v11441_v40, %v8987_v26  ;;  %v4299_v20 = vpack.c.bf16 %v4167_v14, %v4167_v14  ;;  %v1952_v29 = vmul.f32 %v1469_v32, %v9489_v16  ;;  %v2480_v42 = vrot.slane %v11463_v61, %v8985_v25 }
 0x23e   : > { %v854_v21 = vrot.slane %v11409_v33, %v8989_v27  ;;  %v4034_v58 = vadd.f32 %v3743_v41, %v3159_v34  ;;  %v3755_v46 = vrot.slane %v11457_v36, %v8987_v26  ;;  %v602_v0 = vrot.slane %v11450_v47, %v8987_v26 }
 0x23f   : > { %v1745_v24 = vrot.slane %v11397_v44, %v9059_v3  ;;  %v3162_v57 = vadd.f32 %v3030_v35, %v2151_v45  ;;  %v1073_v12 = vmul.f32 %v590_v10, %v9427_v5  ;;  %v2018_v38 = vmul.f32 %v1733_v30, %v9489_v16 }
 0x240   : > { %v2744_v11 = vrot.slane %v11422_v15, %v8989_v27  ;;  %v3971_v63 = vadd.f32 %v3491_v18, %v3096_v50  ;;  %v1955_v60 = vmul.f32 %v1481_v37, %v9489_v16  ;;  %v2492_v56 = vrot.slane %v11463_v61, %v8987_v26 }
 0x241   : > { %v866_v55 = vrot.slane %v11409_v33, %v9059_v3  ;;  %v4100_v6 = vmax.f32 %v3968_v9, 0.0  ;;  %v2084_v49 = vadd.f32 %v1952_v29, %v1073_v12  ;;  %v2963_v54 = vmul.f32 %v2480_v42, %v9429_v62 }
 0x242   : > { %6213 = vmatmul.mubr.bf16.vlgmr.msra.gmra.mrb[0].mxu1 %v4230_v59  ;;  %v1139_v8 = vmul.f32 %v854_v21, %v9427_v5  ;;  %v1076_v1 = vmul.f32 %v602_v0, %v9427_v5  ;;  %v2021_v14 = vmul.f32 %v1745_v24, %v9489_v16  ;;  %v2756_v13 = vrot.slane %v11422_v15, %v9059_v3 }
 0x243   : > { %7533 = vmatmul.mubr.bf16.vlgmr.msra.gmra.mrb[0].mxu0 %v4296_v2  ;;  %6221 = vmatpush1.bf16.xpose.msra.mxu1 %v8636_v53  ;;  %v4037_v32 = vadd.f32 %v3755_v46, %v3162_v57  ;;  %v3029_v2 = vmul.f32 %v2744_v11, %v9429_v62  ;;  %v2966_v41 = vmul.f32 %v2492_v56, %v9429_v62  ;;  %v4166_v10 = vmax.f32 %v4034_v58, 0.0  ;;  %v8645_v11 = vld [vmem:[%s8952_s30 + $0x1f0] ss:$528 sps:$4 sm:$0xff]  }
 0x244   : > { %7541 = vmatpush1.bf16.xpose.msra.mxu0 %v8639_v31  ;;  %6252 = vmatprep.mubr.bf16.mxu1 %v4233_v52  ;;  %v2150_v59 = vadd.f32 %v2018_v38, %v1139_v8  ;;  %v2087_v34 = vadd.f32 %v1955_v60, %v1076_v1  ;;  %v1142_v45 = vmul.f32 %v866_v55, %v9427_v5  ;;  %v4103_v30 = vmax.f32 %v3971_v63, 0.0  ;;  %v11624_v38 = vld [vmem:[%s8946_s11 + $0x401] ss:$8 sm:$0xf] }
 0x245   : > { %7572 = vmatprep.mubr.bf16.mxu0 %v4299_v20  ;;  %6260 = vmatprep.subr.bf16.mxu1 %v8644_v28  ;;  %v4232_v35 = vpack.c.bf16 %v4100_v6, %v4100_v6  ;;  %v1477_v9 = vrot.slane %v11441_v40, %v8989_v27  ;;  %v3095_v50 = vadd.f32 %v2963_v54, %v2084_v49  ;;  %v4169_v20 = vmax.f32 %v4037_v32, 0.0  ;;  %v11637_v6 = vld [vmem:[%s8946_s11 + $0x400] ss:$8 sm:$0xf]  ;;  %v8650_v49 = vld [vmem:[%s8952_s30 + $0xf4] ss:$528 sps:$4 sm:$0xff]  }
 0x246   : > { %7580 = vmatprep.subr.bf16.mxu0 %v8647_v17  ;;  %v3487_v52 = vrot.slane %v11505_v7, %v8985_v25  ;;  %v2153_v18 = vadd.f32 %v2021_v14, %v1142_v45  ;;  %v3032_v37 = vmul.f32 %v2756_v13, %v9429_v62  ;;  %v3751_v29 = vrot.slane %v11457_v36, %v8989_v27  ;;  %v8653_v54 = vld [vmem:[%s8952_s30 + $0x1fc] ss:$528 sps:$4 sm:$0xff]  }
 0x247   : > { %v598_v42 = vrot.slane %v11450_v47, %v8989_v27  ;;  %v1741_v21 = vrot.slane %v11397_v44, %v9061_v4  ;;  %v3161_v53 = vadd.f32 %v3029_v2, %v2150_v59  ;;  %v3098_v31 = vadd.f32 %v2966_v41, %v2087_v34  ;;  %v8642_v44 = vld [vmem:[%s8952_s30 + $0xe8] ss:$528 sps:$4 sm:$0xff]  }
 0x248   : > { %v3499_v58 = vrot.slane %v11505_v7, %v8987_v26  ;;  %v2488_v46 = vrot.slane %v11463_v61, %v8989_v27  ;;  %v4298_v0 = vpack.c.bf16 %v4166_v10, %v4166_v10  ;;  %v4235_v24 = vpack.c.bf16 %v4103_v30, %v4103_v30  ;;  %v11648_v2 = vld [vmem:[%s8946_s11 + $0x402] ss:$8 sm:$0xf] }
 0x249   : > { %v1954_v57 = vmul.f32 %v1477_v9, %v9489_v16  ;;  %v862_v12 = vrot.slane %v11409_v33, %v9061_v4  ;;  %v3970_v28 = vadd.f32 %v3487_v52, %v3095_v50  ;;  %v3164_v17 = vadd.f32 %v3032_v37, %v2153_v18 }
 0x24a   : > { %v3763_v26 = vrot.slane %v11457_v36, %v9059_v3  ;;  %v2752_v63 = vrot.slane %v11422_v15, %v9061_v4  ;;  %v4301_v60 = vpack.c.bf16 %v4169_v20, %v4169_v20  ;;  %v1075_v56 = vmul.f32 %v598_v42, %v9427_v5 }
 0x24b   : > { %v2020_v55 = vmul.f32 %v1741_v21, %v9489_v16  ;;  %v1489_v33 = vrot.slane %v11441_v40, %v9059_v3  ;;  %v4036_v8 = vadd.f32 %v3751_v29, %v3161_v53  ;;  %v3973_v1 = vadd.f32 %v3499_v58, %v3098_v31 }
 0x24c   : > { %v2965_v14 = vmul.f32 %v2488_v46, %v9429_v62  ;;  %v1753_v15 = vrot.slane %v11624_v38, %v8975_v19  ;;  %v2086_v13 = vadd.f32 %v1954_v57, %v1075_v56  ;;  %v1141_v32 = vmul.f32 %v862_v12, %v9427_v5 }
 0x24d   : > { %v610_v59 = vrot.slane %v11450_v47, %v9059_v3  ;;  %v4039_v34 = vadd.f32 %v3763_v26, %v3164_v17  ;;  %v3031_v41 = vmul.f32 %v2752_v63, %v9429_v62  ;;  %v874_v45 = vrot.slane %v11637_v6, %v8975_v19 }
 0x24e   : > { %6253 = vmatmul.mubr.bf16.vlgmr.msra.gmra.mrb[0].mxu1 %v4232_v35  ;;  %v2152_v35 = vadd.f32 %v2020_v55, %v1141_v32  ;;  %v1957_v10 = vmul.f32 %v1489_v33, %v9489_v16  ;;  %v2500_v30 = vrot.slane %v11463_v61, %v9059_v3  ;;  %v2023_v9 = vmul.f32 %v1753_v15, %v9489_v16 }
 0x24f   : > { %7573 = vmatmul.mubr.bf16.vlgmr.msra.gmra.mrb[0].mxu0 %v4298_v0  ;;  %6261 = vmatpush1.bf16.xpose.msra.mxu1 %v8642_v44  ;;  %v2764_v50 = vrot.slane %v11648_v2, %v8975_v19  ;;  %v4102_v52 = vmax.f32 %v3970_v28, 0.0  ;;  %v4168_v18 = vmax.f32 %v4036_v8, 0.0  ;;  %v3495_v37 = vrot.slane %v11505_v7, %v8989_v27  ;;  %v11668_v44 = vld [vmem:[%s8946_s11 + $0x403] ss:$8 sm:$0xf] }
 0x250   : > { %7581 = vmatpush1.bf16.xpose.msra.mxu0 %v8645_v11  ;;  %6292 = vmatprep.mubr.bf16.mxu1 %v4235_v24  ;;  %v1078_v20 = vmul.f32 %v610_v59, %v9427_v5  ;;  %v4105_v29 = vmax.f32 %v3973_v1, 0.0  ;;  %v3097_v42 = vadd.f32 %v2965_v14, %v2086_v13  ;;  %v3759_v21 = vrot.slane %v11457_v36, %v9061_v4  ;;  %v8648_v11 = vld [vmem:[%s8952_s30 + $0xf0] ss:$528 sps:$4 sm:$0xff]   ;;  %v8651_v28 = vld [vmem:[%s8952_s30 + $0x1f8] ss:$528 sps:$4 sm:$0xff]  }
 0x251   : > { %7612 = vmatprep.mubr.bf16.mxu0 %v4301_v60  ;;  %6300 = vmatprep.subr.bf16.mxu1 %v8650_v49  ;;  %v1144_v53 = vmul.f32 %v874_v45, %v9427_v5  ;;  %v4171_v31 = vmax.f32 %v4039_v34, 0.0  ;;  %v3163_v58 = vadd.f32 %v3031_v41, %v2152_v35  ;;  %v2968_v0 = vmul.f32 %v2500_v30, %v9429_v62  ;;  %v8656_v49 = vld [vmem:[%s8952_s30 + $0xfc] ss:$528 sps:$4 sm:$0xff]  }
 0x252   : > { %7620 = vmatprep.subr.bf16.mxu0 %v8653_v54  ;;  %v2089_v46 = vadd.f32 %v1957_v10, %v1078_v20  ;;  %v3034_v27 = vmul.f32 %v2764_v50, %v9429_v62  ;;  %v4234_v57 = vpack.c.bf16 %v4102_v52, %v4102_v52  ;;  %v4300_v12 = vpack.c.bf16 %v4168_v18, %v4168_v18  ;;  %v8659_v54 = vld [vmem:[%s8952_s30 + $0x204] ss:$528 sps:$4 sm:$0xff]  }
 0x253   : > { %v2155_v24 = vadd.f32 %v2023_v9, %v1144_v53  ;;  %v4237_v17 = vpack.c.bf16 %v4105_v29, %v4105_v29  ;;  %v3972_v36 = vadd.f32 %v3495_v37, %v3097_v42  ;;  %v1485_v26 = vrot.slane %v11441_v40, %v9061_v4 }
 0x254   : > { %v1749_v63 = vrot.slane %v11624_v38, %v8981_v23  ;;  %v4303_v60 = vpack.c.bf16 %v4171_v31, %v4171_v31  ;;  %v4038_v56 = vadd.f32 %v3759_v21, %v3163_v58  ;;  %v3100_v55 = vadd.f32 %v2968_v0, %v2089_v46 }
 0x255   : > { %v3507_v33 = vrot.slane %v11505_v7, %v9059_v3  ;;  %v3166_v8 = vadd.f32 %v3034_v27, %v2155_v24  ;;  %v3771_v1 = vrot.slane %v11668_v44, %v8975_v19  ;;  %v606_v14 = vrot.slane %v11450_v47, %v9061_v4 }
 0x256   : > { %v870_v40 = vrot.slane %v11637_v6, %v8981_v23  ;;  %v2496_v15 = vrot.slane %v11463_v61, %v9061_v4  ;;  %v1497_v3 = vrot.slane %v9013_v43, %v8975_v19  ;;  %v1761_v13 = vrot.slane %v11624_v38, %v8979_v22 }
 0x257   : > { %v1956_v32 = vmul.f32 %v1485_v26, %v9489_v16  ;;  %v2022_v47 = vmul.f32 %v1749_v63, %v9489_v16  ;;  %v2760_v59 = vrot.slane %v11648_v2, %v8981_v23  ;;  %v3975_v34 = vadd.f32 %v3507_v33, %v3100_v55 }
 0x258   : > { %v618_v61 = vrot.slane %v9007_v39, %v8975_v19  ;;  %v882_v41 = vrot.slane %v11637_v6, %v8979_v22  ;;  %v4104_v45 = vmax.f32 %v3972_v36, 0.0  ;;  %v4041_v35 = vadd.f32 %v3771_v1, %v3166_v8  ;;  %v8665_v8 = vld [vmem:[%s8952_s30 + $0x20c] ss:$528 sps:$4 sm:$0xff]  }
 0x259   : > { %v1077_v10 = vmul.f32 %v606_v14, %v9427_v5  ;;  %v1143_v30 = vmul.f32 %v870_v40, %v9427_v5  ;;  %v1959_v9 = vmul.f32 %v1497_v3, %v9489_v16  ;;  %v2508_v50 = vrot.slane %v9023_v48, %v8975_v19 }
 0x25a   : > { %6293 = vmatmul.mubr.bf16.vlgmr.msra.gmra.mrb[0].mxu1 %v4234_v57  ;;  %v2025_v52 = vmul.f32 %v1761_v13, %v9489_v16  ;;  %v2772_v18 = vrot.slane %v11648_v2, %v8979_v22  ;;  %v2967_v20 = vmul.f32 %v2496_v15, %v9429_v62  ;;  %v3033_v42 = vmul.f32 %v2760_v59, %v9429_v62 }
 0x25b   : > { %7613 = vmatmul.mubr.bf16.vlgmr.msra.gmra.mrb[0].mxu0 %v4300_v12  ;;  %6301 = vmatpush1.bf16.xpose.msra.mxu1 %v8648_v11  ;;  %v2088_v37 = vadd.f32 %v1956_v32, %v1077_v10  ;;  %v2154_v29 = vadd.f32 %v2022_v47, %v1143_v30  ;;  %v4170_v21 = vmax.f32 %v4038_v56, 0.0  ;;  %v4107_v53 = vmax.f32 %v3975_v34, 0.0  ;;  %v8654_v11 = vld [vmem:[%s8952_s30 + $0xf8] ss:$528 sps:$4 sm:$0xff]  }
 0x25c   : > { %7621 = vmatpush1.bf16.xpose.msra.mxu0 %v8651_v28  ;;  %6332 = vmatprep.mubr.bf16.mxu1 %v4237_v17  ;;  %v1080_v31 = vmul.f32 %v618_v61, %v9427_v5  ;;  %v1146_v58 = vmul.f32 %v882_v41, %v9427_v5  ;;  %v4236_v46 = vpack.c.bf16 %v4104_v45, %v4104_v45  ;;  %v4173_v0 = vmax.f32 %v4041_v35, 0.0  ;;  %v8657_v28 = vld [vmem:[%s8952_s30 + $0x200] ss:$528 sps:$4 sm:$0xff]   ;;  %v8663_v10 = vld [vmem:[%s8952_s30 + $0x208] ss:$528 sps:$4 sm:$0xff]  }
 0x25d   : > { %7652 = vmatprep.mubr.bf16.mxu0 %v4303_v60  ;;  %6340 = vmatprep.subr.bf16.mxu1 %v8656_v49  ;;  %v2970_v27 = vmul.f32 %v2508_v50, %v9429_v62  ;;  %v3036_v12 = vmul.f32 %v2772_v18, %v9429_v62  ;;  %v3099_v17 = vadd.f32 %v2967_v20, %v2088_v37 }
 0x25e   : > { %7660 = vmatprep.subr.bf16.mxu0 %v8659_v54  ;;  %v2091_v24 = vadd.f32 %v1959_v9, %v1080_v31  ;;  %v2157_v57 = vadd.f32 %v2025_v52, %v1146_v58  ;;  %v3503_v36 = vrot.slane %v11505_v7, %v9061_v4  ;;  %v3165_v26 = vadd.f32 %v3033_v42, %v2154_v29  ;;  %v8662_v54 = vld [vmem:[%s8952_s30 + $0x104] ss:$528 sps:$4 sm:$0xff]  }
 0x25f   : > { %v3767_v63 = vrot.slane %v11668_v44, %v8981_v23  ;;  %v4302_v60 = vpack.c.bf16 %v4170_v21, %v4170_v21  ;;  %v4239_v56 = vpack.c.bf16 %v4107_v53, %v4107_v53  ;;  %v1493_v55 = vrot.slane %v9013_v43, %v8981_v23 }
 0x260   : > { %v1757_v33 = vrot.slane %v11624_v38, %v8985_v25  ;;  %v4305_v49 = vpack.c.bf16 %v4173_v0, %v4173_v0  ;;  %v3515_v1 = vrot.slane %v9029_v51, %v8975_v19  ;;  %v3779_v4 = vrot.slane %v11668_v44, %v8979_v22 }
 0x261   : > { %v614_v7 = vrot.slane %v9007_v39, %v8981_v23  ;;  %v3102_v14 = vadd.f32 %v2970_v27, %v2091_v24  ;;  %v3168_v40 = vadd.f32 %v3036_v12, %v2157_v57  ;;  %v878_v43 = vrot.slane %v11637_v6, %v8985_v25 }
 0x262   : > { %v3974_v38 = vadd.f32 %v3503_v36, %v3099_v17  ;;  %v4040_v15 = vadd.f32 %v3767_v63, %v3165_v26  ;;  %v2504_v19 = vrot.slane %v9023_v48, %v8981_v23  ;;  %v1958_v22 = vmul.f32 %v1493_v55, %v9489_v16 }
 0x263   : > { %v2024_v39 = vmul.f32 %v1757_v33, %v9489_v16  ;;  %v2768_v3 = vrot.slane %v11648_v2, %v8985_v25  ;;  %v3977_v6 = vadd.f32 %v3515_v1, %v3102_v14  ;;  %v4043_v13 = vadd.f32 %v3779_v4, %v3168_v40  ;;  %v8660_v2 = vld [vmem:[%s8952_s30 + $0x100] ss:$528 sps:$4 sm:$0xff]  }
 0x264   : > { %v1079_v32 = vmul.f32 %v614_v7, %v9427_v5  ;;  %v1145_v47 = vmul.f32 %v878_v43, %v9427_v5  ;;  %v4106_v48 = vmax.f32 %v3974_v38, 0.0  ;;  %v4172_v59 = vmax.f32 %v4040_v15, 0.0 }
 0x265   : > { %v2969_v61 = vmul.f32 %v2504_v19, %v9429_v62  ;;  %v3035_v16 = vmul.f32 %v2768_v3, %v9429_v62  ;;  %v4109_v45 = vmax.f32 %v3977_v6, 0.0  ;;  %v4175_v35 = vmax.f32 %v4043_v13, 0.0 }
 0x266   : > { %6333 = vmatmul.mubr.bf16.vlgmr.msra.gmra.mrb[0].mxu1 %v4236_v46  ;;  %v2090_v34 = vadd.f32 %v1958_v22, %v1079_v32  ;;  %v2156_v41 = vadd.f32 %v2024_v39, %v1145_v47  ;;  %v4238_v30 = vpack.c.bf16 %v4106_v48, %v4106_v48  ;;  %v3511_v9 = vrot.slane %v9029_v51, %v8981_v23 }
 0x267   : > { %7653 = vmatmul.mubr.bf16.vlgmr.msra.gmra.mrb[0].mxu0 %v4302_v60  ;;  %6341 = vmatpush1.bf16.xpose.msra.mxu1 %v8654_v11  ;;  %v4304_v50 = vpack.c.bf16 %v4172_v59, %v4172_v59  ;;  %v3775_v5 = vrot.slane %v11668_v44, %v8985_v25  ;;  %v4241_v37 = vpack.c.bf16 %v4109_v45, %v4109_v45 }
 0x268   : > { %7661 = vmatpush1.bf16.xpose.msra.mxu0 %v8657_v28  ;;  %6372 = vmatprep.mubr.bf16.mxu1 %v4239_v56  ;;  %v3101_v52 = vadd.f32 %v2969_v61, %v2090_v34  ;;  %v3167_v18 = vadd.f32 %v3035_v16, %v2156_v41  ;;  %v4307_v62 = vpack.c.bf16 %v4175_v35, %v4175_v35 }
 0x269   : > { %7692 = vmatprep.mubr.bf16.mxu0 %v4305_v49  ;;  %6380 = vmatprep.subr.bf16.mxu1 %v8662_v54 }
 0x26a   : > { %7700 = vmatprep.subr.bf16.mxu0 %v8665_v8  ;;  %v3976_v20 = vadd.f32 %v3511_v9, %v3101_v52  ;;  %v4042_v29 = vadd.f32 %v3775_v5, %v3167_v18 }
 0x26c   : > { %v4108_v42 = vmax.f32 %v3976_v20, 0.0  ;;  %v4174_v23 = vmax.f32 %v4042_v29, 0.0 }
 0x26e   : > { %v4240_v51 = vpack.c.bf16 %v4108_v42, %v4108_v42  ;;  %v4306_v21 = vpack.c.bf16 %v4174_v23, %v4174_v23 }
 0x272   : > { %6373 = vmatmul.mubr.bf16.vlgmr.msra.gmra.mrb[0].mxu1 %v4238_v30 }
 0x273   : > { %7693 = vmatmul.mubr.bf16.vlgmr.msra.gmra.mrb[0].mxu0 %v4304_v50  ;;  %6381 = vmatpush1.bf16.xpose.msra.mxu1 %v8660_v2 }
 0x274   : > { %7701 = vmatpush1.bf16.xpose.msra.mxu0 %v8663_v10  ;;  %6412 = vmatprep.mubr.bf16.mxu1 %v4241_v37 }
 0x275   : > { %7732 = vmatprep.mubr.bf16.mxu0 %v4307_v62 }
 0x27e   : > { %6413 = vmatmul.mubr.bf16.vlgmr.msra.gmra.mrb[0].mxu1 %v4240_v51 }
 0x27f   : > { %7733 = vmatmul.mubr.bf16.vlgmr.msra.gmra.mrb[0].mxu0 %v4306_v21 }
 0x351   : > { %v6414_v25 = vpop.f32.mrb[0].mxu1 }
 0x352   : > { %v7734_v44 = vpop.f32.mrb[0].mxu0  ;;  %v6416_v31 = vpop.f32.mrb[1].mxu1 }
 0x353   : > { %v8138_v53 = vadd.f32 %v7734_v44, %v6414_v25  ;;  %v7736_v58 = vpop.f32.mrb[1].mxu0  ;;  %v6417_v46 = vpop.f32.mrb[2].mxu1 }
 0x354   : > { %v7737_v0 = vpop.f32.mrb[2].mxu0  ;;  %v6418_v24 = vpop.f32.mrb[3].mxu1 }
 0x355   : > { %7741 = vst.msk [vmem:[%s265_s29] sm:$0xff] %vm7740_vm0, %v8138_v53  ;;  %v7738_v27 = vpop.f32.mrb[3].mxu0 }
 0x356 PF: > { %s19_s17 = sadd.s32 1, %s8780_s17   ;;  %s12047_s12 = smov %s8764_s13 }
 0x357   : > { %p16_p11 = scmp.ge.s32.totalorder %s19_s17, 4   ;;  %s12048_s13 = smov %s8768_s14 }
 0x358   : > { %s12049_s14 = smov %s8855_s23  ;;  %s12050_s15 = smov %s8776_s16 }
 0x359   : > { %s12051_s16 = smov %s12053_s19  ;;  %18 = sbr.rel (!%p16_p11) target bundleno = 6 (0x6), region = 155 }
 0x360   :  { %7767 = vsyncpa [#allocation3], 1 }
 0x361   :  { %7769 = vsyncpa [#allocation3 + $0x1], 1 }
 0x362   :  { %7770 = vsyncpa [#allocation5], 1 }
 0x363   :  { %7772 = vsyncpa [#allocation5 + $0x1], 1 }

</bundles_post_ra>
